<compile_context>
chip_gen: v6e
topology: v6e:2x2x1
jax: 0.10.0
libtpu: 0.0.40
codegen_flags: <defaults>
</compile_context>

<pallas_src>
import math
from functools import partial

import jax
import jax.numpy as jnp
from jax import lax
from jax.experimental import pallas as pl
from jax.experimental.pallas import tpu as pltpu


def _encoder_block_kernel(
    x_ref,       # (S_pad, E)  input block (residual path + attention source)
    ln_w_ref,    # (1, E)      f32
    ln_b_ref,    # (1, E)      f32
    wqkv_ref,    # (E, 3E)     bf16, pre-transposed; Q part pre-scaled by 1/sqrt(Dh)
    bqkv_ref,    # (1, 3E)     f32,  Q part pre-scaled
    wo_ref,      # (H, Dh, E)  bf16, head-major output projection
    bo_ref,      # (1, E)      f32
    w1_ref,      # (E, F)      bf16, pre-transposed
    b1_ref,      # (1, F)      f32
    w2_ref,      # (F, E)      bf16, pre-transposed
    b2_ref,      # (1, E)      f32
    o_ref,       # (S_pad, E)
    qh_ref,      # VMEM scratch (H, S_pad, Dh) bf16
    kh_ref,      # VMEM scratch (H, S_pad, Dh) bf16
    vh_ref,      # VMEM scratch (H, S_pad, Dh) bf16
    *,
    num_heads: int,
    seq_len: int,
    approx_gelu: bool,
):
    f32 = jnp.float32
    cdt = qh_ref.dtype                      # bf16 compute dtype for MXU operands

    s_pad, E = x_ref.shape
    Dh = E // num_heads
    eps = 1e-5
    inv_sqrt2 = 1.0 / math.sqrt(2.0)

    # ---- LayerNorm (f32), once over the full (padded) sequence ----
    x = x_ref[...].astype(f32)                                       # (S_pad, E)
    mu = jnp.mean(x, axis=-1, keepdims=True)
    xc = x - mu
    var = jnp.mean(xc * xc, axis=-1, keepdims=True)
    norm = (xc * lax.rsqrt(var + eps)) * ln_w_ref[...].astype(f32) \
           + ln_b_ref[...].astype(f32)

    # ---- Fused QKV projection: one (S,E)@(E,3E) matmul, f32 accumulation ----
    qkv = jnp.dot(norm.astype(cdt), wqkv_ref[...],
                  preferred_element_type=f32) + bqkv_ref[...]        # (S_pad, 3E)

    # ---- Stage head-major Q/K/V into VMEM scratch (done once, bounds live
    #      ranges; the attention matmuls below read contiguous blocks) ----
    for h in range(num_heads):
        lo = h * Dh
        qh_ref[h] = qkv[:, lo:lo + Dh].astype(cdt)
        kh_ref[h] = qkv[:, E + lo:E + lo + Dh].astype(cdt)
        vh_ref[h] = qkv[:, 2 * E + lo:2 * E + lo + Dh].astype(cdt)

    qh = qh_ref[...]                                                 # (H, S_pad, Dh)
    kh = kh_ref[...]
    vh = vh_ref[...]

    # ---- Batched attention over the head axis (single dot_general each) ----
    scores = jnp.einsum("hqd,hkd->hqk", qh, kh,
                        preferred_element_type=f32)                  # (H, S_pad, S_pad)
    if seq_len < s_pad:  # static branch: mask padded keys
        key_idx = lax.broadcasted_iota(jnp.int32, (1, s_pad), 1)     # (1, S_pad)
        scores = jnp.where((key_idx < seq_len)[None], scores, -1e30)
    scores = scores - jnp.max(scores, axis=-1, keepdims=True)
    p = jnp.exp(scores)
    p = p * pl.reciprocal(jnp.sum(p, axis=-1, keepdims=True), approx=True)
    ctx = jnp.einsum("hqk,hkd->hqd", p.astype(cdt), vh,
                     preferred_element_type=f32)                     # (H, S_pad, Dh)

    # ---- Output projection: batched matmul vs head-major W_out, sum heads ----
    attn = jnp.sum(
        jnp.einsum("hqd,hde->hqe", ctx.astype(cdt), wo_ref[...],
                   preferred_element_type=f32),
        axis=0) + bo_ref[...]                                        # (S_pad, E)
    x1 = attn + x

    # ---- MLP: Linear -> GELU -> Linear, + residual ----
    h1 = jnp.dot(x1.astype(cdt), w1_ref[...],
                 preferred_element_type=f32) + b1_ref[...]           # (S_pad, F)
    if approx_gelu:
        h1 = jax.nn.gelu(h1, approximate=True)                       # EUP tanh path
    else:
        h1 = 0.5 * h1 * (1.0 + lax.erf(h1 * inv_sqrt2))              # exact PyTorch GELU
    mlp = jnp.dot(h1.astype(cdt), w2_ref[...],
                  preferred_element_type=f32) + b2_ref[...]          # (S_pad, E)

    o_ref[...] = (mlp + x1).astype(o_ref.dtype)


def _round_up(x, m):
    return ((x + m - 1) // m) * m


def _vmem_limit_bytes(fraction=0.85, default=64 * 1024 * 1024):
    """~85% of physical VMEM: ~109 MiB on v5e/v6e (128 MiB), ~54 MiB on v7x (64 MiB)."""
    try:
        cap = getattr(pltpu.get_tpu_info(), "vmem_capacity_bytes", None)
        if cap:
            return int(cap * fraction)
    except Exception:
        pass
    return default


def prepare_params(params, *, num_heads, compute_dtype=jnp.bfloat16):
    """Wrapper-side weight prep: transpose, head-major W_out, 1/sqrt(Dh) folding,
    bf16 cast for MXU operands, lane-dense (1, N) f32 biases."""
    f32 = jnp.float32
    E = params["ln_w"].shape[0]
    F = params["w1"].shape[0]
    assert E % num_heads == 0, "embedding_dim must be divisible by num_heads"
    Dh = E // num_heads
    scale = 1.0 / math.sqrt(Dh)

    w_in = params["w_in"].astype(f32)            # (3E, E) packed [q; k; v]
    b_in = params["b_in"].astype(f32)            # (3E,)
    w_in = jnp.concatenate([w_in[:E] * scale, w_in[E:]], axis=0)
    b_in = jnp.concatenate([b_in[:E] * scale, b_in[E:]], axis=0)

    return {
        "ln_w": params["ln_w"].reshape(1, E).astype(f32),
        "ln_b": params["ln_b"].reshape(1, E).astype(f32),
        "wqkv_t": w_in.T.astype(compute_dtype),                            # (E, 3E)
        "bqkv": b_in.reshape(1, 3 * E).astype(f32),
        "wo_h": params["w_out"].T.reshape(num_heads, Dh, E).astype(compute_dtype),
        "bo": params["b_out"].reshape(1, E).astype(f32),
        "w1_t": params["w1"].T.astype(compute_dtype),                      # (E, F)
        "b1": params["b1"].reshape(1, F).astype(f32),
        "w2_t": params["w2"].T.astype(compute_dtype),                      # (F, E)
        "b2": params["b2"].reshape(1, E).astype(f32),
    }


def transformer_encoder_block(x, params, *, num_heads,
                              compute_dtype=jnp.bfloat16, approx_gelu=False):
    """x: [B, S, E] float32. params: PyTorch-layout weights (see init_params)."""
    B, S, E = x.shape
    Dh = E // num_heads
    p = prepare_params(params, num_heads=num_heads, compute_dtype=compute_dtype)

    # Pad sequence to a multiple of 128 (lane-dense scores / P@V); padded keys
    # are masked inside the kernel, padded output rows are sliced off below.
    S_pad = max(_round_up(S, 128), 128)
    x_in = jnp.pad(x, ((0, 0), (0, S_pad - S), (0, 0))) if S_pad != S else x

    def const_spec(arr):
        if arr.ndim == 2:
            return pl.BlockSpec(arr.shape, lambda b: (0, 0))
        return pl.BlockSpec(arr.shape, lambda b: (0, 0, 0))

    kernel = partial(_encoder_block_kernel, num_heads=num_heads, seq_len=S,
                     approx_gelu=approx_gelu)

    out = pl.pallas_call(
        kernel,
        out_shape=jax.ShapeDtypeStruct((B, S_pad, E), x.dtype),
        grid=(B,),
        in_specs=[
            pl.BlockSpec((pl.Squeezed(), S_pad, E), lambda b: (b, 0, 0)),   # x
            const_spec(p["ln_w"]), const_spec(p["ln_b"]),
            const_spec(p["wqkv_t"]), const_spec(p["bqkv"]),
            const_spec(p["wo_h"]), const_spec(p["bo"]),
            const_spec(p["w1_t"]), const_spec(p["b1"]),
            const_spec(p["w2_t"]), const_spec(p["b2"]),
        ],
        out_specs=pl.BlockSpec((pl.Squeezed(), S_pad, E), lambda b: (b, 0, 0)),
        scratch_shapes=[
            pltpu.VMEM((num_heads, S_pad, Dh), compute_dtype),  # Q (head-major)
            pltpu.VMEM((num_heads, S_pad, Dh), compute_dtype),  # K
            pltpu.VMEM((num_heads, S_pad, Dh), compute_dtype),  # V
        ],
        compiler_params=pltpu.CompilerParams(
            dimension_semantics=("parallel",),           # megacore-shardable batch
            vmem_limit_bytes=_vmem_limit_bytes(),
        ),
    )(
        x_in,
        p["ln_w"], p["ln_b"],
        p["wqkv_t"], p["bqkv"],
        p["wo_h"], p["bo"],
        p["w1_t"], p["b1"],
        p["w2_t"], p["b2"],
    )
    return out[:, :S, :]


def init_params(key, embedding_dim, num_heads, dim_feedforward):
    """PyTorch-layout parameters (same shapes/convention as the nn.Module)."""
    E, F = embedding_dim, dim_feedforward
    ks = jax.random.split(key, 8)
    scale_e = 1.0 / math.sqrt(E)
    scale_f = 1.0 / math.sqrt(F)
    return {
        "ln_w": jnp.ones((E,), jnp.float32),
        "ln_b": jnp.zeros((E,), jnp.float32),
        "w_in": jax.random.uniform(ks[0], (3 * E, E), jnp.float32, -scale_e, scale_e),
        "b_in": jax.random.uniform(ks[1], (3 * E,), jnp.float32, -scale_e, scale_e),
        "w_out": jax.random.uniform(ks[2], (E, E), jnp.float32, -scale_e, scale_e),
        "b_out": jax.random.uniform(ks[3], (E,), jnp.float32, -scale_e, scale_e),
        "w1": jax.random.uniform(ks[4], (F, E), jnp.float32, -scale_e, scale_e),
        "b1": jax.random.uniform(ks[5], (F,), jnp.float32, -scale_e, scale_e),
        "w2": jax.random.uniform(ks[6], (E, F), jnp.float32, -scale_f, scale_f),
        "b2": jax.random.uniform(ks[7], (E,), jnp.float32, -scale_f, scale_f),
    }


def reference_encoder_block(x, params, *, num_heads):
    """Pure-JAX reference matching the PyTorch forward (eval mode)."""
    B, S, E = x.shape
    Dh = E // num_heads
    x32 = x.astype(jnp.float32)
    mu = jnp.mean(x32, axis=-1, keepdims=True)
    xc = x32 - mu
    var = jnp.mean(xc * xc, axis=-1, keepdims=True)
    n = xc / jnp.sqrt(var + 1e-5) * params["ln_w"] + params["ln_b"]

    qkv = n @ params["w_in"].T + params["b_in"]
    q, k, v = jnp.split(qkv, 3, axis=-1)

    def heads(t):
        return t.reshape(B, S, num_heads, Dh).transpose(0, 2, 1, 3)

    qh, kh, vh = heads(q), heads(k), heads(v)
    scores = jnp.einsum("bhqd,bhkd->bhqk", qh, kh) / math.sqrt(Dh)
    p = jax.nn.softmax(scores, axis=-1)
    ctx = jnp.einsum("bhqk,bhkd->bhqd", p, vh)
    ctx = ctx.transpose(0, 2, 1, 3).reshape(B, S, E)
    attn = ctx @ params["w_out"].T + params["b_out"]
    x1 = attn + x32
    h1 = x1 @ params["w1"].T + params["b1"]
    h1 = 0.5 * h1 * (1.0 + lax.erf(h1 / math.sqrt(2.0)))
    mlp = h1 @ params["w2"].T + params["b2"]
    return mlp + x1


if __name__ == "__main__":
    # Small, lane-aligned ViT-ish config. S=16 exercises the pad-to-128 +
    # key-masking path; E and FF are multiples of 128.
    B, S, E, H, FF = 2, 16, 128, 4, 256

    key = jax.random.PRNGKey(0)
    k_x, k_p = jax.random.split(key)
    x = jax.random.normal(k_x, (B, S, E), dtype=jnp.float32)
    params = init_params(k_p, E, H, FF)

    out = transformer_encoder_block(x, params, num_heads=H)
    out = jax.block_until_ready(out)
    assert out.shape == (B, S, E)
    assert bool(jnp.all(jnp.isfinite(out)))

    ref = reference_encoder_block(x, params, num_heads=H)
    max_err = float(jnp.max(jnp.abs(out - ref)))
    assert max_err < 1e-1, f"max abs error vs reference: {max_err}"

    print("KERNEL_OK")
</pallas_src>

<mosaic_0001>
module attributes {stable_mosaic.version = 11 : i64} {
  func.func @_encoder_block_kernel(%arg0: i32, %arg1: memref<1x128x128xf32, #tpu.memory_space<vmem>>, %arg2: memref<1x128xf32, #tpu.memory_space<vmem>>, %arg3: memref<1x128xf32, #tpu.memory_space<vmem>>, %arg4: memref<128x384xbf16, #tpu.memory_space<vmem>>, %arg5: memref<1x384xf32, #tpu.memory_space<vmem>>, %arg6: memref<4x32x128xbf16, #tpu.memory_space<vmem>>, %arg7: memref<1x128xf32, #tpu.memory_space<vmem>>, %arg8: memref<128x256xbf16, #tpu.memory_space<vmem>>, %arg9: memref<1x256xf32, #tpu.memory_space<vmem>>, %arg10: memref<256x128xbf16, #tpu.memory_space<vmem>>, %arg11: memref<1x128xf32, #tpu.memory_space<vmem>>, %arg12: memref<1x128x128xf32, #tpu.memory_space<vmem>>, %arg13: memref<4x128x32xbf16, #tpu.memory_space<vmem>>, %arg14: memref<4x128x32xbf16, #tpu.memory_space<vmem>>, %arg15: memref<4x128x32xbf16, #tpu.memory_space<vmem>>) attributes {dimension_semantics = [#tpu.dimension_semantics<parallel>], iteration_bounds = array<i64: 2>, scalar_prefetch = 0 : i64, scratch_operands = 3 : i64, tpu.core_type = #tpu.core_type<tc>, window_params = [{transform_indices = @transform_0, window_bounds = array<i64: 1, 128, 128>}, {pipeline_mode = #tpu.pipeline_mode<synchronous>, transform_indices = @transform_1, window_bounds = array<i64: 1, 128>}, {pipeline_mode = #tpu.pipeline_mode<synchronous>, transform_indices = @transform_2, window_bounds = array<i64: 1, 128>}, {pipeline_mode = #tpu.pipeline_mode<synchronous>, transform_indices = @transform_3, window_bounds = array<i64: 128, 384>}, {pipeline_mode = #tpu.pipeline_mode<synchronous>, transform_indices = @transform_4, window_bounds = array<i64: 1, 384>}, {pipeline_mode = #tpu.pipeline_mode<synchronous>, transform_indices = @transform_5, window_bounds = array<i64: 4, 32, 128>}, {pipeline_mode = #tpu.pipeline_mode<synchronous>, transform_indices = @transform_6, window_bounds = array<i64: 1, 128>}, {pipeline_mode = #tpu.pipeline_mode<synchronous>, transform_indices = @transform_7, window_bounds = array<i64: 128, 256>}, {pipeline_mode = #tpu.pipeline_mode<synchronous>, transform_indices = @transform_8, window_bounds = array<i64: 1, 256>}, {pipeline_mode = #tpu.pipeline_mode<synchronous>, transform_indices = @transform_9, window_bounds = array<i64: 256, 128>}, {pipeline_mode = #tpu.pipeline_mode<synchronous>, transform_indices = @transform_10, window_bounds = array<i64: 1, 128>}, {transform_indices = @transform_11, window_bounds = array<i64: 1, 128, 128>}]} {
    %c0 = arith.constant 0 : index
    %c0_0 = arith.constant 0 : index
    %c0_1 = arith.constant 0 : index
    %0 = vector.load %arg1[%c0, %c0_0, %c0_1] : memref<1x128x128xf32, #tpu.memory_space<vmem>>, vector<1x128x128xf32>
    %1 = vector.shape_cast %0 : vector<1x128x128xf32> to vector<128x128xf32>
    %cst = arith.constant dense<0.000000e+00> : vector<128xf32>
    %2 = vector.multi_reduction <add>, %1, %cst [1] : vector<128x128xf32> to vector<128xf32>
    %3 = vector.shape_cast %2 : vector<128xf32> to vector<128x1xf32>
    %cst_2 = arith.constant 1.280000e+02 : f32
    %4 = vector.broadcast %cst_2 : f32 to vector<128x1xf32>
    %5 = arith.divf %3, %4 : vector<128x1xf32>
    %6 = vector.broadcast %5 : vector<128x1xf32> to vector<128x128xf32>
    %7 = arith.subf %1, %6 : vector<128x128xf32>
    %8 = arith.mulf %7, %7 : vector<128x128xf32>
    %cst_3 = arith.constant dense<0.000000e+00> : vector<128xf32>
    %9 = vector.multi_reduction <add>, %8, %cst_3 [1] : vector<128x128xf32> to vector<128xf32>
    %10 = vector.shape_cast %9 : vector<128xf32> to vector<128x1xf32>
    %cst_4 = arith.constant 1.280000e+02 : f32
    %11 = vector.broadcast %cst_4 : f32 to vector<128x1xf32>
    %12 = arith.divf %10, %11 : vector<128x1xf32>
    %cst_5 = arith.constant 9.99999974E-6 : f32
    %13 = vector.broadcast %cst_5 : f32 to vector<128x1xf32>
    %14 = arith.addf %12, %13 : vector<128x1xf32>
    %15 = math.rsqrt %14 : vector<128x1xf32>
    %16 = vector.broadcast %15 : vector<128x1xf32> to vector<128x128xf32>
    %17 = arith.mulf %7, %16 : vector<128x128xf32>
    %c0_6 = arith.constant 0 : index
    %c0_7 = arith.constant 0 : index
    %18 = vector.load %arg2[%c0_6, %c0_7] : memref<1x128xf32, #tpu.memory_space<vmem>>, vector<1x128xf32>
    %19 = vector.broadcast %18 : vector<1x128xf32> to vector<128x128xf32>
    %20 = arith.mulf %17, %19 : vector<128x128xf32>
    %c0_8 = arith.constant 0 : index
    %c0_9 = arith.constant 0 : index
    %21 = vector.load %arg3[%c0_8, %c0_9] : memref<1x128xf32, #tpu.memory_space<vmem>>, vector<1x128xf32>
    %22 = vector.broadcast %21 : vector<1x128xf32> to vector<128x128xf32>
    %23 = arith.addf %20, %22 : vector<128x128xf32>
    %24 = arith.truncf %23 : vector<128x128xf32> to vector<128x128xbf16>
    %c0_10 = arith.constant 0 : index
    %c0_11 = arith.constant 0 : index
    %25 = vector.load %arg4[%c0_10, %c0_11] : memref<128x384xbf16, #tpu.memory_space<vmem>>, vector<128x384xbf16>
    %cst_12 = arith.constant dense<0.000000e+00> : vector<128x384xf32>
    %26 = tpu.matmul %24, %25, %cst_12 {dimension_numbers = #tpu.dot_dimension_numbers<[1], [0], [0], [1], [0, 0, 1, 1], [], []>} : vector<128x128xbf16>, vector<128x384xbf16>, vector<128x384xf32> -> vector<128x384xf32>
    %c0_13 = arith.constant 0 : index
    %c0_14 = arith.constant 0 : index
    %27 = vector.load %arg5[%c0_13, %c0_14] : memref<1x384xf32, #tpu.memory_space<vmem>>, vector<1x384xf32>
    %28 = vector.broadcast %27 : vector<1x384xf32> to vector<128x384xf32>
    %29 = arith.addf %26, %28 : vector<128x384xf32>
    %30 = vector.extract_strided_slice %29 {offsets = [0, 0], sizes = [128, 32], strides = [1, 1]} : vector<128x384xf32> to vector<128x32xf32>
    %31 = arith.truncf %30 : vector<128x32xf32> to vector<128x32xbf16>
    %c0_15 = arith.constant 0 : index
    %c0_16 = arith.constant 0 : index
    %c0_17 = arith.constant 0 : index
    %32 = vector.load %arg13[%c0_15, %c0_16, %c0_17] : memref<4x128x32xbf16, #tpu.memory_space<vmem>>, vector<1x128x32xbf16>
    %33 = vector.shape_cast %32 : vector<1x128x32xbf16> to vector<128x32xbf16>
    %34 = vector.shape_cast %31 : vector<128x32xbf16> to vector<1x128x32xbf16>
    tpu.vector_store %arg13[%c0_15, %c0_16, %c0_17], %34 {strides = array<i32>} : memref<4x128x32xbf16, #tpu.memory_space<vmem>>, vector<1x128x32xbf16>,
    %35 = vector.extract_strided_slice %29 {offsets = [0, 128], sizes = [128, 32], strides = [1, 1]} : vector<128x384xf32> to vector<128x32xf32>
    %36 = arith.truncf %35 : vector<128x32xf32> to vector<128x32xbf16>
    %c0_18 = arith.constant 0 : index
    %c0_19 = arith.constant 0 : index
    %c0_20 = arith.constant 0 : index
    %37 = vector.load %arg14[%c0_18, %c0_19, %c0_20] : memref<4x128x32xbf16, #tpu.memory_space<vmem>>, vector<1x128x32xbf16>
    %38 = vector.shape_cast %37 : vector<1x128x32xbf16> to vector<128x32xbf16>
    %39 = vector.shape_cast %36 : vector<128x32xbf16> to vector<1x128x32xbf16>
    tpu.vector_store %arg14[%c0_18, %c0_19, %c0_20], %39 {strides = array<i32>} : memref<4x128x32xbf16, #tpu.memory_space<vmem>>, vector<1x128x32xbf16>,
    %40 = vector.extract_strided_slice %29 {offsets = [0, 256], sizes = [128, 32], strides = [1, 1]} : vector<128x384xf32> to vector<128x32xf32>
    %41 = arith.truncf %40 : vector<128x32xf32> to vector<128x32xbf16>
    %c0_21 = arith.constant 0 : index
    %c0_22 = arith.constant 0 : index
    %c0_23 = arith.constant 0 : index
    %42 = vector.load %arg15[%c0_21, %c0_22, %c0_23] : memref<4x128x32xbf16, #tpu.memory_space<vmem>>, vector<1x128x32xbf16>
    %43 = vector.shape_cast %42 : vector<1x128x32xbf16> to vector<128x32xbf16>
    %44 = vector.shape_cast %41 : vector<128x32xbf16> to vector<1x128x32xbf16>
    tpu.vector_store %arg15[%c0_21, %c0_22, %c0_23], %44 {strides = array<i32>} : memref<4x128x32xbf16, #tpu.memory_space<vmem>>, vector<1x128x32xbf16>,
    %45 = vector.extract_strided_slice %29 {offsets = [0, 32], sizes = [128, 32], strides = [1, 1]} : vector<128x384xf32> to vector<128x32xf32>
    %46 = arith.truncf %45 : vector<128x32xf32> to vector<128x32xbf16>
    %c1 = arith.constant 1 : index
    %c0_24 = arith.constant 0 : index
    %c0_25 = arith.constant 0 : index
    %47 = vector.load %arg13[%c1, %c0_24, %c0_25] : memref<4x128x32xbf16, #tpu.memory_space<vmem>>, vector<1x128x32xbf16>
    %48 = vector.shape_cast %47 : vector<1x128x32xbf16> to vector<128x32xbf16>
    %49 = vector.shape_cast %46 : vector<128x32xbf16> to vector<1x128x32xbf16>
    tpu.vector_store %arg13[%c1, %c0_24, %c0_25], %49 {strides = array<i32>} : memref<4x128x32xbf16, #tpu.memory_space<vmem>>, vector<1x128x32xbf16>,
    %50 = vector.extract_strided_slice %29 {offsets = [0, 160], sizes = [128, 32], strides = [1, 1]} : vector<128x384xf32> to vector<128x32xf32>
    %51 = arith.truncf %50 : vector<128x32xf32> to vector<128x32xbf16>
    %c1_26 = arith.constant 1 : index
    %c0_27 = arith.constant 0 : index
    %c0_28 = arith.constant 0 : index
    %52 = vector.load %arg14[%c1_26, %c0_27, %c0_28] : memref<4x128x32xbf16, #tpu.memory_space<vmem>>, vector<1x128x32xbf16>
    %53 = vector.shape_cast %52 : vector<1x128x32xbf16> to vector<128x32xbf16>
    %54 = vector.shape_cast %51 : vector<128x32xbf16> to vector<1x128x32xbf16>
    tpu.vector_store %arg14[%c1_26, %c0_27, %c0_28], %54 {strides = array<i32>} : memref<4x128x32xbf16, #tpu.memory_space<vmem>>, vector<1x128x32xbf16>,
    %55 = vector.extract_strided_slice %29 {offsets = [0, 288], sizes = [128, 32], strides = [1, 1]} : vector<128x384xf32> to vector<128x32xf32>
    %56 = arith.truncf %55 : vector<128x32xf32> to vector<128x32xbf16>
    %c1_29 = arith.constant 1 : index
    %c0_30 = arith.constant 0 : index
    %c0_31 = arith.constant 0 : index
    %57 = vector.load %arg15[%c1_29, %c0_30, %c0_31] : memref<4x128x32xbf16, #tpu.memory_space<vmem>>, vector<1x128x32xbf16>
    %58 = vector.shape_cast %57 : vector<1x128x32xbf16> to vector<128x32xbf16>
    %59 = vector.shape_cast %56 : vector<128x32xbf16> to vector<1x128x32xbf16>
    tpu.vector_store %arg15[%c1_29, %c0_30, %c0_31], %59 {strides = array<i32>} : memref<4x128x32xbf16, #tpu.memory_space<vmem>>, vector<1x128x32xbf16>,
    %60 = vector.extract_strided_slice %29 {offsets = [0, 64], sizes = [128, 32], strides = [1, 1]} : vector<128x384xf32> to vector<128x32xf32>
    %61 = arith.truncf %60 : vector<128x32xf32> to vector<128x32xbf16>
    %c2 = arith.constant 2 : index
    %c0_32 = arith.constant 0 : index
    %c0_33 = arith.constant 0 : index
    %62 = vector.load %arg13[%c2, %c0_32, %c0_33] : memref<4x128x32xbf16, #tpu.memory_space<vmem>>, vector<1x128x32xbf16>
    %63 = vector.shape_cast %62 : vector<1x128x32xbf16> to vector<128x32xbf16>
    %64 = vector.shape_cast %61 : vector<128x32xbf16> to vector<1x128x32xbf16>
    tpu.vector_store %arg13[%c2, %c0_32, %c0_33], %64 {strides = array<i32>} : memref<4x128x32xbf16, #tpu.memory_space<vmem>>, vector<1x128x32xbf16>,
    %65 = vector.extract_strided_slice %29 {offsets = [0, 192], sizes = [128, 32], strides = [1, 1]} : vector<128x384xf32> to vector<128x32xf32>
    %66 = arith.truncf %65 : vector<128x32xf32> to vector<128x32xbf16>
    %c2_34 = arith.constant 2 : index
    %c0_35 = arith.constant 0 : index
    %c0_36 = arith.constant 0 : index
    %67 = vector.load %arg14[%c2_34, %c0_35, %c0_36] : memref<4x128x32xbf16, #tpu.memory_space<vmem>>, vector<1x128x32xbf16>
    %68 = vector.shape_cast %67 : vector<1x128x32xbf16> to vector<128x32xbf16>
    %69 = vector.shape_cast %66 : vector<128x32xbf16> to vector<1x128x32xbf16>
    tpu.vector_store %arg14[%c2_34, %c0_35, %c0_36], %69 {strides = array<i32>} : memref<4x128x32xbf16, #tpu.memory_space<vmem>>, vector<1x128x32xbf16>,
    %70 = vector.extract_strided_slice %29 {offsets = [0, 320], sizes = [128, 32], strides = [1, 1]} : vector<128x384xf32> to vector<128x32xf32>
    %71 = arith.truncf %70 : vector<128x32xf32> to vector<128x32xbf16>
    %c2_37 = arith.constant 2 : index
    %c0_38 = arith.constant 0 : index
    %c0_39 = arith.constant 0 : index
    %72 = vector.load %arg15[%c2_37, %c0_38, %c0_39] : memref<4x128x32xbf16, #tpu.memory_space<vmem>>, vector<1x128x32xbf16>
    %73 = vector.shape_cast %72 : vector<1x128x32xbf16> to vector<128x32xbf16>
    %74 = vector.shape_cast %71 : vector<128x32xbf16> to vector<1x128x32xbf16>
    tpu.vector_store %arg15[%c2_37, %c0_38, %c0_39], %74 {strides = array<i32>} : memref<4x128x32xbf16, #tpu.memory_space<vmem>>, vector<1x128x32xbf16>,
    %75 = vector.extract_strided_slice %29 {offsets = [0, 96], sizes = [128, 32], strides = [1, 1]} : vector<128x384xf32> to vector<128x32xf32>
    %76 = arith.truncf %75 : vector<128x32xf32> to vector<128x32xbf16>
    %c3 = arith.constant 3 : index
    %c0_40 = arith.constant 0 : index
    %c0_41 = arith.constant 0 : index
    %77 = vector.load %arg13[%c3, %c0_40, %c0_41] : memref<4x128x32xbf16, #tpu.memory_space<vmem>>, vector<1x128x32xbf16>
    %78 = vector.shape_cast %77 : vector<1x128x32xbf16> to vector<128x32xbf16>
    %79 = vector.shape_cast %76 : vector<128x32xbf16> to vector<1x128x32xbf16>
    tpu.vector_store %arg13[%c3, %c0_40, %c0_41], %79 {strides = array<i32>} : memref<4x128x32xbf16, #tpu.memory_space<vmem>>, vector<1x128x32xbf16>,
    %80 = vector.extract_strided_slice %29 {offsets = [0, 224], sizes = [128, 32], strides = [1, 1]} : vector<128x384xf32> to vector<128x32xf32>
    %81 = arith.truncf %80 : vector<128x32xf32> to vector<128x32xbf16>
    %c3_42 = arith.constant 3 : index
    %c0_43 = arith.constant 0 : index
    %c0_44 = arith.constant 0 : index
    %82 = vector.load %arg14[%c3_42, %c0_43, %c0_44] : memref<4x128x32xbf16, #tpu.memory_space<vmem>>, vector<1x128x32xbf16>
    %83 = vector.shape_cast %82 : vector<1x128x32xbf16> to vector<128x32xbf16>
    %84 = vector.shape_cast %81 : vector<128x32xbf16> to vector<1x128x32xbf16>
    tpu.vector_store %arg14[%c3_42, %c0_43, %c0_44], %84 {strides = array<i32>} : memref<4x128x32xbf16, #tpu.memory_space<vmem>>, vector<1x128x32xbf16>,
    %85 = vector.extract_strided_slice %29 {offsets = [0, 352], sizes = [128, 32], strides = [1, 1]} : vector<128x384xf32> to vector<128x32xf32>
    %86 = arith.truncf %85 : vector<128x32xf32> to vector<128x32xbf16>
    %c3_45 = arith.constant 3 : index
    %c0_46 = arith.constant 0 : index
    %c0_47 = arith.constant 0 : index
    %87 = vector.load %arg15[%c3_45, %c0_46, %c0_47] : memref<4x128x32xbf16, #tpu.memory_space<vmem>>, vector<1x128x32xbf16>
    %88 = vector.shape_cast %87 : vector<1x128x32xbf16> to vector<128x32xbf16>
    %89 = vector.shape_cast %86 : vector<128x32xbf16> to vector<1x128x32xbf16>
    tpu.vector_store %arg15[%c3_45, %c0_46, %c0_47], %89 {strides = array<i32>} : memref<4x128x32xbf16, #tpu.memory_space<vmem>>, vector<1x128x32xbf16>,
    %c0_48 = arith.constant 0 : index
    %c0_49 = arith.constant 0 : index
    %c0_50 = arith.constant 0 : index
    %90 = vector.load %arg13[%c0_48, %c0_49, %c0_50] : memref<4x128x32xbf16, #tpu.memory_space<vmem>>, vector<4x128x32xbf16>
    %c0_51 = arith.constant 0 : index
    %c0_52 = arith.constant 0 : index
    %c0_53 = arith.constant 0 : index
    %91 = vector.load %arg14[%c0_51, %c0_52, %c0_53] : memref<4x128x32xbf16, #tpu.memory_space<vmem>>, vector<4x128x32xbf16>
    %c0_54 = arith.constant 0 : index
    %c0_55 = arith.constant 0 : index
    %c0_56 = arith.constant 0 : index
    %92 = vector.load %arg15[%c0_54, %c0_55, %c0_56] : memref<4x128x32xbf16, #tpu.memory_space<vmem>>, vector<4x128x32xbf16>
    "tpu.trace_start"() <{level = 10 : i32, message = "hqd,hkd->hqk"}> : () -> ()
    %cst_57 = arith.constant dense<0.000000e+00> : vector<4x128x128xf32>
    %93 = tpu.matmul %90, %91, %cst_57 {dimension_numbers = #tpu.dot_dimension_numbers<[2], [2], [1], [1], [0, 0, 0, 1, 1, 1], [0], [0]>} : vector<4x128x32xbf16>, vector<4x128x32xbf16>, vector<4x128x128xf32> -> vector<4x128x128xf32>
    "tpu.trace_stop"() : () -> ()
    %94 = tpu.iota {dimensions = array<i32: 1>} : vector<1x128xi32>
    %c16_i32 = arith.constant 16 : i32
    %95 = vector.broadcast %c16_i32 : i32 to vector<1x128xi32>
    %96 = arith.cmpi slt, %94, %95 : vector<1x128xi32>
    %97 = vector.shape_cast %96 : vector<1x128xi1> to vector<1x1x128xi1>
    %cst_58 = arith.constant -1.000000e+30 : f32
    %98 = vector.shape_cast %97 : vector<1x1x128xi1> to vector<1x1x128xi1>
    %99 = vector.broadcast %98 : vector<1x1x128xi1> to vector<4x128x128xi1>
    %100 = vector.broadcast %cst_58 : f32 to vector<4x128x128xf32>
    %101 = arith.select %99, %93, %100 : vector<4x128x128xi1>, vector<4x128x128xf32>
    %cst_59 = arith.constant dense<0xFF800000> : vector<4x128xf32>
    %102 = vector.multi_reduction <maximumf>, %101, %cst_59 [2] : vector<4x128x128xf32> to vector<4x128xf32>
    %103 = vector.shape_cast %102 : vector<4x128xf32> to vector<4x128x1xf32>
    %104 = vector.broadcast %103 : vector<4x128x1xf32> to vector<4x128x128xf32>
    %105 = arith.subf %101, %104 : vector<4x128x128xf32>
    %106 = math.exp %105 : vector<4x128x128xf32>
    %cst_60 = arith.constant dense<0.000000e+00> : vector<4x128xf32>
    %107 = vector.multi_reduction <add>, %106, %cst_60 [2] : vector<4x128x128xf32> to vector<4x128xf32>
    %108 = vector.shape_cast %107 : vector<4x128xf32> to vector<4x128x1xf32>
    %109 = tpu.reciprocal %108 {approx = true} : vector<4x128x1xf32> -> vector<4x128x1xf32>
    %110 = vector.broadcast %109 : vector<4x128x1xf32> to vector<4x128x128xf32>
    %111 = arith.mulf %106, %110 : vector<4x128x128xf32>
    %112 = arith.truncf %111 : vector<4x128x128xf32> to vector<4x128x128xbf16>
    "tpu.trace_start"() <{level = 10 : i32, message = "hqk,hkd->hqd"}> : () -> ()
    %cst_61 = arith.constant dense<0.000000e+00> : vector<4x128x32xf32>
    %113 = tpu.matmul %112, %92, %cst_61 {dimension_numbers = #tpu.dot_dimension_numbers<[2], [1], [1], [2], [0, 0, 0, 1, 1, 2], [0], [0]>} : vector<4x128x128xbf16>, vector<4x128x32xbf16>, vector<4x128x32xf32> -> vector<4x128x32xf32>
    "tpu.trace_stop"() : () -> ()
    %114 = arith.truncf %113 : vector<4x128x32xf32> to vector<4x128x32xbf16>
    %c0_62 = arith.constant 0 : index
    %c0_63 = arith.constant 0 : index
    %c0_64 = arith.constant 0 : index
    %115 = vector.load %arg6[%c0_62, %c0_63, %c0_64] : memref<4x32x128xbf16, #tpu.memory_space<vmem>>, vector<4x32x128xbf16>
    "tpu.trace_start"() <{level = 10 : i32, message = "hqd,hde->hqe"}> : () -> ()
    %cst_65 = arith.constant dense<0.000000e+00> : vector<4x128x128xf32>
    %116 = tpu.matmul %114, %115, %cst_65 {dimension_numbers = #tpu.dot_dimension_numbers<[2], [1], [1], [2], [0, 0, 0, 1, 1, 2], [0], [0]>} : vector<4x128x32xbf16>, vector<4x32x128xbf16>, vector<4x128x128xf32> -> vector<4x128x128xf32>
    "tpu.trace_stop"() : () -> ()
    %cst_66 = arith.constant dense<0.000000e+00> : vector<128x128xf32>
    %117 = vector.multi_reduction <add>, %116, %cst_66 [0] : vector<4x128x128xf32> to vector<128x128xf32>
    %c0_67 = arith.constant 0 : index
    %c0_68 = arith.constant 0 : index
    %118 = vector.load %arg7[%c0_67, %c0_68] : memref<1x128xf32, #tpu.memory_space<vmem>>, vector<1x128xf32>
    %119 = vector.broadcast %118 : vector<1x128xf32> to vector<128x128xf32>
    %120 = arith.addf %117, %119 : vector<128x128xf32>
    %121 = arith.addf %120, %1 : vector<128x128xf32>
    %122 = arith.truncf %121 : vector<128x128xf32> to vector<128x128xbf16>
    %c0_69 = arith.constant 0 : index
    %c0_70 = arith.constant 0 : index
    %123 = vector.load %arg8[%c0_69, %c0_70] : memref<128x256xbf16, #tpu.memory_space<vmem>>, vector<128x256xbf16>
    %cst_71 = arith.constant dense<0.000000e+00> : vector<128x256xf32>
    %124 = tpu.matmul %122, %123, %cst_71 {dimension_numbers = #tpu.dot_dimension_numbers<[1], [0], [0], [1], [0, 0, 1, 1], [], []>} : vector<128x128xbf16>, vector<128x256xbf16>, vector<128x256xf32> -> vector<128x256xf32>
    %c0_72 = arith.constant 0 : index
    %c0_73 = arith.constant 0 : index
    %125 = vector.load %arg9[%c0_72, %c0_73] : memref<1x256xf32, #tpu.memory_space<vmem>>, vector<1x256xf32>
    %126 = vector.broadcast %125 : vector<1x256xf32> to vector<128x256xf32>
    %127 = arith.addf %124, %126 : vector<128x256xf32>
    %cst_74 = arith.constant 5.000000e-01 : f32
    %128 = vector.broadcast %cst_74 : f32 to vector<128x256xf32>
    %129 = arith.mulf %128, %127 : vector<128x256xf32>
    %cst_75 = arith.constant 0.707106769 : f32
    %130 = vector.broadcast %cst_75 : f32 to vector<128x256xf32>
    %131 = arith.mulf %127, %130 : vector<128x256xf32>
    %132 = math.erf %131 : vector<128x256xf32>
    %cst_76 = arith.constant 1.000000e+00 : f32
    %133 = vector.broadcast %cst_76 : f32 to vector<128x256xf32>
    %134 = arith.addf %133, %132 : vector<128x256xf32>
    %135 = arith.mulf %129, %134 : vector<128x256xf32>
    %136 = arith.truncf %135 : vector<128x256xf32> to vector<128x256xbf16>
    %c0_77 = arith.constant 0 : index
    %c0_78 = arith.constant 0 : index
    %137 = vector.load %arg10[%c0_77, %c0_78] : memref<256x128xbf16, #tpu.memory_space<vmem>>, vector<256x128xbf16>
    %cst_79 = arith.constant dense<0.000000e+00> : vector<128x128xf32>
    %138 = tpu.matmul %136, %137, %cst_79 {dimension_numbers = #tpu.dot_dimension_numbers<[1], [0], [0], [1], [0, 0, 1, 1], [], []>} : vector<128x256xbf16>, vector<256x128xbf16>, vector<128x128xf32> -> vector<128x128xf32>
    %c0_80 = arith.constant 0 : index
    %c0_81 = arith.constant 0 : index
    %139 = vector.load %arg11[%c0_80, %c0_81] : memref<1x128xf32, #tpu.memory_space<vmem>>, vector<1x128xf32>
    %140 = vector.broadcast %139 : vector<1x128xf32> to vector<128x128xf32>
    %141 = arith.addf %138, %140 : vector<128x128xf32>
    %142 = arith.addf %141, %121 : vector<128x128xf32>
    %c0_82 = arith.constant 0 : index
    %c0_83 = arith.constant 0 : index
    %c0_84 = arith.constant 0 : index
    %143 = vector.load %arg12[%c0_82, %c0_83, %c0_84] : memref<1x128x128xf32, #tpu.memory_space<vmem>>, vector<1x128x128xf32>
    %144 = vector.shape_cast %143 : vector<1x128x128xf32> to vector<128x128xf32>
    %145 = vector.shape_cast %142 : vector<128x128xf32> to vector<1x128x128xf32>
    tpu.vector_store %arg12[%c0_82, %c0_83, %c0_84], %145 {strides = array<i32>} : memref<1x128x128xf32, #tpu.memory_space<vmem>>, vector<1x128x128xf32>,
    return
  }
  func.func @transform_0(%arg0: i32) -> (i32, i32, i32) {
    %c0_i32 = arith.constant 0 : i32
    %c0_i32_0 = arith.constant 0 : i32
    %c0_i32_1 = arith.constant 0 : i32
    return %arg0, %c0_i32, %c0_i32_0 : i32, i32, i32
  }
  func.func @transform_1(%arg0: i32) -> (i32, i32) {
    %c0_i32 = arith.constant 0 : i32
    %c0_i32_0 = arith.constant 0 : i32
    %c0_i32_1 = arith.constant 0 : i32
    return %c0_i32, %c0_i32_0 : i32, i32
  }
  func.func @transform_2(%arg0: i32) -> (i32, i32) {
    %c0_i32 = arith.constant 0 : i32
    %c0_i32_0 = arith.constant 0 : i32
    %c0_i32_1 = arith.constant 0 : i32
    return %c0_i32, %c0_i32_0 : i32, i32
  }
  func.func @transform_3(%arg0: i32) -> (i32, i32) {
    %c0_i32 = arith.constant 0 : i32
    %c0_i32_0 = arith.constant 0 : i32
    %c0_i32_1 = arith.constant 0 : i32
    return %c0_i32, %c0_i32_0 : i32, i32
  }
  func.func @transform_4(%arg0: i32) -> (i32, i32) {
    %c0_i32 = arith.constant 0 : i32
    %c0_i32_0 = arith.constant 0 : i32
    %c0_i32_1 = arith.constant 0 : i32
    return %c0_i32, %c0_i32_0 : i32, i32
  }
  func.func @transform_5(%arg0: i32) -> (i32, i32, i32) {
    %c0_i32 = arith.constant 0 : i32
    %c0_i32_0 = arith.constant 0 : i32
    %c0_i32_1 = arith.constant 0 : i32
    %c0_i32_2 = arith.constant 0 : i32
    return %c0_i32, %c0_i32_0, %c0_i32_1 : i32, i32, i32
  }
  func.func @transform_6(%arg0: i32) -> (i32, i32) {
    %c0_i32 = arith.constant 0 : i32
    %c0_i32_0 = arith.constant 0 : i32
    %c0_i32_1 = arith.constant 0 : i32
    return %c0_i32, %c0_i32_0 : i32, i32
  }
  func.func @transform_7(%arg0: i32) -> (i32, i32) {
    %c0_i32 = arith.constant 0 : i32
    %c0_i32_0 = arith.constant 0 : i32
    %c0_i32_1 = arith.constant 0 : i32
    return %c0_i32, %c0_i32_0 : i32, i32
  }
  func.func @transform_8(%arg0: i32) -> (i32, i32) {
    %c0_i32 = arith.constant 0 : i32
    %c0_i32_0 = arith.constant 0 : i32
    %c0_i32_1 = arith.constant 0 : i32
    return %c0_i32, %c0_i32_0 : i32, i32
  }
  func.func @transform_9(%arg0: i32) -> (i32, i32) {
    %c0_i32 = arith.constant 0 : i32
    %c0_i32_0 = arith.constant 0 : i32
    %c0_i32_1 = arith.constant 0 : i32
    return %c0_i32, %c0_i32_0 : i32, i32
  }
  func.func @transform_10(%arg0: i32) -> (i32, i32) {
    %c0_i32 = arith.constant 0 : i32
    %c0_i32_0 = arith.constant 0 : i32
    %c0_i32_1 = arith.constant 0 : i32
    return %c0_i32, %c0_i32_0 : i32, i32
  }
  func.func @transform_11(%arg0: i32) -> (i32, i32, i32) {
    %c0_i32 = arith.constant 0 : i32
    %c0_i32_0 = arith.constant 0 : i32
    %c0_i32_1 = arith.constant 0 : i32
    return %arg0, %c0_i32, %c0_i32_0 : i32, i32, i32
  }
}

</mosaic_0001>

<bundles_post_ra>
// kernel: tpu_custom_call.1
= control target key start
LH: loop header
LB: loop body
LE: loop exit
PB: predicated region body
PF: predicated region fallthrough
CT: control target
= control target key end

     0   :  { %s10115_s0 = inlined_call_operand.hbm [shape: f32[2,128,128], index: 0, kind: input, shape index: {}]   ;;  %s10116_s1 = inlined_call_operand.hbm [shape: f32[1,128], index: 1, kind: input, shape index: {}]   ;;  %s10117_s2 = inlined_call_operand.hbm [shape: f32[1,128], index: 2, kind: input, shape index: {}]   ;;  %s10118_s3 = inlined_call_operand.hbm [shape: bf16[128,384], index: 3, kind: input, shape index: {}]   ;;  %s10119_s4 = inlined_call_operand.vmem [shape: f32[1,384], index: 4, kind: input, shape index: {}]   ;;  %s10120_s5 = inlined_call_operand.hbm [shape: bf16[4,32,128], index: 5, kind: input, shape index: {}]   ;;  %s10121_s6 = inlined_call_operand.vmem [shape: f32[1,128], index: 6, kind: input, shape index: {}]   ;;  %s10122_s7 = inlined_call_operand.hbm [shape: bf16[128,256], index: 7, kind: input, shape index: {}]   ;;  %s10123_s8 = inlined_call_operand.vmem [shape: f32[1,256], index: 8, kind: input, shape index: {}]   ;;  %s10124_s9 = inlined_call_operand.hbm [shape: bf16[256,128], index: 9, kind: input, shape index: {}]   ;;  %s10125_s10 = inlined_call_operand.vmem [shape: f32[1,128], index: 10, kind: input, shape index: {}]   ;;  %s10126_s11 = inlined_call_operand.hbm [shape: f32[2,128,128], index: 11, kind: output, shape index: {}]  }
   0x1   :  { %10170 = sst [smem:[#allocation62_spill]] %s10116_s1 }
   0x2   :  { %10171 = sst [smem:[#allocation63_spill]] %s10117_s2 }
   0x3   :  { %10172 = sst [smem:[#allocation64_spill]] %s10118_s3 }
   0x4   :  { %10173 = sst [smem:[#allocation65_spill]] %s10120_s5 }
   0x5   :  { %10174 = sst [smem:[#allocation66_spill]] %s10122_s7 }
   0x6   :  { %16 = vsyncpa [#allocation6], 0 }
   0x7   :  { %18 = vsyncpa [#allocation6 + $0x1], 0 }
   0x8   :  { %19 = vsyncpa [#allocation9], 0 }
   0x9   :  { %20 = vsyncpa [#allocation12], 0 }
   0xa   :  { %21 = vsyncpa [#allocation15], 0 }
   0xb   :  { %22 = vsyncpa [#allocation7], 0 }
   0xc   :  { %24 = vsyncpa [#allocation7 + $0x1], 0  ;;  %s7785_s17 = smov 0   ;;  %s7787_s18 = smov 0  }
   0xd   :  { %s7789_s19 = smov 0   ;;  %s7791_s20 = smov 0  }
   0xe LB: > { %s7705_s21 = smov [#allocation8]   ;;  %s7806_s23 = sadd.s32 4294967295, %s7703_s20   ;;  %s7703_s20 = sphi %s7791_s20, %s10286_s20   ;;  %s7699_s19 = sphi %s7789_s19, %s10285_s19   ;;  %s7695_s18 = sphi %s7787_s18, %s10284_s18   ;;  %s7691_s17 = sphi %s7785_s17, %s10283_s17  }
   0xf   : > { %s310_s22 = sshll.u32 %s7705_s21, 4  ;;  %p5780_p0 = scmp.ge.s32.totalorder %s7703_s20, 1  ;;  %s311_s22 = int_to_ptr.vmem [resolvable:$true] %s310_s22 }
  0x10   : > { %p10127_p1 = scmp.eq.s32.totalorder %s7806_s23, 0  ;;  %p297_p2 = scmp.lt.s32.totalorder %s7703_s20, 3 }
  0x11   : > { %s7706_s25 = smov [#allocation11]   ;;  %s7707_s28 = smov [#allocation14]  }
  0x12   : > { %p7811_p3 = pnand %p5780_p0, %p297_p2  ;;  %s331_s26 = sshll.u32 %s7706_s25, 4  ;;  %s7818_s26 = int_to_ptr.vmem [resolvable:$true] %s331_s26 }
  0x13   : > { %s363_s29 = sshll.u32 %s7707_s28, 4  ;;  %s7454_s12 = scalar_lea.vmem %s311_s22, 16  ;;  %s7826_s29 = int_to_ptr.vmem [resolvable:$true] %s363_s29 }
  0x14   : > { %s10175_s24 = scalar_select %p7811_p3, 1, 0 }
  0x15   : > { %p6807_p5 = pneg %p7811_p3  ;;  %p7455_p8 = scmp.ne.s32.totalorder %s311_s22, %s7454_s12 }
  0x16   : > { %s7461_s13 = scalar_lea.vmem %s311_s22, 32  ;;  %p7462_p11 = scmp.lt.s32.totalorder %s311_s22, %s311_s22 }
  0x17   : > { %p7822_p6 = pnand %p6807_p5, %p10127_p1  ;;  %p7463_p12 = scmp.lt.s32.totalorder %s7461_s13, %s7454_s12 }
  0x19   : > { %p7830_p7 = pneg %p7822_p6  ;;  %p7464_p13 = por %p7463_p12, %p7462_p11 }
  0x1b   : > { %p7457_p9 = pnand %p7455_p8, %p7830_p7 }
  0x1d   : > { %p7458_p10 = pneg %p7457_p9 }
  0x1f   : > { %p7465_p0 = pnand %p7464_p13, %p7458_p10 }
  0x21   : > { %7468 = shalt.err (!%p7465_p0)
}
  0x22   : > { %s10178_s1 = sld [smem:[#allocation62_spill]]  ;;  %s7480_s16 = scalar_lea.vmem %s7818_s26, 3072 }
  0x23   : > { %p7481_p2 = scmp.ne.s32.totalorder %s7818_s26, %s7480_s16  ;;  %p7488_p9 = scmp.lt.s32.totalorder %s7818_s26, %s7818_s26 }
  0x24   : > { %p7489_p11 = scmp.lt.s32.totalorder %s7480_s16, %s7480_s16 }
  0x25   : > { %p7483_p5 = pnand %p7481_p2, %p7830_p7 }
  0x26   : > { %p7490_p10 = por %p7489_p11, %p7488_p9 }
  0x27   : > { %p7484_p8 = pneg %p7483_p5 }
  0x28   : > { %6810 = dma.hbm_to_vmem [thread:$0]  (!%p7822_p6), %s10178_s1, 16, %s311_s22, [#allocation9]  }
  0x29   : > { %p7491_p12 = pnand %p7490_p10, %p7484_p8 }
  0x2b   : > { %7494 = shalt.err (!%p7491_p12)
}
  0x2c   : > { %s7708_s21 = smov 192   ;;  %s7709_s25 = smov 12  }
  0x2d   : > { %s10179_s3 = sld [smem:[#allocation64_spill]]  ;;  %s7506_s12 = scalar_lea.vmem %s7826_s29, 2048 }
  0x2e   : > { %p7507_p13 = scmp.ne.s32.totalorder %s7826_s29, %s7506_s12  ;;  %p7514_p5 = scmp.lt.s32.totalorder %s7826_s29, %s7826_s29 }
  0x2f   : > { %p7515_p8 = scmp.lt.s32.totalorder %s7506_s12, %s7506_s12 }
  0x30   : > { %p7509_p0 = pnand %p7507_p13, %p7830_p7 }
  0x31   : > { %p7516_p9 = por %p7515_p8, %p7514_p5 }
  0x32   : > { %p7510_p2 = pneg %p7509_p0 }
  0x33   : > { %6816 = dma.hbm_to_vmem [thread:$0]  (!%p7822_p6), %s10179_s3, 3072, %s7818_s26, [#allocation12], %s7708_s21, %s7708_s21, %s7709_s25  }
  0x34   : > { %p7517_p11 = pnand %p7516_p9, %p7510_p2 }
  0x36   : > { %7520 = shalt.err (!%p7517_p11)
}
  0x37   : > { %s10129_s13 = smov 128   ;;  %s10130_s14 = smov 8  }
  0x38   : > { %s10180_s7 = sld [smem:[#allocation66_spill]]  ;;  %s7712_s16 = smov [#allocation10]  }
  0x39   : > { %s321_s21 = sshll.u32 %s7712_s16, 4  ;;  %s7713_s25 = smov [#allocation13]   ;;  %s322_s21 = int_to_ptr.vmem [resolvable:$true] %s321_s21 }
  0x3a   : > { %s347_s22 = sshll.u32 %s7713_s25, 4  ;;  %s7532_s28 = scalar_lea.vmem %s322_s21, 16  ;;  %s348_s22 = int_to_ptr.vmem [resolvable:$true] %s347_s22 }
  0x3b   : > { %p7533_p10 = scmp.ne.s32.totalorder %s322_s21, %s7532_s28  ;;  %s7539_s12 = scalar_lea.vmem %s322_s21, 32 }
  0x3c   : > { %p7540_p0 = scmp.lt.s32.totalorder %s322_s21, %s322_s21  ;;  %p7541_p2 = scmp.lt.s32.totalorder %s7539_s12, %s7532_s28 }
  0x3d   : > { %p7535_p12 = pnand %p7533_p10, %p7830_p7 }
  0x3e   : > { %6822 = dma.hbm_to_vmem [thread:$0]  (!%p7822_p6), %s10180_s7, 2048, %s7826_s29, [#allocation15], %s10129_s13, %s10129_s13, %s10130_s14  }
  0x3f   : > { %p7536_p13 = pneg %p7535_p12  ;;  %p7542_p5 = por %p7541_p2, %p7540_p0 }
  0x41   : > { %p7543_p8 = pnand %p7542_p5, %p7536_p13 }
  0x43   : > { %7546 = shalt.err (!%p7543_p8)
}
  0x44   : > { %s10181_s2 = sld [smem:[#allocation63_spill]]  ;;  %s7558_s15 = scalar_lea.vmem %s348_s22, 1024 }
  0x45   : > { %p7559_p9 = scmp.ne.s32.totalorder %s348_s22, %s7558_s15  ;;  %p7566_p12 = scmp.lt.s32.totalorder %s348_s22, %s348_s22 }
  0x46   : > { %p7567_p4 = scmp.lt.s32.totalorder %s7558_s15, %s7558_s15 }
  0x47   : > { %p7561_p11 = pnand %p7559_p9, %p7830_p7 }
  0x48   : > { %p7568_p1 = por %p7567_p4, %p7566_p12 }
  0x49   : > { %p7562_p10 = pneg %p7561_p11 }
  0x4a   : > { %6813 = dma.hbm_to_vmem [thread:$0]  (!%p7822_p6), %s10181_s2, 16, %s322_s21, [#allocation9]  }
  0x4b   : > { %p7569_p3 = pnand %p7568_p1, %p7562_p10 }
  0x4d   : > { %7572 = shalt.err (!%p7569_p3)
}
  0x4e   : > { %s7714_s16 = smov 64   ;;  %s7715_s25 = smov 4  }
  0x4f   : > { %s10182_s5 = sld [smem:[#allocation65_spill]]  ;;  %s7716_s21 = smov [#allocation16]  }
  0x50   : > { %s379_s26 = sshll.u32 %s7716_s21, 4  ;;  %s380_s26 = int_to_ptr.vmem [resolvable:$true] %s379_s26 }
  0x51   : > { %s7584_s29 = scalar_lea.vmem %s380_s26, 2048  ;;  %p7592_p4 = scmp.lt.s32.totalorder %s380_s26, %s380_s26 }
  0x52   : > { %p7585_p13 = scmp.ne.s32.totalorder %s380_s26, %s7584_s29  ;;  %p7593_p1 = scmp.lt.s32.totalorder %s7584_s29, %s7584_s29 }
  0x54   : > { %p7587_p0 = pnand %p7585_p13, %p7830_p7  ;;  %p7594_p3 = por %p7593_p1, %p7592_p4 }
  0x55   : > { %6819 = dma.hbm_to_vmem [thread:$0]  (!%p7822_p6), %s10182_s5, 1024, %s348_s22, [#allocation12], %s7714_s16, %s7714_s16, %s7715_s25  }
  0x56   : > { %p7588_p2 = pneg %p7587_p0 }
  0x58   : > { %p7595_p5 = pnand %p7594_p3, %p7588_p2 }
  0x5a   : > { %7598 = shalt.err (!%p7595_p5)
}
  0x5b   : > { %6825 = dma.hbm_to_vmem [thread:$0]  (!%p7822_p6), %s10124_s9, 2048, %s380_s26, [#allocation15], %s7714_s16, %s7714_s16, %s7715_s25  }
  0x5c   : > { %s5779_s30 = sadd.s32 4294967294, %s7703_s20   ;;  %s7891_s27 = sadd.s32 1, %s7703_s20  }
  0x5d   : > { %s34_s13 = ssub.s32 %s7703_s20, %s7891_s27  ;;  %s37_s22 = sadd.s32 1, %s7699_s19 }
  0x5e   : > { %p35_p7 = scmp.eq.s32.totalorder %s34_s13, 0  ;;  %p44_p8 = scmp.ne.s32.totalorder %s7699_s19, %s7695_s18 }
  0x5f   : > { %p45_p9 = scmp.eq.s32.totalorder %s7703_s20, 0  ;;  %p50_p11 = scmp.ne.s32.totalorder %s7695_s18, %s7691_s17 }
  0x60   : > { %s7902_s28 = scalar_select %p35_p7, %s7699_s19, %s37_s22  }
  0x61   : > { %p7904_p10 = por %p45_p9, %p44_p8  ;;  %p10184_p12 = scmp.eq.s32.totalorder %s7806_s23, 0 }
  0x62   : > { %p284_p13 = scmp.eq.s32.totalorder %s7806_s23, 1  ;;  %p290_p0 = scmp.eq.s32.totalorder %s5779_s30, 1 }
  0x63   : > { %p7910_p6 = por %p10184_p12, %p50_p11  ;;  %p6840_p2 = scmp.lt.s32.totalorder %s7703_s20, 2 }
  0x64   : > { %s396_s25 = sand.u32 1, %s7699_s19   ;;  %p7917_p4 = por %p284_p13, %p44_p8 }
  0x65   : > { %s10185_s16 = scalar_select %p7910_p6, 1, 0 }
  0x66   : > { %s10186_s21 = scalar_select %p7917_p4, 1, 0 }
  0x67   : > { %p7921_p1 = por %p290_p0, %p50_p11  ;;  %s5788_s29 = sshll.u32 %s396_s25, 7 }
  0x68   : > { %s6081_s15 = sshll.u32 %s7703_s20, 11  ;;  %s400_s30 = scalar_lea.vmem [#allocation5], %s5788_s29 }
  0x69   : > { %s10187_s26 = scalar_select %p7921_p1, 1, 0 }
  0x6a   : > { %s7929_s14 = scalar_lea.hbm %s10115_s0, %s6081_s15  ;;  %s407_s1 = sshll.u32 %s400_s30, 4  ;;  %s7931_s1 = int_to_ptr.vmem [resolvable:$true] %s407_s1 }
  0x6b   : > { %p7935_p3 = pnand %p6840_p2, %p7904_p10  ;;  %s7939_s3 = scalar_lea.sflag [#allocation6], %s396_s25 }
  0x6c   : > { %s7599_s5 = scalar_lea.hbm %s7929_s14, 2048  ;;  %s7604_s29 = scalar_lea.hbm %s10115_s0, 4096 }
  0x6d   : > { %p7600_p5 = scmp.ne.s32.totalorder %s7929_s14, %s7599_s5  ;;  %p7601_p7 = pneg %p7935_p3 }
  0x6e   : > { %p7605_p11 = scmp.lt.s32.totalorder %s7929_s14, %s10115_s0  ;;  %p7606_p10 = scmp.lt.s32.totalorder %s7604_s29, %s7599_s5 }
  0x6f   : > { %p7602_p8 = pnand %p7601_p7, %p7600_p5 }
  0x70   : > { %p7607_p12 = por %p7606_p10, %p7605_p11 }
  0x71   : > { %p7603_p9 = pneg %p7602_p8 }
  0x73   : > { %p7608_p13 = pnand %p7607_p12, %p7603_p9 }
  0x75   : > { %7611 = shalt.err (!%p7608_p13)
}
  0x76   : > { %s7612_s12 = scalar_lea.vmem %s7931_s1, 2048  ;;  %s7717_s25 = smov [#allocation5]  }
  0x77   : > { %p7613_p0 = scmp.ne.s32.totalorder %s7931_s1, %s7612_s12  ;;  %s7617_s7 = sshll.u32 %s7717_s25, 4  ;;  %s7618_s7 = int_to_ptr.vmem [resolvable:$false] %s7617_s7 }
  0x78   : > { %s7619_s15 = scalar_lea.vmem %s7618_s7, 4096  ;;  %p7620_p8 = scmp.lt.s32.totalorder %s7931_s1, %s7618_s7 }
  0x79   : > { %p7615_p2 = pnand %p7613_p0, %p7601_p7  ;;  %p7621_p1 = scmp.lt.s32.totalorder %s7619_s15, %s7612_s12 }
  0x7b   : > { %p7616_p5 = pneg %p7615_p2  ;;  %p7622_p4 = por %p7621_p1, %p7620_p8 }
  0x7d   : > { %p7623_p6 = pnand %p7622_p4, %p7616_p5 }
  0x7f   : > { %7626 = shalt.err (!%p7623_p6)
}
  0x80   : > { %s10189_s5 = smov 8   ;;  %s10190_s13 = smov 128  }
  0x81   : > { %6829 = dma.hbm_to_vmem [thread:$0]  (!%p7935_p3), %s7929_s14, 2048, %s7931_s1, %s7939_s3, %s10190_s13, %s10190_s13, %s10189_s5  }
  0x82   : > { %p10191_p7 = scmp.ne.s32.totalorder %s10175_s24, 0 }
  0x84   : > { %419 = sbr.rel (%p10191_p7) target bundleno = 2811 (0xafb), region = 64 }
  0x89   : > { %s7966_s29 = sand.u32 1, %s7695_s18   ;;  %p10192_p6 = scmp.ne.s32.totalorder %s10185_s16, 0 }
  0x8a   : > { %s5792_s7 = sshll.u32 %s7966_s29, 7  ;;  %s422_s22 = scalar_lea.sflag [#allocation6], %s7966_s29 }
  0x8b   : > { %s7972_s2 = scalar_lea.vmem [#allocation5], %s5792_s7 }
  0x8c   : > { %7670 = dma.done.wait (%p10192_p6), %s422_s22, 2048  }
  0x8d   : > { %7672 = vsyncadd (%p10192_p6), %s422_s22, 4294965248  ;;  %p10193_p4 = scmp.eq.s32.totalorder %s7806_s23, 0 }
  0x8f   : > { %7674 = dma.done.wait (%p10193_p4), [#allocation9], 32   ;;  %p10194_p1 = pmov %p10193_p4 }
  0x91   : > { %7676 = vsyncadd (%p10194_p1), [#allocation9], 4294967264  ;;  %p10195_p3 = pmov %p10194_p1 }
  0x92   : > { %p10196_p9 = pmov %p10194_p1 }
  0x93   : > { %7678 = dma.done.wait (%p10195_p3), [#allocation12], 4096  }
  0x94   : > { %7680 = vsyncadd (%p10196_p9), [#allocation12], 4294963200  ;;  %p10197_p11 = pmov %p10194_p1 }
  0x95   : > { %p10198_p10 = pmov %p10194_p1 }
  0x96   : > { %7682 = dma.done.wait (%p10197_p11), [#allocation15], 4096  }
  0x97   : > { %7684 = vsyncadd (%p10198_p10), [#allocation15], 4294963200  ;;  %v489_v0 = vld [vmem:[%s7972_s2] sm:$0xff]  ;;  %v491_v1 = vld [vmem:[%s7972_s2 + $0x10] sm:$0xff]  ;;  %vm1187_vm0 = vcmask 257024   ;;  %s7719_s24 = smov 96  }
  0x98   : > { %505 = vadd.xlane.f32.xlu0 %v489_v0  ;;  %509 = vadd.xlane.f32.xlu1 %v491_v1  ;;  %v490_v2 = vld [vmem:[%s7972_s2 + $0x8] sm:$0xff]  ;;  %v492_v3 = vld [vmem:[%s7972_s2 + $0x18] sm:$0xff]  ;;  %v493_v4 = vld [vmem:[%s7972_s2 + $0x20] sm:$0xff]  ;;  %s7720_s14 = smov 64   ;;  %s7721_s16 = smov 32   ;;  %vm2221_vm1 = vcmask 261120  }
  0x99   : > { %v494_v5 = vld [vmem:[%s7972_s2 + $0x28] sm:$0xff]  ;;  %v495_v6 = vld [vmem:[%s7972_s2 + $0x30] sm:$0xff]  ;;  %v496_v7 = vld [vmem:[%s7972_s2 + $0x38] sm:$0xff]  ;;  %s10017_s22 = scalar_lea.vmem [#allocation17], %s5792_s7  ;;  %s6130_s7 = sshll.u32 %s7806_s23, 11 }
  0x9a   : > { %v7999_v8 = vld [vmem:[%s7972_s2 + $0x40] sm:$0xff]  ;;  %v8002_v9 = vld [vmem:[%s7972_s2 + $0x48] sm:$0xff]  ;;  %v8005_v10 = vld [vmem:[%s7972_s2 + $0x50] sm:$0xff]  ;;  %p10280_p13 = scmp.ne.s32.totalorder %s10186_s21, 0  ;;  %s7722_s23 = smov [#allocation17]  }
  0x9b   : > { %v8008_v11 = vld [vmem:[%s7972_s2 + $0x58] sm:$0xff]  ;;  %v8013_v12 = vld [vmem:[%s7972_s2 + $0x60] sm:$0xff]  ;;  %v8016_v13 = vld [vmem:[%s7972_s2 + $0x68] sm:$0xff]  ;;  %s7631_s30 = sshll.u32 %s7722_s23, 4  ;;  %s7632_s30 = int_to_ptr.vmem [resolvable:$false] %s7631_s30 }
  0x9c   : > { %507 = vadd.xlane.f32.xlu0 %v490_v2  ;;  %511 = vadd.xlane.f32.xlu1 %v492_v3  ;;  %v8021_v14 = vld [vmem:[%s7972_s2 + $0x70] sm:$0xff]  ;;  %v8024_v15 = vld [vmem:[%s7972_s2 + $0x78] sm:$0xff]  ;;  %s7633_s12 = scalar_lea.vmem %s7632_s30, 4096 }
  0x9d   : > { %v6898_v16 = vld [vmem:[#allocation11 + $0xac] ss:$12 sps:$4 sm:$0xff]   ;;  %v6900_v17 = vld [vmem:[#allocation11 + $0xa8] ss:$12 sps:$4 sm:$0xff]   ;;  %v6903_v54 = vld [vmem:[#allocation11 + $0xb0] ss:$12 sps:$4 sm:$0xff]  }
  0x9e   : > { %913 = vmatprep.subr.bf16.mxu0 %v6898_v16  ;;  %v6901_v53 = vld [vmem:[#allocation11 + $0x94] ss:$12 sps:$4 sm:$0xff]   ;;  %v6904_v55 = vld [vmem:[#allocation11 + $0x90] ss:$12 sps:$4 sm:$0xff]   ;;  %6379 = vmatprep.subr.bf16.mxu1 %v6903_v54 }
  0x9f   : > { %914 = vmatpush1.bf16.msra.mxu0 %v6900_v17  ;;  %6380 = vmatpush3.bf16.msra.mxu1 %v6903_v54  ;;  %v6909_v17 = vld [vmem:[#allocation11 + $0x64] ss:$12 sps:$4 sm:$0xff]  }
  0xa0   : > { %513 = vadd.xlane.f32.xlu0 %v493_v4  ;;  %515 = vadd.xlane.f32.xlu1 %v494_v5 }
  0xa1   : > { %915 = vmatprep.subr.bf16.mxu0 %v6901_v53 }
  0xa3   : > { %916 = vmatpush1.bf16.msra.mxu0 %v6904_v55 }
  0xa4   : > { %517 = vadd.xlane.f32.xlu0 %v495_v6  ;;  %519 = vadd.xlane.f32.xlu1 %v496_v7 }
  0xa8   : > { %521 = vadd.xlane.f32.xlu0 %v7999_v8  ;;  %523 = vadd.xlane.f32.xlu1 %v8002_v9 }
  0xac   : > { %525 = vadd.xlane.f32.xlu0 %v8005_v10  ;;  %527 = vadd.xlane.f32.xlu1 %v8008_v11 }
  0xb0   : > { %529 = vadd.xlane.f32.xlu0 %v8013_v12  ;;  %531 = vadd.xlane.f32.xlu1 %v8016_v13 }
  0xb4   : > { %533 = vadd.xlane.f32.xlu0 %v8021_v14  ;;  %535 = vadd.xlane.f32.xlu1 %v8024_v15 }
 0x121   : > { %v506_v18 = vpop.xlane.xlu0 %505  ;;  %v510_v19 = vpop.xlane.xlu1 %509 }
 0x122   : > { %v538_v20 = vmul.f32 0.0078125, %v506_v18  ;;  %v540_v21 = vmul.f32 0.0078125, %v510_v19  ;;  %v6911_v18 = vld [vmem:[#allocation11 + $0x80] ss:$12 sps:$4 sm:$0xff]  }
 0x124   : > { %v8030_v22 = vsub.f32 %v489_v0, %v538_v20  ;;  %v8032_v23 = vsub.f32 %v491_v1, %v540_v21  ;;  %v6905_v0 = vld [vmem:[#allocation11 + $0x7c] ss:$12 sps:$4 sm:$0xff]   ;;  %v6907_v1 = vld [vmem:[#allocation11 + $0x98] ss:$12 sps:$4 sm:$0xff]   ;;  %v6912_v20 = vld [vmem:[#allocation11 + $0x60] ss:$12 sps:$4 sm:$0xff]  }
 0x125   : > { %v508_v24 = vpop.xlane.xlu0 %507  ;;  %v512_v25 = vpop.xlane.xlu1 %511  ;;  %917 = vmatprep.subr.bf16.mxu0 %v6905_v0  ;;  %6381 = vmatprep.subr.bf16.mxu1 %v6907_v1 }
 0x126   : > { %v539_v26 = vmul.f32 0.0078125, %v508_v24  ;;  %v570_v27 = vmul.f32 %v8030_v22, %v8030_v22  ;;  %v541_v28 = vmul.f32 0.0078125, %v512_v25  ;;  %v572_v29 = vmul.f32 %v8032_v23, %v8032_v23  ;;  %6382 = vmatpush3.bf16.msra.mxu1 %v6907_v1 }
 0x127   : > { %6383 = vmatprep.subr.bf16.mxu1 %v6911_v18 }
 0x128   : > { %586 = vadd.xlane.f32.xlu0 %v570_v27  ;;  %v8038_v30 = vsub.f32 %v490_v2, %v539_v26  ;;  %v8040_v31 = vsub.f32 %v492_v3, %v541_v28  ;;  %v6913_v28 = vld [vmem:[#allocation11 + $0x4c] ss:$12 sps:$4 sm:$0xff]  }
 0x129   : > { %v514_v32 = vpop.xlane.xlu0 %513  ;;  %v516_v33 = vpop.xlane.xlu1 %515 }
 0x12a   : > { %v542_v34 = vmul.f32 0.0078125, %v514_v32  ;;  %v571_v35 = vmul.f32 %v8038_v30, %v8038_v30  ;;  %v543_v36 = vmul.f32 0.0078125, %v516_v33  ;;  %v573_v37 = vmul.f32 %v8040_v31, %v8040_v31  ;;  %6384 = vmatpush3.bf16.msra.mxu1 %v6911_v18  ;;  %v6916_v33 = vld [vmem:[#allocation11 + $0x48] ss:$12 sps:$4 sm:$0xff]  }
 0x12c   : > { %590 = vadd.xlane.f32.xlu0 %v572_v29  ;;  %588 = vadd.xlane.f32.xlu1 %v571_v35  ;;  %v8046_v38 = vsub.f32 %v493_v4, %v542_v34  ;;  %v8048_v39 = vsub.f32 %v494_v5, %v543_v36  ;;  %v6908_v5 = vld [vmem:[#allocation11 + $0x78] ss:$12 sps:$4 sm:$0xff]   ;;  %v6915_v29 = vld [vmem:[#allocation11 + $0x68] ss:$12 sps:$4 sm:$0xff]   ;;  %v6919_v36 = vld [vmem:[#allocation11 + $0x50] ss:$12 sps:$4 sm:$0xff]  }
 0x12d   : > { %v518_v40 = vpop.xlane.xlu0 %517  ;;  %v520_v41 = vpop.xlane.xlu1 %519  ;;  %918 = vmatpush1.bf16.msra.mxu0 %v6908_v5  ;;  %6385 = vmatprep.subr.bf16.mxu1 %v6915_v29  ;;  %v6917_v35 = vld [vmem:[#allocation11 + $0x34] ss:$12 sps:$4 sm:$0xff]  }
 0x12e   : > { %v544_v42 = vmul.f32 0.0078125, %v518_v40  ;;  %v574_v43 = vmul.f32 %v8046_v38, %v8046_v38  ;;  %v545_v44 = vmul.f32 0.0078125, %v520_v41  ;;  %v575_v45 = vmul.f32 %v8048_v39, %v8048_v39  ;;  %919 = vmatprep.subr.bf16.mxu0 %v6909_v17  ;;  %6386 = vmatpush3.bf16.msra.mxu1 %v6915_v29  ;;  %v6923_v40 = vld [vmem:[#allocation11 + $0x38] ss:$12 sps:$4 sm:$0xff]  }
 0x12f   : > { %6387 = vmatprep.subr.bf16.mxu1 %v6919_v36  ;;  %v6924_v41 = vld [vmem:[#allocation11 + $0x18] ss:$12 sps:$4 sm:$0xff]  }
 0x130   : > { %592 = vadd.xlane.f32.xlu1 %v573_v37  ;;  %594 = vadd.xlane.f32.xlu0 %v574_v43  ;;  %v8054_v46 = vsub.f32 %v495_v6, %v544_v42  ;;  %v8056_v47 = vsub.f32 %v496_v7, %v545_v44  ;;  %v6925_v42 = vld [vmem:[#allocation11 + $0x4] ss:$12 sps:$4 sm:$0xff]   ;;  %v6927_v43 = vld [vmem:[#allocation11 + $0x20] ss:$12 sps:$4 sm:$0xff]  }
 0x131   : > { %v522_v48 = vpop.xlane.xlu0 %521  ;;  %v524_v49 = vpop.xlane.xlu1 %523  ;;  %920 = vmatpush1.bf16.msra.mxu0 %v6912_v20  ;;  %v6928_v44 = vld [vmem:[#allocation11] ss:$12 sps:$4 sm:$0xff]  }
 0x132   : > { %v546_v50 = vmul.f32 0.0078125, %v522_v48  ;;  %v576_v51 = vmul.f32 %v8054_v46, %v8054_v46  ;;  %v547_v52 = vmul.f32 0.0078125, %v524_v49  ;;  %v577_v56 = vmul.f32 %v8056_v47, %v8056_v47  ;;  %921 = vmatprep.subr.bf16.mxu0 %v6913_v28  ;;  %6388 = vmatpush3.bf16.msra.mxu1 %v6919_v36 }
 0x133   : > { %6389 = vmatprep.subr.bf16.mxu1 %v6923_v40  ;;  %v10135_v48 = vmov 0  }
 0x134   : > { %596 = vadd.xlane.f32.xlu1 %v575_v45  ;;  %598 = vadd.xlane.f32.xlu0 %v576_v51  ;;  %v8063_v57 = vsub.f32 %v7999_v8, %v546_v50  ;;  %v8066_v58 = vsub.f32 %v8002_v9, %v547_v52  ;;  %v6929_v45 = vld [vmem:[#allocation11 + $0x8] ss:$12 sps:$4 sm:$0xff]  }
 0x135   : > { %v526_v59 = vpop.xlane.xlu0 %525  ;;  %v528_v60 = vpop.xlane.xlu1 %527  ;;  %922 = vmatpush1.bf16.msra.mxu0 %v6916_v33  ;;  %945 = vmatprep.mubr.bf16.mxu0 %v10135_v48 }
 0x136   : > { %v548_v61 = vmul.f32 0.0078125, %v526_v59  ;;  %v578_v62 = vmul.f32 %v8063_v57, %v8063_v57  ;;  %v549_v63 = vmul.f32 0.0078125, %v528_v60  ;;  %v579_v2 = vmul.f32 %v8066_v58, %v8066_v58  ;;  %923 = vmatprep.subr.bf16.mxu0 %v6917_v35  ;;  %6390 = vmatpush3.bf16.msra.mxu1 %v6923_v40 }
 0x137   : > { %6391 = vmatprep.subr.bf16.mxu1 %v6927_v43 }
 0x138   : > { %600 = vadd.xlane.f32.xlu1 %v577_v56  ;;  %602 = vadd.xlane.f32.xlu0 %v578_v62  ;;  %v8073_v3 = vsub.f32 %v8005_v10, %v548_v61  ;;  %v8076_v4 = vsub.f32 %v8008_v11, %v549_v63 }
 0x139   : > { %v530_v6 = vpop.xlane.xlu0 %529  ;;  %v532_v7 = vpop.xlane.xlu1 %531 }
 0x13a   : > { %v550_v8 = vmul.f32 0.0078125, %v530_v6  ;;  %v580_v9 = vmul.f32 %v8073_v3, %v8073_v3  ;;  %v551_v16 = vmul.f32 0.0078125, %v532_v7  ;;  %v581_v10 = vmul.f32 %v8076_v4, %v8076_v4  ;;  %6392 = vmatpush3.bf16.msra.mxu1 %v6927_v43 }
 0x13b   : > { %6393 = vmatprep.subr.bf16.mxu1 %v6929_v45 }
 0x13c   : > { %604 = vadd.xlane.f32.xlu1 %v579_v2  ;;  %606 = vadd.xlane.f32.xlu0 %v580_v9  ;;  %v8083_v11 = vsub.f32 %v8013_v12, %v550_v8  ;;  %v8086_v19 = vsub.f32 %v8016_v13, %v551_v16 }
 0x13d   : > { %v534_v21 = vpop.xlane.xlu0 %533  ;;  %v536_v24 = vpop.xlane.xlu1 %535 }
 0x13e   : > { %v552_v25 = vmul.f32 0.0078125, %v534_v21  ;;  %v582_v26 = vmul.f32 %v8083_v11, %v8083_v11  ;;  %v553_v27 = vmul.f32 0.0078125, %v536_v24  ;;  %v583_v12 = vmul.f32 %v8086_v19, %v8086_v19  ;;  %6394 = vmatpush3.bf16.msra.mxu1 %v6929_v45 }
 0x140   : > { %608 = vadd.xlane.f32.xlu1 %v581_v10  ;;  %610 = vadd.xlane.f32.xlu0 %v582_v26  ;;  %v8093_v13 = vsub.f32 %v8021_v14, %v552_v25  ;;  %v8096_v32 = vsub.f32 %v8024_v15, %v553_v27  ;;  %v6920_v14 = vld [vmem:[#allocation11 + $0x30] ss:$12 sps:$4 sm:$0xff]  }
 0x141   : > { %924 = vmatpush1.bf16.msra.mxu0 %v6920_v14  ;;  %v6921_v15 = vld [vmem:[#allocation11 + $0x1c] ss:$12 sps:$4 sm:$0xff]  }
 0x142   : > { %v584_v34 = vmul.f32 %v8093_v13, %v8093_v13  ;;  %v585_v37 = vmul.f32 %v8096_v32, %v8096_v32  ;;  %925 = vmatprep.subr.bf16.mxu0 %v6921_v15  ;;  %v8104_v26 = vld [vmem:[#allocation8] ss:$0 sm:$0xff]  ;;  %v8108_v15 = vld [vmem:[#allocation10] ss:$0 sm:$0xff] }
 0x144   : > { %612 = vadd.xlane.f32.xlu1 %v583_v12  ;;  %614 = vadd.xlane.f32.xlu0 %v584_v34 }
 0x145   : > { %926 = vmatpush1.bf16.msra.mxu0 %v6924_v41 }
 0x146   : > { %927 = vmatprep.subr.bf16.mxu0 %v6925_v42 }
 0x148   : > { %616 = vadd.xlane.f32.xlu1 %v585_v37 }
 0x149   : > { %928 = vmatpush1.bf16.msra.mxu0 %v6928_v44 }
 0x1b1   : > { %v587_v49 = vpop.xlane.xlu0 %586 }
 0x1b2   : > { %v618_v50 = vmul.f32 0.0078125, %v587_v49 }
 0x1b4   : > { %v634_v51 = vadd.f32 1e-05, %v618_v50 }
 0x1b5   : > { %v589_v52 = vpop.xlane.xlu1 %588  ;;  %v591_v53 = vpop.xlane.xlu0 %590 }
 0x1b6   : > { %7074 = vrsqrt.f32 %v634_v51  ;;  %v619_v54 = vmul.f32 0.0078125, %v589_v52  ;;  %v620_v55 = vmul.f32 0.0078125, %v591_v53 }
 0x1b8   : > { %v635_v56 = vadd.f32 1e-05, %v619_v54  ;;  %v636_v59 = vadd.f32 1e-05, %v620_v55 }
 0x1b9   : > { %v593_v60 = vpop.xlane.xlu1 %592  ;;  %v595_v61 = vpop.xlane.xlu0 %594 }
 0x1ba   : > { %7076 = vrsqrt.f32 %v635_v56  ;;  %v621_v62 = vmul.f32 0.0078125, %v593_v60  ;;  %v622_v63 = vmul.f32 0.0078125, %v595_v61 }
 0x1bb   : > { %7078 = vrsqrt.f32 %v636_v59 }
 0x1bc   : > { %v637_v0 = vadd.f32 1e-05, %v621_v62  ;;  %v638_v1 = vadd.f32 1e-05, %v622_v63 }
 0x1bd   : > { %v597_v2 = vpop.xlane.xlu1 %596  ;;  %v599_v5 = vpop.xlane.xlu0 %598 }
 0x1be   : > { %7080 = vrsqrt.f32 %v637_v0  ;;  %v623_v6 = vmul.f32 0.0078125, %v597_v2  ;;  %v624_v7 = vmul.f32 0.0078125, %v599_v5 }
 0x1bf   : > { %7082 = vrsqrt.f32 %v638_v1 }
 0x1c0   : > { %v639_v8 = vadd.f32 1e-05, %v623_v6  ;;  %v640_v9 = vadd.f32 1e-05, %v624_v7 }
 0x1c1   : > { %v601_v16 = vpop.xlane.xlu1 %600  ;;  %v603_v17 = vpop.xlane.xlu0 %602 }
 0x1c2   : > { %7084 = vrsqrt.f32 %v639_v8  ;;  %v625_v18 = vmul.f32 0.0078125, %v601_v16  ;;  %v626_v10 = vmul.f32 0.0078125, %v603_v17 }
 0x1c3   : > { %v7075_v20 = vpop.eup %7074  ;;  %7086 = vrsqrt.f32 %v640_v9 }
 0x1c4   : > { %v641_v21 = vadd.f32 1e-05, %v625_v18  ;;  %v642_v24 = vadd.f32 1e-05, %v626_v10  ;;  %v666_v25 = vmul.f32 %v7075_v20, %v8030_v22 }
 0x1c5   : > { %v605_v27 = vpop.xlane.xlu1 %604  ;;  %v607_v28 = vpop.xlane.xlu0 %606 }
 0x1c6   : > { %7088 = vrsqrt.f32 %v641_v21  ;;  %v627_v29 = vmul.f32 0.0078125, %v605_v27  ;;  %v628_v12 = vmul.f32 0.0078125, %v607_v28  ;;  %v689_v34 = vmul.f32 %v8104_v26, %v666_v25 }
 0x1c7   : > { %v7077_v33 = vpop.eup %7076  ;;  %7090 = vrsqrt.f32 %v642_v24 }
 0x1c8   : > { %v7079_v35 = vpop.eup %7078  ;;  %v643_v36 = vadd.f32 1e-05, %v627_v29  ;;  %v644_v37 = vadd.f32 1e-05, %v628_v12  ;;  %v667_v14 = vmul.f32 %v7077_v33, %v8038_v30  ;;  %v712_v49 = vadd.f32 %v8108_v15, %v689_v34 }
 0x1c9   : > { %v609_v40 = vpop.xlane.xlu1 %608  ;;  %v611_v22 = vpop.xlane.xlu0 %610  ;;  %v668_v41 = vmul.f32 %v7079_v35, %v8032_v23 }
 0x1ca   : > { %7092 = vrsqrt.f32 %v643_v36  ;;  %v629_v42 = vmul.f32 0.0078125, %v609_v40  ;;  %v630_v43 = vmul.f32 0.0078125, %v611_v22  ;;  %v690_v44 = vmul.f32 %v8104_v26, %v667_v14 }
 0x1cb   : > { %v7081_v45 = vpop.eup %7080  ;;  %7094 = vrsqrt.f32 %v644_v37  ;;  %v691_v23 = vmul.f32 %v8104_v26, %v668_v41 }
 0x1cc   : > { %v7083_v50 = vpop.eup %7082  ;;  %v645_v51 = vadd.f32 1e-05, %v629_v42  ;;  %v646_v52 = vadd.f32 1e-05, %v630_v43  ;;  %v713_v30 = vadd.f32 %v8108_v15, %v690_v44  ;;  %v669_v53 = vmul.f32 %v7081_v45, %v8040_v31 }
 0x1cd   : > { %v613_v54 = vpop.xlane.xlu1 %612  ;;  %v615_v55 = vpop.xlane.xlu0 %614  ;;  %v670_v56 = vmul.f32 %v7083_v50, %v8046_v38  ;;  %v714_v38 = vadd.f32 %v8108_v15, %v691_v23 }
 0x1ce   : > { %7096 = vrsqrt.f32 %v645_v51  ;;  %v631_v59 = vmul.f32 0.0078125, %v613_v54  ;;  %v632_v60 = vmul.f32 0.0078125, %v615_v55  ;;  %v728_v61 = vpack.c.bf16 %v713_v30, %v712_v49 }
 0x1cf   : > { %v7085_v62 = vpop.eup %7084  ;;  %7098 = vrsqrt.f32 %v646_v52  ;;  %v692_v63 = vmul.f32 %v8104_v26, %v669_v53  ;;  %v693_v5 = vmul.f32 %v8104_v26, %v670_v56 }
 0x1d0   : > { %v7087_v0 = vpop.eup %7086  ;;  %v647_v1 = vadd.f32 1e-05, %v631_v59  ;;  %v648_v2 = vadd.f32 1e-05, %v632_v60  ;;  %946 = vmatmul.mubr.bf16.vlgmr.msra.gmra.mxu0 %v728_v61  ;;  %6395 = vmatprep.mubr.bf16.mxu1 %v728_v61  ;;  %v671_v31 = vmul.f32 %v7085_v62, %v8048_v39 }
 0x1d1   : > { %v617_v6 = vpop.xlane.xlu1 %616  ;;  %v715_v7 = vadd.f32 %v8108_v15, %v692_v63  ;;  %955 = vmatprep.mubr.bf16.mxu0 %v10135_v48  ;;  %v672_v8 = vmul.f32 %v7087_v0, %v8054_v46  ;;  %v716_v21 = vadd.f32 %v8108_v15, %v693_v5  ;;  %v768_v63 = vld [vmem:[%s10119_s4] sm:$0x7] }
 0x1d2   : > { %7100 = vrsqrt.f32 %v647_v1  ;;  %v633_v9 = vmul.f32 0.0078125, %v617_v6  ;;  %v694_v16 = vmul.f32 %v8104_v26, %v671_v31 }
 0x1d3   : > { %v7089_v17 = vpop.eup %7088  ;;  %7102 = vrsqrt.f32 %v648_v2  ;;  %v729_v18 = vpack.c.bf16 %v715_v7, %v714_v38  ;;  %v695_v39 = vmul.f32 %v8104_v26, %v672_v8 }
 0x1d4   : > { %v7091_v10 = vpop.eup %7090  ;;  %v649_v20 = vadd.f32 1e-05, %v633_v9  ;;  %v717_v24 = vadd.f32 %v8108_v15, %v694_v16  ;;  %v673_v25 = vmul.f32 %v7089_v17, %v8056_v47 }
 0x1d5   : > { %6396 = vmatmul.mubr.bf16.vlgmr.msra.gmra.mxu1 %v729_v18  ;;  %v674_v46 = vmul.f32 %v7091_v10, %v8063_v57  ;;  %v718_v12 = vadd.f32 %v8108_v15, %v695_v39 }
 0x1d6   : > { %7104 = vrsqrt.f32 %v649_v20  ;;  %v730_v27 = vpack.c.bf16 %v717_v24, %v716_v21  ;;  %v696_v28 = vmul.f32 %v8104_v26, %v673_v25 }
 0x1d7   : > { %v7093_v29 = vpop.eup %7092  ;;  %v697_v36 = vmul.f32 %v8104_v26, %v674_v46 }
 0x1d8   : > { %v7095_v33 = vpop.eup %7094  ;;  %956 = vmatmul.mubr.bf16.gmra.mxu0 %v729_v18  ;;  %6399 = vmatprep.mubr.bf16.mxu1 %v730_v27  ;;  %v719_v34 = vadd.f32 %v8108_v15, %v696_v28  ;;  %v675_v35 = vmul.f32 %v7093_v29, %v8066_v58 }
 0x1d9   : > { %965 = vmatprep.mubr.bf16.mxu0 %v10135_v48  ;;  %v676_v47 = vmul.f32 %v7095_v33, %v8073_v3  ;;  %v720_v41 = vadd.f32 %v8108_v15, %v697_v36 }
 0x1da   : > { %v731_v57 = vpack.c.bf16 %v719_v34, %v718_v12  ;;  %v698_v37 = vmul.f32 %v8104_v26, %v675_v35 }
 0x1db   : > { %v7097_v14 = vpop.eup %7096  ;;  %v699_v40 = vmul.f32 %v8104_v26, %v676_v47 }
 0x1dc   : > { %v7099_v22 = vpop.eup %7098  ;;  %v721_v42 = vadd.f32 %v8108_v15, %v698_v37  ;;  %v677_v43 = vmul.f32 %v7097_v14, %v8076_v4 }
 0x1dd   : > { %6400 = vmatmul.mubr.bf16.gmra.mxu1 %v731_v57  ;;  %v678_v58 = vmul.f32 %v7099_v22, %v8083_v11  ;;  %v722_v49 = vadd.f32 %v8108_v15, %v699_v40 }
 0x1de   : > { %v732_v44 = vpack.c.bf16 %v721_v42, %v720_v41  ;;  %v700_v45 = vmul.f32 %v8104_v26, %v677_v43 }
 0x1df   : > { %v7101_v3 = vpop.eup %7100  ;;  %v701_v30 = vmul.f32 %v8104_v26, %v678_v58 }
 0x1e0   : > { %v7103_v50 = vpop.eup %7102  ;;  %966 = vmatmul.mubr.bf16.gmra.mxu0 %v730_v27  ;;  %6403 = vmatprep.mubr.bf16.mxu1 %v732_v44  ;;  %v723_v51 = vadd.f32 %v8108_v15, %v700_v45  ;;  %v679_v52 = vmul.f32 %v7101_v3, %v8086_v19 }
 0x1e1   : > { %975 = vmatprep.mubr.bf16.mxu0 %v10135_v48  ;;  %v680_v4 = vmul.f32 %v7103_v50, %v8093_v13  ;;  %v724_v55 = vadd.f32 %v8108_v15, %v701_v30 }
 0x1e2   : > { %v733_v11 = vpack.c.bf16 %v723_v51, %v722_v49  ;;  %v702_v53 = vmul.f32 %v8104_v26, %v679_v52 }
 0x1e3   : > { %v7105_v54 = vpop.eup %7104  ;;  %v703_v59 = vmul.f32 %v8104_v26, %v680_v4 }
 0x1e4   : > { %v725_v23 = vadd.f32 %v8108_v15, %v702_v53  ;;  %v681_v56 = vmul.f32 %v7105_v54, %v8096_v32  ;;  %v770_v32 = vlaneseq }
 0x1e5   : > { %6404 = vmatmul.mubr.bf16.gmra.mxu1 %v733_v11  ;;  %v726_v13 = vadd.f32 %v8108_v15, %v703_v59 }
 0x1e6   : > { %v734_v19 = vpack.c.bf16 %v725_v23, %v724_v55  ;;  %v704_v60 = vmul.f32 %v8104_v26, %v681_v56  ;;  %v8163_v26 = vshrl.u32 %v770_v32, 7 }
 0x1e8   : > { %976 = vmatmul.mubr.bf16.gmra.mxu0 %v731_v57  ;;  %6407 = vmatprep.mubr.bf16.mxu1 %v734_v19  ;;  %v727_v61 = vadd.f32 %v8108_v15, %v704_v60  ;;  %10199 = vst [vmem:[#allocation23_spill] sm:$0xff] %v8163_v26  ;;  %v10134_v15 = vsub.s32 0, %v8163_v26  ;;  %v10133_v0 = vsub.s32 1, %v8163_v26  ;;  %v780_v2 = vsub.s32 2, %v8163_v26 }
 0x1e9   : > { %985 = vmatprep.mubr.bf16.mxu0 %v10135_v48 }
 0x1ea   : > { %v735_v62 = vpack.c.bf16 %v727_v61, %v726_v13  ;;  %v8172_v1 = vrot.slane %v768_v63, %v10134_v15  ;;  %v8177_v31 = vrot.slane %v768_v63, %v10133_v0  ;;  %v8180_v7 = vrot.slane %v768_v63, %v780_v2 }
 0x1ed   : > { %6408 = vmatmul.mubr.bf16.gmra.mxu1 %v735_v62 }
 0x1f0   : > { %986 = vmatmul.mubr.bf16.gmra.mxu0 %v732_v44 }
 0x1f1   : > { %995 = vmatprep.mubr.bf16.mxu0 %v10135_v48 }
 0x1f8   : > { %996 = vmatmul.mubr.bf16.gmra.mxu0 %v733_v11 }
 0x1f9   : > { %1005 = vmatprep.mubr.bf16.mxu0 %v10135_v48 }
 0x200   : > { %1006 = vmatmul.mubr.bf16.gmra.mxu0 %v734_v19 }
 0x201   : > { %1015 = vmatprep.mubr.bf16.mxu0 %v10135_v48 }
 0x208   : > { %1016 = vmatmul.mubr.bf16.gmra.mxu0 %v735_v62 }
 0x290   : > { %v947_v5 = vpop.f32.mrf.mxu0 }
 0x291   : > { %v948_v6 = vadd.f32 %v947_v5, %v8172_v1 }
 0x292   : > { %v949_v38 = vpop.f32.mrf.mxu0 }
 0x293   : > { %v6082_v8 = vpack.c.bf16 %v948_v6, %v948_v6  ;;  %v950_v9 = vadd.f32 %v949_v38, %v8177_v31 }
 0x294   : > { %v951_v16 = vpop.f32.mrf.mxu0 }
 0x295   : > { %1188 = vst.msk [vmem:[#allocation2] sm:$0xf] %vm1187_vm0, %v6082_v8  ;;  %v8184_v17 = vpack.c.bf16 %v950_v9, %v950_v9  ;;  %v952_v18 = vadd.f32 %v951_v16, %v8172_v1  ;;  %v6397_v39 = vpop.f32.mrf.mxu1  ;;  %1364 = vrot.lane.b32.xlu0 %v6082_v8, %s7719_s24 }
 0x296   : > { %v1069_v10 = vadd.f32 %v6397_v39, %v8180_v7  ;;  %v953_v20 = vpop.f32.mrf.mxu0 }
 0x297   : > { %1268 = vst.msk [vmem:[#allocation3] sm:$0xf] %vm1187_vm0, %v8184_v17  ;;  %v6083_v21 = vpack.c.bf16 %v952_v18, %v952_v18  ;;  %v954_v24 = vadd.f32 %v953_v20, %v8177_v31  ;;  %v1060_v25 = vpop.f32.mrf.mxu1 }
 0x298   : > { %v8192_v46 = vpack.c.bf16 %v1069_v10, %v1069_v10  ;;  %v1061_v27 = vadd.f32 %v1060_v25, %v8180_v7  ;;  %v957_v28 = vpop.f32.mrf.mxu0 }
 0x299   : > { %1189 = vst.msk [vmem:[#allocation2 + $0x4] sm:$0xf] %vm1187_vm0, %v6083_v21  ;;  %v8196_v29 = vpack.c.bf16 %v954_v24, %v954_v24  ;;  %v958_v12 = vadd.f32 %v957_v28, %v8172_v1  ;;  %v6398_v33 = vpop.f32.mrf.mxu1  ;;  %1366 = vrot.lane.b32.xlu1 %v6083_v21, %s7719_s24  ;;  %1559 = vrot.lane.b32.xlu0 %v6082_v8, %s7720_s14 }
 0x29a   : > { %1350 = vst.msk [vmem:[#allocation4 + $0x8] sm:$0xf] %vm1187_vm0, %v8192_v46  ;;  %v8203_v34 = vpack.c.bf16 %v1061_v27, %v1061_v27  ;;  %v1072_v35 = vadd.f32 %v6398_v33, %v8180_v7  ;;  %v959_v36 = vpop.f32.mrf.mxu0 }
 0x29b   : > { %1269 = vst.msk [vmem:[#allocation3 + $0x4] sm:$0xf] %vm1187_vm0, %v8196_v29  ;;  %v8208_v47 = vpack.c.bf16 %v958_v12, %v958_v12  ;;  %v960_v57 = vadd.f32 %v959_v36, %v8177_v31  ;;  %v1063_v37 = vpop.f32.mrf.mxu1 }
 0x29c   : > { %10200 = vst [vmem:[#allocation24_spill] sm:$0xff] %v8203_v34  ;;  %1348 = vst.msk [vmem:[#allocation4] sm:$0xf] %vm1187_vm0, %v8203_v34  ;;  %v8213_v14 = vpack.c.bf16 %v1072_v35, %v1072_v35  ;;  %v1064_v40 = vadd.f32 %v1063_v37, %v8180_v7  ;;  %v961_v22 = vpop.f32.mrf.mxu0 }
 0x29d   : > { %1190 = vst.msk [vmem:[#allocation2 + $0x8] sm:$0xf] %vm1187_vm0, %v8208_v47  ;;  %v8218_v41 = vpack.c.bf16 %v960_v57, %v960_v57  ;;  %v962_v42 = vadd.f32 %v961_v22, %v8172_v1  ;;  %v6401_v43 = vpop.f32.mrf.mxu1  ;;  %1561 = vrot.lane.b32.xlu1 %v6083_v21, %s7720_s14  ;;  %1754 = vrot.lane.b32.xlu0 %v6082_v8, %s7721_s16 }
 0x29e   : > { %1351 = vst.msk [vmem:[#allocation4 + $0xc] sm:$0xf] %vm1187_vm0, %v8213_v14  ;;  %v8225_v58 = vpack.c.bf16 %v1064_v40, %v1064_v40  ;;  %v1085_v44 = vadd.f32 %v6401_v43, %v8180_v7  ;;  %v963_v45 = vpop.f32.mrf.mxu0 }
 0x29f   : > { %1270 = vst.msk [vmem:[#allocation3 + $0x8] sm:$0xf] %vm1187_vm0, %v8218_v41  ;;  %v8230_v3 = vpack.c.bf16 %v962_v42, %v962_v42  ;;  %v964_v49 = vadd.f32 %v963_v45, %v8177_v31  ;;  %v1076_v50 = vpop.f32.mrf.mxu1 }
 0x2a0   : > { %10201 = vst [vmem:[#allocation25_spill] sm:$0xff] %v8225_v58  ;;  %1349 = vst.msk [vmem:[#allocation4 + $0x4] sm:$0xf] %vm1187_vm0, %v8225_v58  ;;  %v8235_v51 = vpack.c.bf16 %v1085_v44, %v1085_v44  ;;  %v1077_v52 = vadd.f32 %v1076_v50, %v8180_v7  ;;  %v967_v30 = vpop.f32.mrf.mxu0  ;;  %v6930_v4 = vld [vmem:[#allocation2] sm:$0xff]  }
 0x2a1   : > { %1191 = vst.msk [vmem:[#allocation2 + $0xc] sm:$0xf] %vm1187_vm0, %v8230_v3  ;;  %v8240_v11 = vpack.c.bf16 %v964_v49, %v964_v49  ;;  %v968_v53 = vadd.f32 %v967_v30, %v8172_v1  ;;  %v6402_v54 = vpop.f32.mrf.mxu1  ;;  %1756 = vrot.lane.b32.xlu1 %v6083_v21, %s7721_s16  ;;  %1429 = vrot.lane.b32.xlu0 %v8184_v17, %s7719_s24 }
 0x2a2   : > { %1354 = vst.msk [vmem:[#allocation4 + $0x18] sm:$0xf] %vm1187_vm0, %v8235_v51  ;;  %v8248_v55 = vpack.c.bf16 %v1077_v52, %v1077_v52  ;;  %v1088_v23 = vadd.f32 %v6402_v54, %v8180_v7  ;;  %v969_v56 = vpop.f32.mrf.mxu0  ;;  %6427 = vmatprep.mubr.msk.bf16.mxu0 %vm2221_vm1, %v6930_v4 }
 0x2a3   : > { %1271 = vst.msk [vmem:[#allocation3 + $0xc] sm:$0xf] %vm1187_vm0, %v8240_v11  ;;  %v8254_v59 = vpack.c.bf16 %v968_v53, %v968_v53  ;;  %v970_v19 = vadd.f32 %v969_v56, %v8177_v31  ;;  %v1079_v60 = vpop.f32.mrf.mxu1 }
 0x2a4   : > { %1352 = vst.msk [vmem:[#allocation4 + $0x10] sm:$0xf] %vm1187_vm0, %v8248_v55  ;;  %v8259_v13 = vpack.c.bf16 %v1088_v23, %v1088_v23  ;;  %v1080_v61 = vadd.f32 %v1079_v60, %v8180_v7  ;;  %v971_v62 = vpop.f32.mrf.mxu0 }
 0x2a5   : > { %1192 = vst.msk [vmem:[#allocation2 + $0x10] sm:$0xf] %vm1187_vm0, %v8254_v59  ;;  %v8264_v63 = vpack.c.bf16 %v970_v19, %v970_v19  ;;  %v972_v2 = vadd.f32 %v971_v62, %v8172_v1  ;;  %v6405_v5 = vpop.f32.mrf.mxu1  ;;  %1431 = vrot.lane.b32.xlu1 %v8196_v29, %s7719_s24  ;;  %1624 = vrot.lane.b32.xlu0 %v8184_v17, %s7720_s14 }
 0x2a6   : > { %1355 = vst.msk [vmem:[#allocation4 + $0x1c] sm:$0xf] %vm1187_vm0, %v8259_v13  ;;  %v8273_v6 = vpack.c.bf16 %v1080_v61, %v1080_v61  ;;  %v1101_v38 = vadd.f32 %v6405_v5, %v8180_v7  ;;  %v973_v8 = vpop.f32.mrf.mxu0 }
 0x2a7   : > { %1272 = vst.msk [vmem:[#allocation3 + $0x10] sm:$0xf] %vm1187_vm0, %v8264_v63  ;;  %v8278_v9 = vpack.c.bf16 %v972_v2, %v972_v2  ;;  %v974_v16 = vadd.f32 %v973_v8, %v8177_v31  ;;  %v1092_v18 = vpop.f32.mrf.mxu1 }
 0x2a8   : > { %1353 = vst.msk [vmem:[#allocation4 + $0x14] sm:$0xf] %vm1187_vm0, %v8273_v6  ;;  %v8283_v39 = vpack.c.bf16 %v1101_v38, %v1101_v38  ;;  %v1093_v10 = vadd.f32 %v1092_v18, %v8180_v7  ;;  %v977_v20 = vpop.f32.mrf.mxu0 }
 0x2a9   : > { %1193 = vst.msk [vmem:[#allocation2 + $0x14] sm:$0xf] %vm1187_vm0, %v8278_v9  ;;  %v8288_v21 = vpack.c.bf16 %v974_v16, %v974_v16  ;;  %v978_v24 = vadd.f32 %v977_v20, %v8172_v1  ;;  %v6406_v25 = vpop.f32.mrf.mxu1  ;;  %1626 = vrot.lane.b32.xlu1 %v8196_v29, %s7720_s14  ;;  %1819 = vrot.lane.b32.xlu0 %v8184_v17, %s7721_s16 }
 0x2aa   : > { %1358 = vst.msk [vmem:[#allocation4 + $0x28] sm:$0xf] %vm1187_vm0, %v8283_v39  ;;  %v8297_v27 = vpack.c.bf16 %v1093_v10, %v1093_v10  ;;  %v1104_v28 = vadd.f32 %v6406_v25, %v8180_v7  ;;  %v979_v12 = vpop.f32.mrf.mxu0 }
 0x2ab   : > { %1273 = vst.msk [vmem:[#allocation3 + $0x14] sm:$0xf] %vm1187_vm0, %v8288_v21  ;;  %v8302_v33 = vpack.c.bf16 %v978_v24, %v978_v24  ;;  %v980_v35 = vadd.f32 %v979_v12, %v8177_v31  ;;  %v1095_v36 = vpop.f32.mrf.mxu1 }
 0x2ac   : > { %1356 = vst.msk [vmem:[#allocation4 + $0x20] sm:$0xf] %vm1187_vm0, %v8297_v27  ;;  %v8307_v17 = vpack.c.bf16 %v1104_v28, %v1104_v28  ;;  %v1096_v57 = vadd.f32 %v1095_v36, %v8180_v7  ;;  %v981_v37 = vpop.f32.mrf.mxu0 }
 0x2ad   : > { %1194 = vst.msk [vmem:[#allocation2 + $0x18] sm:$0xf] %vm1187_vm0, %v8302_v33  ;;  %v8312_v40 = vpack.c.bf16 %v980_v35, %v980_v35  ;;  %v982_v22 = vadd.f32 %v981_v37, %v8172_v1  ;;  %v6409_v42 = vpop.f32.mrf.mxu1  ;;  %1821 = vrot.lane.b32.xlu1 %v8196_v29, %s7721_s16  ;;  %1368 = vrot.lane.b32.xlu0 %v8208_v47, %s7719_s24 }
 0x2ae   : > { %1359 = vst.msk [vmem:[#allocation4 + $0x2c] sm:$0xf] %vm1187_vm0, %v8307_v17  ;;  %v8321_v43 = vpack.c.bf16 %v1096_v57, %v1096_v57  ;;  %v1117_v44 = vadd.f32 %v6409_v42, %v8180_v7  ;;  %v983_v45 = vpop.f32.mrf.mxu0 }
 0x2af   : > { %1274 = vst.msk [vmem:[#allocation3 + $0x18] sm:$0xf] %vm1187_vm0, %v8312_v40  ;;  %v8326_v49 = vpack.c.bf16 %v982_v22, %v982_v22  ;;  %v984_v50 = vadd.f32 %v983_v45, %v8177_v31  ;;  %v1108_v52 = vpop.f32.mrf.mxu1 }
 0x2b0   : > { %1357 = vst.msk [vmem:[#allocation4 + $0x24] sm:$0xf] %vm1187_vm0, %v8321_v43  ;;  %v8331_v29 = vpack.c.bf16 %v1117_v44, %v1117_v44  ;;  %v1109_v30 = vadd.f32 %v1108_v52, %v8180_v7  ;;  %v987_v4 = vpop.f32.mrf.mxu0 }
 0x2b1   : > { %1195 = vst.msk [vmem:[#allocation2 + $0x1c] sm:$0xf] %vm1187_vm0, %v8326_v49  ;;  %v8336_v53 = vpack.c.bf16 %v984_v50, %v984_v50  ;;  %v988_v54 = vadd.f32 %v987_v4, %v8172_v1  ;;  %v6410_v23 = vpop.f32.mrf.mxu1  ;;  %1370 = vrot.lane.b32.xlu1 %v8230_v3, %s7719_s24  ;;  %1563 = vrot.lane.b32.xlu0 %v8208_v47, %s7720_s14 }
 0x2b2   : > { %1362 = vst.msk [vmem:[#allocation4 + $0x38] sm:$0xf] %vm1187_vm0, %v8331_v29  ;;  %v8345_v56 = vpack.c.bf16 %v1109_v30, %v1109_v30  ;;  %v1120_v19 = vadd.f32 %v6410_v23, %v8180_v7  ;;  %v989_v60 = vpop.f32.mrf.mxu0 }
 0x2b3   : > { %1275 = vst.msk [vmem:[#allocation3 + $0x1c] sm:$0xf] %vm1187_vm0, %v8336_v53  ;;  %v8350_v61 = vpack.c.bf16 %v988_v54, %v988_v54  ;;  %v990_v62 = vadd.f32 %v989_v60, %v8177_v31  ;;  %v1111_v2 = vpop.f32.mrf.mxu1 }
 0x2b4   : > { %1360 = vst.msk [vmem:[#allocation4 + $0x30] sm:$0xf] %vm1187_vm0, %v8345_v56  ;;  %v8355_v5 = vpack.c.bf16 %v1120_v19, %v1120_v19  ;;  %v1112_v38 = vadd.f32 %v1111_v2, %v8180_v7  ;;  %v991_v8 = vpop.f32.mrf.mxu0 }
 0x2b5   : > { %1196 = vst.msk [vmem:[#allocation2 + $0x20] sm:$0xf] %vm1187_vm0, %v8350_v61  ;;  %v8360_v16 = vpack.c.bf16 %v990_v62, %v990_v62  ;;  %v992_v18 = vadd.f32 %v991_v8, %v8172_v1  ;;  %1565 = vrot.lane.b32.xlu1 %v8230_v3, %s7720_s14  ;;  %1758 = vrot.lane.b32.xlu0 %v8208_v47, %s7721_s16 }
 0x2b6   : > { %1363 = vst.msk [vmem:[#allocation4 + $0x3c] sm:$0xf] %vm1187_vm0, %v8355_v5  ;;  %v8369_v10 = vpack.c.bf16 %v1112_v38, %v1112_v38  ;;  %v993_v7 = vpop.f32.mrf.mxu0 }
 0x2b7   : > { %1276 = vst.msk [vmem:[#allocation3 + $0x20] sm:$0xf] %vm1187_vm0, %v8360_v16  ;;  %v8373_v20 = vpack.c.bf16 %v992_v18, %v992_v18  ;;  %v994_v24 = vadd.f32 %v993_v7, %v8177_v31 }
 0x2b8   : > { %1361 = vst.msk [vmem:[#allocation4 + $0x34] sm:$0xf] %vm1187_vm0, %v8369_v10  ;;  %v997_v25 = vpop.f32.mrf.mxu0 }
 0x2b9   : > { %1197 = vst.msk [vmem:[#allocation2 + $0x24] sm:$0xf] %vm1187_vm0, %v8373_v20  ;;  %v8380_v47 = vpack.c.bf16 %v994_v24, %v994_v24  ;;  %v998_v28 = vadd.f32 %v997_v25, %v8172_v1  ;;  %1760 = vrot.lane.b32.xlu1 %v8230_v3, %s7721_s16  ;;  %1506 = vrot.lane.b32.xlu0 %v8235_v51, %s7719_s24 }
 0x2ba   : > { %v999_v12 = vpop.f32.mrf.mxu0 }
 0x2bb   : > { %1277 = vst.msk [vmem:[#allocation3 + $0x24] sm:$0xf] %vm1187_vm0, %v8380_v47  ;;  %v8389_v35 = vpack.c.bf16 %v998_v28, %v998_v28  ;;  %v1000_v36 = vadd.f32 %v999_v12, %v8177_v31 }
 0x2bc   : > { %v1001_v57 = vpop.f32.mrf.mxu0 }
 0x2bd   : > { %1198 = vst.msk [vmem:[#allocation2 + $0x28] sm:$0xf] %vm1187_vm0, %v8389_v35  ;;  %v8394_v37 = vpack.c.bf16 %v1000_v36, %v1000_v36  ;;  %v1002_v22 = vadd.f32 %v1001_v57, %v8172_v1  ;;  %1435 = vrot.lane.b32.xlu1 %v8240_v11, %s7719_s24  ;;  %1433 = vrot.lane.b32.xlu0 %v8218_v41, %s7719_s24 }
 0x2be   : > { %v1003_v3 = vpop.f32.mrf.mxu0 }
 0x2bf   : > { %1278 = vst.msk [vmem:[#allocation3 + $0x28] sm:$0xf] %vm1187_vm0, %v8394_v37  ;;  %v8403_v42 = vpack.c.bf16 %v1002_v22, %v1002_v22  ;;  %v1004_v44 = vadd.f32 %v1003_v3, %v8177_v31 }
 0x2c0   : > { %v1007_v45 = vpop.f32.mrf.mxu0 }
 0x2c1   : > { %1199 = vst.msk [vmem:[#allocation2 + $0x2c] sm:$0xf] %vm1187_vm0, %v8403_v42  ;;  %v8408_v50 = vpack.c.bf16 %v1004_v44, %v1004_v44  ;;  %v1008_v52 = vadd.f32 %v1007_v45, %v8172_v1  ;;  %1630 = vrot.lane.b32.xlu1 %v8240_v11, %s7720_s14  ;;  %1628 = vrot.lane.b32.xlu0 %v8218_v41, %s7720_s14 }
 0x2c2   : > { %v1009_v30 = vpop.f32.mrf.mxu0 }
 0x2c3   : > { %1279 = vst.msk [vmem:[#allocation3 + $0x2c] sm:$0xf] %vm1187_vm0, %v8408_v50  ;;  %v8417_v4 = vpack.c.bf16 %v1008_v52, %v1008_v52  ;;  %v1010_v54 = vadd.f32 %v1009_v30, %v8177_v31  ;;  %v6935_v52 = vld [vmem:[#allocation3 + $0x18] sm:$0xff]  }
 0x2c4   : > { %v1011_v23 = vpop.f32.mrf.mxu0 }
 0x2c5   : > { %1200 = vst.msk [vmem:[#allocation2 + $0x30] sm:$0xf] %vm1187_vm0, %v8417_v4  ;;  %v8422_v19 = vpack.c.bf16 %v1010_v54, %v1010_v54  ;;  %v1012_v60 = vadd.f32 %v1011_v23, %v8172_v1  ;;  %1825 = vrot.lane.b32.xlu1 %v8240_v11, %s7721_s16  ;;  %1823 = vrot.lane.b32.xlu0 %v8218_v41, %s7721_s16  ;;  %v6937_v54 = vld [vmem:[#allocation3 + $0x8] sm:$0xff]  }
 0x2c6   : > { %v1013_v62 = vpop.f32.mrf.mxu0 }
 0x2c7   : > { %1280 = vst.msk [vmem:[#allocation3 + $0x30] sm:$0xf] %vm1187_vm0, %v8422_v19  ;;  %v8431_v2 = vpack.c.bf16 %v1012_v60, %v1012_v60  ;;  %v1014_v38 = vadd.f32 %v1013_v62, %v8177_v31  ;;  %v2250_v60 = vsel %vm2221_vm1, %v6937_v54, 0  ;;  %v6938_v62 = vld [vmem:[#allocation3] sm:$0xff]  }
 0x2c8   : > { %v1017_v8 = vpop.f32.mrf.mxu0 }
 0x2c9   : > { %1201 = vst.msk [vmem:[#allocation2 + $0x34] sm:$0xf] %vm1187_vm0, %v8431_v2  ;;  %v8436_v18 = vpack.c.bf16 %v1014_v38, %v1014_v38  ;;  %v1018_v7 = vadd.f32 %v1017_v8, %v8172_v1  ;;  %1374 = vrot.lane.b32.xlu1 %v8278_v9, %s7719_s24  ;;  %1372 = vrot.lane.b32.xlu0 %v8254_v59, %s7719_s24 }
 0x2ca   : > { %v1019_v41 = vpop.f32.mrf.mxu0  ;;  %v6933_v44 = vld [vmem:[#allocation3 + $0x28] sm:$0xff]  }
 0x2cb   : > { %1281 = vst.msk [vmem:[#allocation3 + $0x34] sm:$0xf] %vm1187_vm0, %v8436_v18  ;;  %v8445_v11 = vpack.c.bf16 %v1018_v7, %v1018_v7  ;;  %v1020_v24 = vadd.f32 %v1019_v41, %v8177_v31 }
 0x2cc   : > { %v1021_v25 = vpop.f32.mrf.mxu0 }
 0x2cd   : > { %1202 = vst.msk [vmem:[#allocation2 + $0x38] sm:$0xf] %vm1187_vm0, %v8445_v11  ;;  %v8450_v28 = vpack.c.bf16 %v1020_v24, %v1020_v24  ;;  %v1022_v12 = vadd.f32 %v1021_v25, %v8172_v1  ;;  %1569 = vrot.lane.b32.xlu1 %v8278_v9, %s7720_s14  ;;  %1567 = vrot.lane.b32.xlu0 %v8254_v59, %s7720_s14  ;;  %v2247_v25 = vsel %vm2221_vm1, %v6938_v62, 0 }
 0x2ce   : > { %v1023_v36 = vpop.f32.mrf.mxu0 }
 0x2cf   : > { %1282 = vst.msk [vmem:[#allocation3 + $0x38] sm:$0xf] %vm1187_vm0, %v8450_v28  ;;  %v8459_v57 = vpack.c.bf16 %v1022_v12, %v1022_v12  ;;  %v1024_v22 = vadd.f32 %v1023_v36, %v8177_v31 }
 0x2d1   : > { %1203 = vst.msk [vmem:[#allocation2 + $0x3c] sm:$0xf] %vm1187_vm0, %v8459_v57  ;;  %v8464_v3 = vpack.c.bf16 %v1024_v22, %v1024_v22  ;;  %1764 = vrot.lane.b32.xlu1 %v8278_v9, %s7721_s16  ;;  %1762 = vrot.lane.b32.xlu0 %v8254_v59, %s7721_s16  ;;  %v6940_v22 = vld [vmem:[#allocation2 + $0x8] sm:$0xff]  }
 0x2d2   : > { %v6932_v59 = vld [vmem:[#allocation3 + $0x30] sm:$0xff]  }
 0x2d3   : > { %1283 = vst.msk [vmem:[#allocation3 + $0x3c] sm:$0xf] %vm1187_vm0, %v8464_v3  ;;  %v2265_v9 = vsel %vm2221_vm1, %v6932_v59, 0 }
 0x2d5   : > { %1514 = vrot.lane.b32.xlu0 %v8283_v39, %s7719_s24  ;;  %1516 = vrot.lane.b32.xlu1 %v8307_v17, %s7719_s24 }
 0x2d9   : > { %1437 = vrot.lane.b32.xlu0 %v8264_v63, %s7719_s24  ;;  %1439 = vrot.lane.b32.xlu1 %v8288_v21, %s7719_s24 }
 0x2da   : > { %v6931_v1 = vld [vmem:[#allocation3 + $0x38] sm:$0xff]  }
 0x2db   : > { %6747 = vmatprep.subr.msk.bf16.mxu0 %vm2221_vm1, %v6931_v1  ;;  %v2268_v31 = vsel %vm2221_vm1, %v6931_v1, 0  ;;  %v6941_v1 = vld [vmem:[#allocation2 + $0x10] sm:$0xff]  }
 0x2dc   : > { %6412 = vmatpush3.bf16.xpose.msra.mxu0 %v2268_v31 }
 0x2dd   : > { %1632 = vrot.lane.b32.xlu0 %v8264_v63, %s7720_s14  ;;  %1634 = vrot.lane.b32.xlu1 %v8288_v21, %s7720_s14 }
 0x2de   : > { %6748 = vmatprep.subr.msk.bf16.mxu0 %vm2221_vm1, %v6932_v59 }
 0x2e1   : > { %1827 = vrot.lane.b32.xlu0 %v8264_v63, %s7721_s16  ;;  %1829 = vrot.lane.b32.xlu1 %v8288_v21, %s7721_s16  ;;  %v2262_v63 = vsel %vm2221_vm1, %v6933_v44, 0  ;;  %v6934_v21 = vld [vmem:[#allocation3 + $0x20] sm:$0xff]  }
 0x2e2   : > { %v2259_v45 = vsel %vm2221_vm1, %v6934_v21, 0 }
 0x2e4   : > { %6414 = vmatpush3.bf16.xpose.msra.mxu0 %v2265_v9 }
 0x2e5   : > { %1512 = vrot.lane.b32.xlu1 %v8321_v43, %s7719_s24  ;;  %1510 = vrot.lane.b32.xlu0 %v8297_v27, %s7719_s24 }
 0x2e6   : > { %6749 = vmatprep.subr.msk.bf16.mxu0 %vm2221_vm1, %v6933_v44  ;;  %v6943_v44 = vld [vmem:[#allocation2 + $0x20] sm:$0xff]  }
 0x2e9   : > { %1378 = vrot.lane.b32.xlu1 %v8326_v49, %s7719_s24  ;;  %1376 = vrot.lane.b32.xlu0 %v8302_v33, %s7719_s24 }
 0x2ec   : > { %6416 = vmatpush3.bf16.xpose.msra.mxu0 %v2262_v63 }
 0x2ed   : > { %1573 = vrot.lane.b32.xlu1 %v8326_v49, %s7720_s14  ;;  %1571 = vrot.lane.b32.xlu0 %v8302_v33, %s7720_s14 }
 0x2ee   : > { %6750 = vmatprep.subr.msk.bf16.mxu0 %vm2221_vm1, %v6934_v21 }
 0x2f1   : > { %1768 = vrot.lane.b32.xlu1 %v8326_v49, %s7721_s16  ;;  %1766 = vrot.lane.b32.xlu0 %v8302_v33, %s7721_s16  ;;  %v2256_v33 = vsel %vm2221_vm1, %v6935_v52, 0  ;;  %v6936_v49 = vld [vmem:[#allocation3 + $0x10] sm:$0xff]  }
 0x2f2   : > { %v2253_v30 = vsel %vm2221_vm1, %v6936_v49, 0 }
 0x2f4   : > { %6418 = vmatpush3.bf16.xpose.msra.mxu0 %v2259_v45 }
 0x2f5   : > { %1522 = vrot.lane.b32.xlu0 %v8331_v29, %s7719_s24  ;;  %1524 = vrot.lane.b32.xlu1 %v8355_v5, %s7719_s24 }
 0x2f6   : > { %6751 = vmatprep.subr.msk.bf16.mxu0 %vm2221_vm1, %v6935_v52 }
 0x2f9   : > { %1441 = vrot.lane.b32.xlu0 %v8312_v40, %s7719_s24  ;;  %1443 = vrot.lane.b32.xlu1 %v8336_v53, %s7719_s24 }
 0x2fc   : > { %6420 = vmatpush3.bf16.xpose.msra.mxu0 %v2256_v33  ;;  %v6944_v33 = vld [vmem:[#allocation2 + $0x28] sm:$0xff]  }
 0x2fd   : > { %1636 = vrot.lane.b32.xlu0 %v8312_v40, %s7720_s14  ;;  %1638 = vrot.lane.b32.xlu1 %v8336_v53, %s7720_s14 }
 0x2fe   : > { %6752 = vmatprep.subr.msk.bf16.mxu0 %vm2221_vm1, %v6936_v49  ;;  %v6945_v49 = vld [vmem:[#allocation2 + $0x30] sm:$0xff]  }
 0x301   : > { %1831 = vrot.lane.b32.xlu0 %v8312_v40, %s7721_s16  ;;  %1833 = vrot.lane.b32.xlu1 %v8336_v53, %s7721_s16 }
 0x304   : > { %6422 = vmatpush3.bf16.xpose.msra.mxu0 %v2253_v30 }
 0x305   : > { %1520 = vrot.lane.b32.xlu1 %v8369_v10, %s7719_s24  ;;  %1518 = vrot.lane.b32.xlu0 %v8345_v56, %s7719_s24 }
 0x306   : > { %6753 = vmatprep.subr.msk.bf16.mxu0 %vm2221_vm1, %v6937_v54 }
 0x307   : > { %v1365_v23 = vpop.permute.xlu0 %1364 }
 0x308   : > { %1413 = vst.msk [vmem:[#allocation2 + $0x40] sm:$0xf] %vm1187_vm0, %v1365_v23  ;;  %v6946_v23 = vld [vmem:[#allocation2 + $0x38] sm:$0xff]  }
 0x309   : > { %1382 = vrot.lane.b32.xlu1 %v8373_v20, %s7719_s24  ;;  %1380 = vrot.lane.b32.xlu0 %v8350_v61, %s7719_s24 }
 0x30b   : > { %v1367_v40 = vpop.permute.xlu1 %1366  ;;  %v1560_v53 = vpop.permute.xlu0 %1559 }
 0x30c   : > { %1414 = vst.msk [vmem:[#allocation2 + $0x44] sm:$0xf] %vm1187_vm0, %v1367_v40  ;;  %1608 = vst.msk [vmem:[#allocation2 + $0x80] sm:$0xf] %vm1187_vm0, %v1560_v53  ;;  %6424 = vmatpush3.bf16.xpose.msra.mxu0 %v2250_v60 }
 0x30d   : > { %1577 = vrot.lane.b32.xlu1 %v8373_v20, %s7720_s14  ;;  %1575 = vrot.lane.b32.xlu0 %v8350_v61, %s7720_s14 }
 0x30e   : > { %6754 = vmatprep.subr.msk.bf16.mxu0 %vm2221_vm1, %v6938_v62 }
 0x30f   : > { %v1562_v38 = vpop.permute.xlu1 %1561  ;;  %v1755_v8 = vpop.permute.xlu0 %1754 }
 0x310   : > { %1609 = vst.msk [vmem:[#allocation2 + $0x84] sm:$0xf] %vm1187_vm0, %v1562_v38  ;;  %1803 = vst.msk [vmem:[#allocation2 + $0xc0] sm:$0xf] %vm1187_vm0, %v1755_v8 }
 0x311   : > { %1772 = vrot.lane.b32.xlu1 %v8373_v20, %s7721_s16  ;;  %1770 = vrot.lane.b32.xlu0 %v8350_v61, %s7721_s16 }
 0x313   : > { %v1757_v7 = vpop.permute.xlu1 %1756  ;;  %v1430_v41 = vpop.permute.xlu0 %1429  ;;  %v6939_v24 = vld [vmem:[#allocation2 + $0x40] sm:$0xff]  }
 0x314   : > { %1804 = vst.msk [vmem:[#allocation2 + $0xc4] sm:$0xf] %vm1187_vm0, %v1757_v7  ;;  %1478 = vst.msk [vmem:[#allocation3 + $0x40] sm:$0xf] %vm1187_vm0, %v1430_v41  ;;  %6426 = vmatpush3.bf16.xpose.msra.mxu0 %v2247_v25  ;;  %6459 = vmatprep.mubr.msk.bf16.mxu1 %vm2221_vm1, %v6939_v24 }
 0x315   : > { %1447 = vrot.lane.b32.xlu1 %v8380_v47, %s7719_s24  ;;  %1445 = vrot.lane.b32.xlu0 %v8360_v16, %s7719_s24 }
 0x317   : > { %v1432_v20 = vpop.permute.xlu1 %1431  ;;  %v1625_v61 = vpop.permute.xlu0 %1624  ;;  %v6947_v40 = vld [vmem:[#allocation2 + $0x80] sm:$0xff]  }
 0x318   : > { %1479 = vst.msk [vmem:[#allocation3 + $0x44] sm:$0xf] %vm1187_vm0, %v1432_v20  ;;  %1673 = vst.msk [vmem:[#allocation3 + $0x80] sm:$0xf] %vm1187_vm0, %v1625_v61 }
 0x319   : > { %1642 = vrot.lane.b32.xlu1 %v8380_v47, %s7720_s14  ;;  %1640 = vrot.lane.b32.xlu0 %v8360_v16, %s7720_s14 }
 0x31b   : > { %v1627_v12 = vpop.permute.xlu1 %1626  ;;  %v1820_v36 = vpop.permute.xlu0 %1819  ;;  %6428 = vmatmul.mubr.msk.bf16.vlgmr.msra.gmra.mxu0 %vm2221_vm1, %v6940_v22 }
 0x31c   : > { %1674 = vst.msk [vmem:[#allocation3 + $0x84] sm:$0xf] %vm1187_vm0, %v1627_v12  ;;  %1868 = vst.msk [vmem:[#allocation3 + $0xc0] sm:$0xf] %vm1187_vm0, %v1820_v36  ;;  %6431 = vmatprep.mubr.msk.bf16.mxu0 %vm2221_vm1, %v6941_v1 }
 0x31d   : > { %1837 = vrot.lane.b32.xlu1 %v8380_v47, %s7721_s16  ;;  %1835 = vrot.lane.b32.xlu0 %v8360_v16, %s7721_s16  ;;  %v6942_v16 = vld [vmem:[#allocation2 + $0x18] sm:$0xff]  }
 0x31f   : > { %v1822_v31 = vpop.permute.xlu1 %1821  ;;  %v1369_v59 = vpop.permute.xlu0 %1368 }
 0x320   : > { %1869 = vst.msk [vmem:[#allocation3 + $0xc4] sm:$0xf] %vm1187_vm0, %v1822_v31  ;;  %1415 = vst.msk [vmem:[#allocation2 + $0x48] sm:$0xf] %vm1187_vm0, %v1369_v59 }
 0x321   : > { %1386 = vrot.lane.b32.xlu1 %v8403_v42, %s7719_s24  ;;  %1384 = vrot.lane.b32.xlu0 %v8389_v35, %s7719_s24 }
 0x323   : > { %v1371_v47 = vpop.permute.xlu1 %1370  ;;  %v1564_v9 = vpop.permute.xlu0 %1563  ;;  %6432 = vmatmul.mubr.msk.bf16.gmra.mxu0 %vm2221_vm1, %v6942_v16 }
 0x324   : > { %1416 = vst.msk [vmem:[#allocation2 + $0x4c] sm:$0xf] %vm1187_vm0, %v1371_v47  ;;  %1610 = vst.msk [vmem:[#allocation2 + $0x88] sm:$0xf] %vm1187_vm0, %v1564_v9  ;;  %6435 = vmatprep.mubr.msk.bf16.mxu0 %vm2221_vm1, %v6943_v44 }
 0x325   : > { %1581 = vrot.lane.b32.xlu1 %v8403_v42, %s7720_s14  ;;  %1579 = vrot.lane.b32.xlu0 %v8389_v35, %s7720_s14 }
 0x327   : > { %v1566_v63 = vpop.permute.xlu1 %1565  ;;  %v1759_v21 = vpop.permute.xlu0 %1758 }
 0x328   : > { %1611 = vst.msk [vmem:[#allocation2 + $0x8c] sm:$0xf] %vm1187_vm0, %v1566_v63  ;;  %1805 = vst.msk [vmem:[#allocation2 + $0xc8] sm:$0xf] %vm1187_vm0, %v1759_v21 }
 0x329   : > { %1776 = vrot.lane.b32.xlu1 %v8403_v42, %s7721_s16  ;;  %1774 = vrot.lane.b32.xlu0 %v8389_v35, %s7721_s16 }
 0x32b   : > { %v1761_v45 = vpop.permute.xlu1 %1760  ;;  %v1507_v52 = vpop.permute.xlu0 %1506  ;;  %6436 = vmatmul.mubr.msk.bf16.gmra.mxu0 %vm2221_vm1, %v6944_v33 }
 0x32c   : > { %1806 = vst.msk [vmem:[#allocation2 + $0xcc] sm:$0xf] %vm1187_vm0, %v1761_v45  ;;  %1549 = vst.msk [vmem:[#allocation4 + $0x58] sm:$0xf] %vm1187_vm0, %v1507_v52  ;;  %6439 = vmatprep.mubr.msk.bf16.mxu0 %vm2221_vm1, %v6945_v49 }
 0x32d   : > { %1451 = vrot.lane.b32.xlu1 %v8408_v50, %s7719_s24  ;;  %1449 = vrot.lane.b32.xlu0 %v8394_v37, %s7719_s24 }
 0x32f   : > { %v1436_v42 = vpop.permute.xlu1 %1435  ;;  %v1434_v35 = vpop.permute.xlu0 %1433 }
 0x330   : > { %1481 = vst.msk [vmem:[#allocation3 + $0x4c] sm:$0xf] %vm1187_vm0, %v1436_v42  ;;  %1480 = vst.msk [vmem:[#allocation3 + $0x48] sm:$0xf] %vm1187_vm0, %v1434_v35 }
 0x331   : > { %1646 = vrot.lane.b32.xlu1 %v8408_v50, %s7720_s14  ;;  %1644 = vrot.lane.b32.xlu0 %v8394_v37, %s7720_s14 }
 0x333   : > { %v1631_v30 = vpop.permute.xlu1 %1630  ;;  %v1629_v54 = vpop.permute.xlu0 %1628  ;;  %6440 = vmatmul.mubr.msk.bf16.gmra.mxu0 %vm2221_vm1, %v6946_v23 }
 0x334   : > { %1676 = vst.msk [vmem:[#allocation3 + $0x8c] sm:$0xf] %vm1187_vm0, %v1631_v30  ;;  %1675 = vst.msk [vmem:[#allocation3 + $0x88] sm:$0xf] %vm1187_vm0, %v1629_v54  ;;  %6491 = vmatprep.mubr.msk.bf16.mxu0 %vm2221_vm1, %v6947_v40 }
 0x335   : > { %1841 = vrot.lane.b32.xlu1 %v8408_v50, %s7721_s16  ;;  %1839 = vrot.lane.b32.xlu0 %v8394_v37, %s7721_s16 }
 0x337   : > { %v1826_v53 = vpop.permute.xlu1 %1825  ;;  %v1824_v60 = vpop.permute.xlu0 %1823 }
 0x338   : > { %1871 = vst.msk [vmem:[#allocation3 + $0xcc] sm:$0xf] %vm1187_vm0, %v1826_v53  ;;  %1870 = vst.msk [vmem:[#allocation3 + $0xc8] sm:$0xf] %vm1187_vm0, %v1824_v60 }
 0x339   : > { %1453 = vrot.lane.b32.xlu1 %v8422_v19, %s7719_s24  ;;  %1388 = vrot.lane.b32.xlu0 %v8417_v4, %s7719_s24 }
 0x33b   : > { %v1375_v50 = vpop.permute.xlu1 %1374  ;;  %v1373_v62 = vpop.permute.xlu0 %1372 }
 0x33c   : > { %1418 = vst.msk [vmem:[#allocation2 + $0x54] sm:$0xf] %vm1187_vm0, %v1375_v50  ;;  %1417 = vst.msk [vmem:[#allocation2 + $0x50] sm:$0xf] %vm1187_vm0, %v1373_v62 }
 0x33d   : > { %1390 = vrot.lane.b32.xlu1 %v8431_v2, %s7719_s24  ;;  %1583 = vrot.lane.b32.xlu0 %v8417_v4, %s7720_s14 }
 0x33f   : > { %v1570_v37 = vpop.permute.xlu1 %1569  ;;  %v1568_v38 = vpop.permute.xlu0 %1567 }
 0x340   : > { %1613 = vst.msk [vmem:[#allocation2 + $0x94] sm:$0xf] %vm1187_vm0, %v1570_v37  ;;  %1612 = vst.msk [vmem:[#allocation2 + $0x90] sm:$0xf] %vm1187_vm0, %v1568_v38 }
 0x341   : > { %1585 = vrot.lane.b32.xlu1 %v8431_v2, %s7720_s14  ;;  %1778 = vrot.lane.b32.xlu0 %v8417_v4, %s7721_s16 }
 0x343   : > { %v1765_v8 = vpop.permute.xlu1 %1764  ;;  %v1763_v7 = vpop.permute.xlu0 %1762 }
 0x344   : > { %1808 = vst.msk [vmem:[#allocation2 + $0xd4] sm:$0xf] %vm1187_vm0, %v1765_v8  ;;  %1807 = vst.msk [vmem:[#allocation2 + $0xd0] sm:$0xf] %vm1187_vm0, %v1763_v7 }
 0x345   : > { %1780 = vrot.lane.b32.xlu1 %v8431_v2, %s7721_s16  ;;  %1648 = vrot.lane.b32.xlu0 %v8422_v19, %s7720_s14 }
 0x347   : > { %v1517_v41 = vpop.permute.xlu1 %1516  ;;  %v1515_v24 = vpop.permute.xlu0 %1514 }
 0x348   : > { %1554 = vst.msk [vmem:[#allocation4 + $0x6c] sm:$0xf] %vm1187_vm0, %v1517_v41  ;;  %1553 = vst.msk [vmem:[#allocation4 + $0x68] sm:$0xf] %vm1187_vm0, %v1515_v24 }
 0x349   : > { %1455 = vrot.lane.b32.xlu1 %v8436_v18, %s7719_s24  ;;  %1843 = vrot.lane.b32.xlu0 %v8422_v19, %s7721_s16 }
 0x34b   : > { %v1440_v4 = vpop.permute.xlu1 %1439  ;;  %v1438_v25 = vpop.permute.xlu0 %1437 }
 0x34c   : > { %1483 = vst.msk [vmem:[#allocation3 + $0x54] sm:$0xf] %vm1187_vm0, %v1440_v4  ;;  %1482 = vst.msk [vmem:[#allocation3 + $0x50] sm:$0xf] %vm1187_vm0, %v1438_v25 }
 0x34d   : > { %1650 = vrot.lane.b32.xlu1 %v8436_v18, %s7720_s14  ;;  %1392 = vrot.lane.b32.xlu0 %v8445_v11, %s7719_s24 }
 0x34f   : > { %v1635_v2 = vpop.permute.xlu1 %1634  ;;  %v1633_v20 = vpop.permute.xlu0 %1632 }
 0x350   : > { %1678 = vst.msk [vmem:[#allocation3 + $0x94] sm:$0xf] %vm1187_vm0, %v1635_v2  ;;  %1677 = vst.msk [vmem:[#allocation3 + $0x90] sm:$0xf] %vm1187_vm0, %v1633_v20 }
 0x351   : > { %1845 = vrot.lane.b32.xlu1 %v8436_v18, %s7721_s16  ;;  %1587 = vrot.lane.b32.xlu0 %v8445_v11, %s7720_s14 }
 0x353   : > { %v1830_v19 = vpop.permute.xlu1 %1829  ;;  %v1828_v61 = vpop.permute.xlu0 %1827 }
 0x354   : > { %1873 = vst.msk [vmem:[#allocation3 + $0xd4] sm:$0xf] %vm1187_vm0, %v1830_v19  ;;  %1872 = vst.msk [vmem:[#allocation3 + $0xd0] sm:$0xf] %vm1187_vm0, %v1828_v61 }
 0x355   : > { %1394 = vrot.lane.b32.xlu1 %v8459_v57, %s7719_s24  ;;  %1782 = vrot.lane.b32.xlu0 %v8445_v11, %s7721_s16 }
 0x357   : > { %v1513_v12 = vpop.permute.xlu1 %1512  ;;  %v1511_v36 = vpop.permute.xlu0 %1510 }
 0x358   : > { %1552 = vst.msk [vmem:[#allocation4 + $0x64] sm:$0xf] %vm1187_vm0, %v1513_v12  ;;  %1551 = vst.msk [vmem:[#allocation4 + $0x60] sm:$0xf] %vm1187_vm0, %v1511_v36 }
 0x359   : > { %1589 = vrot.lane.b32.xlu1 %v8459_v57, %s7720_s14  ;;  %1457 = vrot.lane.b32.xlu0 %v8450_v28, %s7719_s24 }
 0x35b   : > { %v1379_v18 = vpop.permute.xlu1 %1378  ;;  %v1377_v22 = vpop.permute.xlu0 %1376 }
 0x35c   : > { %1420 = vst.msk [vmem:[#allocation2 + $0x5c] sm:$0xf] %vm1187_vm0, %v1379_v18  ;;  %1419 = vst.msk [vmem:[#allocation2 + $0x58] sm:$0xf] %vm1187_vm0, %v1377_v22 }
 0x35d   : > { %1784 = vrot.lane.b32.xlu1 %v8459_v57, %s7721_s16  ;;  %1652 = vrot.lane.b32.xlu0 %v8450_v28, %s7720_s14 }
 0x35f   : > { %v1574_v11 = vpop.permute.xlu1 %1573  ;;  %v1572_v1 = vpop.permute.xlu0 %1571 }
 0x360   : > { %1615 = vst.msk [vmem:[#allocation2 + $0x9c] sm:$0xf] %vm1187_vm0, %v1574_v11  ;;  %1614 = vst.msk [vmem:[#allocation2 + $0x98] sm:$0xf] %vm1187_vm0, %v1572_v1 }
 0x361   : > { %1459 = vrot.lane.b32.xlu1 %v8464_v3, %s7719_s24  ;;  %1847 = vrot.lane.b32.xlu0 %v8450_v28, %s7721_s16 }
 0x363   : > { %v1769_v31 = vpop.permute.xlu1 %1768  ;;  %v1767_v59 = vpop.permute.xlu0 %1766 }
 0x364   : > { %1810 = vst.msk [vmem:[#allocation2 + $0xdc] sm:$0xf] %vm1187_vm0, %v1769_v31  ;;  %1809 = vst.msk [vmem:[#allocation2 + $0xd8] sm:$0xf] %vm1187_vm0, %v1767_v59 }
 0x365   : > { %1508 = vrot.lane.b32.xlu1 %v8259_v13, %s7719_s24  ;;  %1502 = vrot.lane.b32.xlu0 %v8248_v55, %s7719_s24 }
 0x367   : > { %v1525_v57 = vpop.permute.xlu1 %1524  ;;  %v1523_v47 = vpop.permute.xlu0 %1522 }
 0x368   : > { %1558 = vst.msk [vmem:[#allocation4 + $0x7c] sm:$0xf] %vm1187_vm0, %v1525_v57  ;;  %1557 = vst.msk [vmem:[#allocation4 + $0x78] sm:$0xf] %vm1187_vm0, %v1523_v47 }
 0x369   : > { %1504 = vrot.lane.b32.xlu1 %v8273_v6, %s7719_s24  ;;  %1498 = vrot.lane.b32.xlu0 %v8192_v46, %s7719_s24 }
 0x36b   : > { %v1444_v28 = vpop.permute.xlu1 %1443  ;;  %v1442_v9 = vpop.permute.xlu0 %1441 }
 0x36c   : > { %1485 = vst.msk [vmem:[#allocation3 + $0x5c] sm:$0xf] %vm1187_vm0, %v1444_v28  ;;  %1484 = vst.msk [vmem:[#allocation3 + $0x58] sm:$0xf] %vm1187_vm0, %v1442_v9 }
 0x36d   : > { %1500 = vrot.lane.b32.xlu1 %v8213_v14, %s7719_s24  ;;  %1494 = vrot.lane.b32.xlu0 %v8203_v34, %s7719_s24 }
 0x36f   : > { %v1639_v16 = vpop.permute.xlu1 %1638  ;;  %v1637_v44 = vpop.permute.xlu0 %1636 }
 0x370   : > { %1680 = vst.msk [vmem:[#allocation3 + $0x9c] sm:$0xf] %vm1187_vm0, %v1639_v16  ;;  %1679 = vst.msk [vmem:[#allocation3 + $0x98] sm:$0xf] %vm1187_vm0, %v1637_v44 }
 0x371   : > { %1496 = vrot.lane.b32.xlu1 %v8225_v58, %s7719_s24  ;;  %1717 = vrot.lane.b32.xlu0 %v8331_v29, %s7720_s14  ;;  %s10068_s24 = scalar_lea.hbm %s10126_s11, %s6130_s7 }
 0x373   : > { %v1834_v63 = vpop.permute.xlu1 %1833  ;;  %v1832_v21 = vpop.permute.xlu0 %1831 }
 0x374   : > { %1875 = vst.msk [vmem:[#allocation3 + $0xdc] sm:$0xf] %vm1187_vm0, %v1834_v63  ;;  %1874 = vst.msk [vmem:[#allocation3 + $0xd8] sm:$0xf] %vm1187_vm0, %v1832_v21 }
 0x375   : > { %1719 = vrot.lane.b32.xlu1 %v8355_v5, %s7720_s14  ;;  %1713 = vrot.lane.b32.xlu0 %v8345_v56, %s7720_s14 }
 0x377   : > { %v1521_v45 = vpop.permute.xlu1 %1520  ;;  %v1519_v52 = vpop.permute.xlu0 %1518 }
 0x378   : > { %1556 = vst.msk [vmem:[#allocation4 + $0x74] sm:$0xf] %vm1187_vm0, %v1521_v45  ;;  %1555 = vst.msk [vmem:[#allocation4 + $0x70] sm:$0xf] %vm1187_vm0, %v1519_v52  ;;  %v8791_v52 = vand.u32 127, %v770_v32 }
 0x379   : > { %1912 = vrot.lane.b32.xlu1 %v8331_v29, %s7721_s16  ;;  %1908 = vrot.lane.b32.xlu0 %v8345_v56, %s7721_s16 }
 0x37a   : > { %vm3044_vm2 = vcmp.lt.s32.totalorder %v8791_v52, 16 }
 0x37b   : > { %v1383_v33 = vpop.permute.xlu1 %1382  ;;  %v1381_v49 = vpop.permute.xlu0 %1380 }
 0x37c   : > { %1422 = vst.msk [vmem:[#allocation2 + $0x64] sm:$0xf] %vm1187_vm0, %v1383_v33  ;;  %1421 = vst.msk [vmem:[#allocation2 + $0x60] sm:$0xf] %vm1187_vm0, %v1381_v49 }
 0x37d   : > { %1914 = vrot.lane.b32.xlu1 %v8355_v5, %s7721_s16  ;;  %1709 = vrot.lane.b32.xlu0 %v8283_v39, %s7720_s14 }
 0x37f   : > { %v1578_v42 = vpop.permute.xlu1 %1577  ;;  %v1576_v35 = vpop.permute.xlu0 %1575 }
 0x380   : > { %1617 = vst.msk [vmem:[#allocation2 + $0xa4] sm:$0xf] %vm1187_vm0, %v1578_v42  ;;  %1616 = vst.msk [vmem:[#allocation2 + $0xa0] sm:$0xf] %vm1187_vm0, %v1576_v35 }
 0x381   : > { %1715 = vrot.lane.b32.xlu1 %v8369_v10, %s7720_s14  ;;  %1705 = vrot.lane.b32.xlu0 %v8297_v27, %s7720_s14 }
 0x383   : > { %v1773_v29 = vpop.permute.xlu1 %1772  ;;  %v1771_v56 = vpop.permute.xlu0 %1770 }
 0x384   : > { %1812 = vst.msk [vmem:[#allocation2 + $0xe4] sm:$0xf] %vm1187_vm0, %v1773_v29  ;;  %1811 = vst.msk [vmem:[#allocation2 + $0xe0] sm:$0xf] %vm1187_vm0, %v1771_v56 }
 0x385   : > { %1910 = vrot.lane.b32.xlu1 %v8369_v10, %s7721_s16 }
 0x387   : > { %v1448_v5 = vpop.permute.xlu1 %1447  ;;  %v1446_v30 = vpop.permute.xlu0 %1445 }
 0x388   : > { %1487 = vst.msk [vmem:[#allocation3 + $0x64] sm:$0xf] %vm1187_vm0, %v1448_v5  ;;  %1486 = vst.msk [vmem:[#allocation3 + $0x60] sm:$0xf] %vm1187_vm0, %v1446_v30 }
 0x389   : > { %1711 = vrot.lane.b32.xlu1 %v8307_v17, %s7720_s14 }
 0x38b   : > { %v1643_v54 = vpop.permute.xlu1 %1642  ;;  %v1641_v23 = vpop.permute.xlu0 %1640 }
 0x38c   : > { %1682 = vst.msk [vmem:[#allocation3 + $0xa4] sm:$0xf] %vm1187_vm0, %v1643_v54  ;;  %1681 = vst.msk [vmem:[#allocation3 + $0xa0] sm:$0xf] %vm1187_vm0, %v1641_v23 }
 0x38d   : > { %1904 = vrot.lane.b32.xlu1 %v8283_v39, %s7721_s16 }
 0x38f   : > { %v1838_v40 = vpop.permute.xlu1 %1837  ;;  %v1836_v10 = vpop.permute.xlu0 %1835 }
 0x390   : > { %1877 = vst.msk [vmem:[#allocation3 + $0xe4] sm:$0xf] %vm1187_vm0, %v1838_v40  ;;  %1876 = vst.msk [vmem:[#allocation3 + $0xe0] sm:$0xf] %vm1187_vm0, %v1836_v10 }
 0x391   : > { %1906 = vrot.lane.b32.xlu1 %v8307_v17, %s7721_s16 }
 0x393   : > { %v1387_v53 = vpop.permute.xlu1 %1386  ;;  %v1385_v60 = vpop.permute.xlu0 %1384 }
 0x394   : > { %1424 = vst.msk [vmem:[#allocation2 + $0x6c] sm:$0xf] %vm1187_vm0, %v1387_v53  ;;  %1423 = vst.msk [vmem:[#allocation2 + $0x68] sm:$0xf] %vm1187_vm0, %v1385_v60 }
 0x395   : > { %1707 = vrot.lane.b32.xlu1 %v8321_v43, %s7720_s14 }
 0x397   : > { %v1582_v50 = vpop.permute.xlu1 %1581  ;;  %v1580_v39 = vpop.permute.xlu0 %1579 }
 0x398   : > { %1619 = vst.msk [vmem:[#allocation2 + $0xac] sm:$0xf] %vm1187_vm0, %v1582_v50  ;;  %1618 = vst.msk [vmem:[#allocation2 + $0xa8] sm:$0xf] %vm1187_vm0, %v1580_v39 }
 0x399   : > { %1654 = vrot.lane.b32.xlu1 %v8464_v3, %s7720_s14 }
 0x39b   : > { %v1777_v62 = vpop.permute.xlu1 %1776  ;;  %v1775_v17 = vpop.permute.xlu0 %1774 }
 0x39c   : > { %1814 = vst.msk [vmem:[#allocation2 + $0xec] sm:$0xf] %vm1187_vm0, %v1777_v62  ;;  %1813 = vst.msk [vmem:[#allocation2 + $0xe8] sm:$0xf] %vm1187_vm0, %v1775_v17 }
 0x39d   : > { %1849 = vrot.lane.b32.xlu1 %v8464_v3, %s7721_s16 }
 0x39f   : > { %v1452_v37 = vpop.permute.xlu1 %1451  ;;  %v1450_v38 = vpop.permute.xlu0 %1449 }
 0x3a0   : > { %1489 = vst.msk [vmem:[#allocation3 + $0x6c] sm:$0xf] %vm1187_vm0, %v1452_v37  ;;  %1488 = vst.msk [vmem:[#allocation3 + $0x68] sm:$0xf] %vm1187_vm0, %v1450_v38 }
 0x3a3   : > { %v1647_v8 = vpop.permute.xlu1 %1646  ;;  %v1645_v7 = vpop.permute.xlu0 %1644 }
 0x3a4   : > { %1684 = vst.msk [vmem:[#allocation3 + $0xac] sm:$0xf] %vm1187_vm0, %v1647_v8  ;;  %1683 = vst.msk [vmem:[#allocation3 + $0xa8] sm:$0xf] %vm1187_vm0, %v1645_v7 }
 0x3a7   : > { %v1842_v41 = vpop.permute.xlu1 %1841  ;;  %v1840_v24 = vpop.permute.xlu0 %1839  ;;  %v6950_v62 = vld [vmem:[#allocation3 + $0x68] sm:$0xff]  }
 0x3a8   : > { %1879 = vst.msk [vmem:[#allocation3 + $0xec] sm:$0xf] %vm1187_vm0, %v1842_v41  ;;  %1878 = vst.msk [vmem:[#allocation3 + $0xe8] sm:$0xf] %vm1187_vm0, %v1840_v24 }
 0x3ab   : > { %v1454_v4 = vpop.permute.xlu1 %1453  ;;  %v1389_v3 = vpop.permute.xlu0 %1388 }
 0x3ac   : > { %1490 = vst.msk [vmem:[#allocation3 + $0x70] sm:$0xf] %vm1187_vm0, %v1454_v4  ;;  %1425 = vst.msk [vmem:[#allocation2 + $0x70] sm:$0xf] %vm1187_vm0, %v1389_v3 }
 0x3af   : > { %v1391_v25 = vpop.permute.xlu1 %1390  ;;  %v1584_v2 = vpop.permute.xlu0 %1583 }
 0x3b0   : > { %1426 = vst.msk [vmem:[#allocation2 + $0x74] sm:$0xf] %vm1187_vm0, %v1391_v25  ;;  %1620 = vst.msk [vmem:[#allocation2 + $0xb0] sm:$0xf] %vm1187_vm0, %v1584_v2 }
 0x3b3   : > { %v1586_v20 = vpop.permute.xlu1 %1585  ;;  %v1779_v19 = vpop.permute.xlu0 %1778 }
 0x3b4   : > { %1621 = vst.msk [vmem:[#allocation2 + $0xb4] sm:$0xf] %vm1187_vm0, %v1586_v20  ;;  %1815 = vst.msk [vmem:[#allocation2 + $0xf0] sm:$0xf] %vm1187_vm0, %v1779_v19  ;;  %v2487_v20 = vsel %vm2221_vm1, %v6950_v62, 0  ;;  %v6951_v19 = vld [vmem:[#allocation3 + $0x60] sm:$0xff]  }
 0x3b7   : > { %v1781_v61 = vpop.permute.xlu1 %1780  ;;  %v1649_v12 = vpop.permute.xlu0 %1648 }
 0x3b8   : > { %1816 = vst.msk [vmem:[#allocation2 + $0xf4] sm:$0xf] %vm1187_vm0, %v1781_v61  ;;  %1685 = vst.msk [vmem:[#allocation3 + $0xb0] sm:$0xf] %vm1187_vm0, %v1649_v12 }
 0x3bb   : > { %v1456_v36 = vpop.permute.xlu1 %1455  ;;  %v1844_v18 = vpop.permute.xlu0 %1843 }
 0x3bc   : > { %1491 = vst.msk [vmem:[#allocation3 + $0x74] sm:$0xf] %vm1187_vm0, %v1456_v36  ;;  %1880 = vst.msk [vmem:[#allocation3 + $0xf0] sm:$0xf] %vm1187_vm0, %v1844_v18 }
 0x3bf   : > { %v1651_v22 = vpop.permute.xlu1 %1650  ;;  %v1393_v11 = vpop.permute.xlu0 %1392 }
 0x3c0   : > { %1686 = vst.msk [vmem:[#allocation3 + $0xb4] sm:$0xf] %vm1187_vm0, %v1651_v22  ;;  %1427 = vst.msk [vmem:[#allocation2 + $0x78] sm:$0xf] %vm1187_vm0, %v1393_v11 }
 0x3c3   : > { %v1846_v1 = vpop.permute.xlu1 %1845  ;;  %v1588_v31 = vpop.permute.xlu0 %1587  ;;  %v6949_v29 = vld [vmem:[#allocation3 + $0x70] sm:$0xff]  }
 0x3c4   : > { %1881 = vst.msk [vmem:[#allocation3 + $0xf4] sm:$0xf] %vm1187_vm0, %v1846_v1  ;;  %1622 = vst.msk [vmem:[#allocation2 + $0xb8] sm:$0xf] %vm1187_vm0, %v1588_v31  ;;  %v2490_v39 = vsel %vm2221_vm1, %v6949_v29, 0 }
 0x3c7   : > { %v1395_v59 = vpop.permute.xlu1 %1394  ;;  %v1783_v57 = vpop.permute.xlu0 %1782 }
 0x3c8   : > { %1428 = vst.msk [vmem:[#allocation2 + $0x7c] sm:$0xf] %vm1187_vm0, %v1395_v59  ;;  %1817 = vst.msk [vmem:[#allocation2 + $0xf8] sm:$0xf] %vm1187_vm0, %v1783_v57 }
 0x3cb   : > { %v1590_v47 = vpop.permute.xlu1 %1589  ;;  %v1458_v28 = vpop.permute.xlu0 %1457 }
 0x3cc   : > { %1623 = vst.msk [vmem:[#allocation2 + $0xbc] sm:$0xf] %vm1187_vm0, %v1590_v47  ;;  %1492 = vst.msk [vmem:[#allocation3 + $0x78] sm:$0xf] %vm1187_vm0, %v1458_v28 }
 0x3cf   : > { %v1785_v9 = vpop.permute.xlu1 %1784  ;;  %v1653_v16 = vpop.permute.xlu0 %1652 }
 0x3d0   : > { %1818 = vst.msk [vmem:[#allocation2 + $0xfc] sm:$0xf] %vm1187_vm0, %v1785_v9  ;;  %1687 = vst.msk [vmem:[#allocation3 + $0xb8] sm:$0xf] %vm1187_vm0, %v1653_v16  ;;  %v2484_v9 = vsel %vm2221_vm1, %v6951_v19, 0  ;;  %v6952_v16 = vld [vmem:[#allocation3 + $0x58] sm:$0xff]  }
 0x3d3   : > { %v1460_v44 = vpop.permute.xlu1 %1459  ;;  %v1848_v63 = vpop.permute.xlu0 %1847 }
 0x3d4   : > { %1493 = vst.msk [vmem:[#allocation3 + $0x7c] sm:$0xf] %vm1187_vm0, %v1460_v44  ;;  %1882 = vst.msk [vmem:[#allocation3 + $0xf8] sm:$0xf] %vm1187_vm0, %v1848_v63 }
 0x3d7   : > { %v1509_v21 = vpop.permute.xlu1 %1508  ;;  %v1503_v45 = vpop.permute.xlu0 %1502 }
 0x3d8   : > { %1550 = vst.msk [vmem:[#allocation4 + $0x5c] sm:$0xf] %vm1187_vm0, %v1509_v21  ;;  %1547 = vst.msk [vmem:[#allocation4 + $0x50] sm:$0xf] %vm1187_vm0, %v1503_v45 }
 0x3db   : > { %v1505_v33 = vpop.permute.xlu1 %1504  ;;  %v1499_v49 = vpop.permute.xlu0 %1498  ;;  %v6948_v42 = vld [vmem:[#allocation3 + $0x78] sm:$0xff]  }
 0x3dc   : > { %1548 = vst.msk [vmem:[#allocation4 + $0x54] sm:$0xf] %vm1187_vm0, %v1505_v33  ;;  %1545 = vst.msk [vmem:[#allocation4 + $0x48] sm:$0xf] %vm1187_vm0, %v1499_v49  ;;  %6755 = vmatprep.subr.msk.bf16.mxu1 %vm2221_vm1, %v6948_v42  ;;  %v2493_v35 = vsel %vm2221_vm1, %v6948_v42, 0  ;;  %v6429_v32 = vpop.f32.mrf.mxu0 }
 0x3dd   : > { %6444 = vmatpush3.bf16.xpose.msra.mxu1 %v2493_v35  ;;  %v8802_v56 = vsel %vm3044_vm2, %v6429_v32, -1e+30 }
 0x3de   : > { %6756 = vmatprep.subr.msk.bf16.mxu1 %vm2221_vm1, %v6949_v29  ;;  %v2304_v54 = vpop.f32.mrf.mxu0  ;;  %3115 = vmax.xlane.f32.xlu0 %v8802_v56 }
 0x3df   : > { %v1501_v5 = vpop.permute.xlu1 %1500  ;;  %v1495_v30 = vpop.permute.xlu0 %1494  ;;  %v8810_v40 = vsel %vm3044_vm2, %v2304_v54, -1e+30 }
 0x3e0   : > { %1546 = vst.msk [vmem:[#allocation4 + $0x4c] sm:$0xf] %vm1187_vm0, %v1501_v5  ;;  %1543 = vst.msk [vmem:[#allocation4 + $0x40] sm:$0xf] %vm1187_vm0, %v1495_v30  ;;  %v6430_v23 = vpop.f32.mrf.mxu0  ;;  %v2481_v5 = vsel %vm2221_vm1, %v6952_v16, 0  ;;  %v6953_v30 = vld [vmem:[#allocation3 + $0x50] sm:$0xff]  }
 0x3e1   : > { %v8823_v37 = vsel %vm3044_vm2, %v6430_v23, -1e+30 }
 0x3e2   : > { %v2307_v60 = vpop.f32.mrf.mxu0  ;;  %3111 = vmax.xlane.f32.xlu0 %v8810_v40 }
 0x3e3   : > { %v1497_v10 = vpop.permute.xlu1 %1496  ;;  %v1718_v53 = vpop.permute.xlu0 %1717  ;;  %v8817_v50 = vsel %vm3044_vm2, %v2307_v60, -1e+30  ;;  %v2478_v60 = vsel %vm2221_vm1, %v6953_v30, 0 }
 0x3e4   : > { %1544 = vst.msk [vmem:[#allocation4 + $0x44] sm:$0xf] %vm1187_vm0, %v1497_v10  ;;  %1752 = vst.msk [vmem:[#allocation4 + $0xb8] sm:$0xf] %vm1187_vm0, %v1718_v53  ;;  %3113 = vmax.xlane.f32.xlu1 %v8817_v50  ;;  %v6433_v17 = vpop.f32.mrf.mxu0 }
 0x3e5   : > { %6446 = vmatpush3.bf16.xpose.msra.mxu1 %v2490_v39  ;;  %v8831_v41 = vsel %vm3044_vm2, %v6433_v17, -1e+30  ;;  %v6954_v39 = vld [vmem:[#allocation3 + $0x48] sm:$0xff]  }
 0x3e6   : > { %6757 = vmatprep.subr.msk.bf16.mxu1 %vm2221_vm1, %v6950_v62  ;;  %v2320_v7 = vpop.f32.mrf.mxu0  ;;  %3117 = vmax.xlane.f32.xlu0 %v8823_v37 }
 0x3e7   : > { %v1720_v38 = vpop.permute.xlu1 %1719  ;;  %v1714_v8 = vpop.permute.xlu0 %1713  ;;  %v8844_v12 = vsel %vm3044_vm2, %v2320_v7, -1e+30 }
 0x3e8   : > { %1753 = vst.msk [vmem:[#allocation4 + $0xbc] sm:$0xf] %vm1187_vm0, %v1720_v38  ;;  %1750 = vst.msk [vmem:[#allocation4 + $0xb0] sm:$0xf] %vm1187_vm0, %v1714_v8  ;;  %v6434_v24 = vpop.f32.mrf.mxu0  ;;  %v2475_v38 = vsel %vm2221_vm1, %v6954_v39, 0  ;;  %v6955_v8 = vld [vmem:[#allocation3 + $0x40] sm:$0xff]  }
 0x3e9   : > { %v8835_v4 = vsel %vm3044_vm2, %v6434_v24, -1e+30 }
 0x3ea   : > { %3125 = vmax.xlane.f32.xlu1 %v8835_v4  ;;  %v2323_v2 = vpop.f32.mrf.mxu0  ;;  %3123 = vmax.xlane.f32.xlu0 %v8831_v41 }
 0x3eb   : > { %v1913_v3 = vpop.permute.xlu1 %1912  ;;  %v1909_v25 = vpop.permute.xlu0 %1908  ;;  %v8848_v18 = vsel %vm3044_vm2, %v2323_v2, -1e+30  ;;  %v6957_v2 = vld [vmem:[#allocation3 + $0xb0] sm:$0xff]  }
 0x3ec   : > { %1947 = vst.msk [vmem:[#allocation4 + $0xf8] sm:$0xf] %vm1187_vm0, %v1913_v3  ;;  %1945 = vst.msk [vmem:[#allocation4 + $0xf0] sm:$0xf] %vm1187_vm0, %v1909_v25  ;;  %v6437_v61 = vpop.f32.mrf.mxu0  ;;  %v2472_v3 = vsel %vm2221_vm1, %v6955_v8, 0 }
 0x3ed   : > { %6448 = vmatpush3.bf16.xpose.msra.mxu1 %v2487_v20  ;;  %v8857_v1 = vsel %vm3044_vm2, %v6437_v61, -1e+30  ;;  %v6960_v61 = vld [vmem:[#allocation2 + $0x50] sm:$0xff]  }
 0x3ee   : > { %6758 = vmatprep.subr.msk.bf16.mxu1 %vm2221_vm1, %v6951_v19  ;;  %3121 = vmax.xlane.f32.xlu1 %v8848_v18  ;;  %v2336_v11 = vpop.f32.mrf.mxu0  ;;  %v6959_v19 = vld [vmem:[#allocation2 + $0x48] sm:$0xff]  }
 0x3ef   : > { %v1915_v36 = vpop.permute.xlu1 %1914  ;;  %v1710_v22 = vpop.permute.xlu0 %1709  ;;  %3119 = vmax.xlane.f32.xlu0 %v8844_v12  ;;  %v8870_v63 = vsel %vm3044_vm2, %v2336_v11, -1e+30 }
 0x3f0   : > { %1948 = vst.msk [vmem:[#allocation4 + $0xfc] sm:$0xf] %vm1187_vm0, %v1915_v36  ;;  %1748 = vst.msk [vmem:[#allocation4 + $0xa8] sm:$0xf] %vm1187_vm0, %v1710_v22  ;;  %v6438_v31 = vpop.f32.mrf.mxu0  ;;  %v2715_v36 = vsel %vm2221_vm1, %v6957_v2, 0  ;;  %v6961_v22 = vld [vmem:[#allocation3 + $0xa8] sm:$0xff]  }
 0x3f1   : > { %v8861_v59 = vsel %vm3044_vm2, %v6438_v31, -1e+30  ;;  %v6962_v31 = vld [vmem:[#allocation3 + $0xf0] sm:$0xff]  }
 0x3f2   : > { %3133 = vmax.xlane.f32.xlu1 %v8861_v59  ;;  %v2339_v28 = vpop.f32.mrf.mxu0 }
 0x3f3   : > { %v1716_v57 = vpop.permute.xlu1 %1715  ;;  %v1706_v47 = vpop.permute.xlu0 %1705  ;;  %3131 = vmax.xlane.f32.xlu0 %v8857_v1  ;;  %v8874_v45 = vsel %vm3044_vm2, %v2339_v28, -1e+30  ;;  %v2712_v28 = vsel %vm2221_vm1, %v6961_v22, 0 }
 0x3f4   : > { %1751 = vst.msk [vmem:[#allocation4 + $0xb4] sm:$0xf] %vm1187_vm0, %v1716_v57  ;;  %1746 = vst.msk [vmem:[#allocation4 + $0xa0] sm:$0xf] %vm1187_vm0, %v1706_v47  ;;  %v6441_v44 = vpop.f32.mrf.mxu0  ;;  %v6963_v57 = vld [vmem:[#allocation2 + $0x58] sm:$0xff]   ;;  %v6964_v47 = vld [vmem:[#allocation2 + $0x60] sm:$0xff]  }
 0x3f5   : > { %6450 = vmatpush3.bf16.xpose.msra.mxu1 %v2484_v9  ;;  %v8882_v42 = vsel %vm3044_vm2, %v6441_v44, -1e+30  ;;  %v6965_v9 = vld [vmem:[#allocation3 + $0xa0] sm:$0xff]   ;;  %v6966_v44 = vld [vmem:[#allocation3 + $0xe8] sm:$0xff]  }
 0x3f6   : > { %6759 = vmatprep.subr.msk.bf16.mxu1 %vm2221_vm1, %v6952_v16  ;;  %3129 = vmax.xlane.f32.xlu1 %v8874_v45  ;;  %v2352_v33 = vpop.f32.mrf.mxu0  ;;  %v2940_v16 = vsel %vm2221_vm1, %v6962_v31, 0 }
 0x3f7   : > { %v1911_v21 = vpop.permute.xlu1 %1910  ;;  %3127 = vmax.xlane.f32.xlu0 %v8870_v63  ;;  %v8894_v54 = vsel %vm3044_vm2, %v2352_v33, -1e+30  ;;  %v6968_v33 = vld [vmem:[#allocation2 + $0x70] sm:$0xff]  }
 0x3f8   : > { %1946 = vst.msk [vmem:[#allocation4 + $0xf4] sm:$0xf] %vm1187_vm0, %v1911_v21  ;;  %v6442_v49 = vpop.f32.mrf.mxu0  ;;  %v6967_v21 = vld [vmem:[#allocation2 + $0x68] sm:$0xff]  }
 0x3f9   : > { %v8886_v35 = vsel %vm3044_vm2, %v6442_v49, -1e+30  ;;  %v2709_v49 = vsel %vm2221_vm1, %v6965_v9, 0 }
 0x3fa   : > { %3141 = vmax.xlane.f32.xlu1 %v8886_v35  ;;  %v2355_v32 = vpop.f32.mrf.mxu0 }
 0x3fb   : > { %v1712_v29 = vpop.permute.xlu1 %1711  ;;  %3139 = vmax.xlane.f32.xlu0 %v8882_v42  ;;  %v8898_v10 = vsel %vm3044_vm2, %v2355_v32, -1e+30  ;;  %v2937_v32 = vsel %vm2221_vm1, %v6966_v44, 0 }
 0x3fc   : > { %1749 = vst.msk [vmem:[#allocation4 + $0xac] sm:$0xf] %vm1187_vm0, %v1712_v29  ;;  %v6969_v29 = vld [vmem:[#allocation3 + $0x98] sm:$0xff]  }
 0x3fd   : > { %6452 = vmatpush3.bf16.xpose.msra.mxu1 %v2481_v5  ;;  %v6970_v5 = vld [vmem:[#allocation3 + $0xe0] sm:$0xff]  }
 0x3fe   : > { %6760 = vmatprep.subr.msk.bf16.mxu1 %vm2221_vm1, %v6953_v30  ;;  %3137 = vmax.xlane.f32.xlu1 %v8898_v10  ;;  %v6971_v30 = vld [vmem:[#allocation2 + $0x78] sm:$0xff]  }
 0x3ff   : > { %v1905_v23 = vpop.permute.xlu1 %1904  ;;  %3135 = vmax.xlane.f32.xlu0 %v8894_v54 }
 0x400   : > { %1943 = vst.msk [vmem:[#allocation4 + $0xe8] sm:$0xf] %vm1187_vm0, %v1905_v23  ;;  %v6972_v23 = vld [vmem:[#allocation2 + $0xc0] sm:$0xff]  }
 0x403   : > { %v1907_v53 = vpop.permute.xlu1 %1906 }
 0x404   : > { %1944 = vst.msk [vmem:[#allocation4 + $0xec] sm:$0xf] %vm1187_vm0, %v1907_v53  ;;  %v2706_v53 = vsel %vm2221_vm1, %v6969_v29, 0 }
 0x405   : > { %6454 = vmatpush3.bf16.xpose.msra.mxu1 %v2478_v60  ;;  %v6973_v60 = vld [vmem:[#allocation3 + $0x90] sm:$0xff]  }
 0x406   : > { %6761 = vmatprep.subr.msk.bf16.mxu1 %vm2221_vm1, %v6954_v39  ;;  %v2934_v39 = vsel %vm2221_vm1, %v6970_v5, 0 }
 0x407   : > { %v1708_v62 = vpop.permute.xlu1 %1707 }
 0x408   : > { %1747 = vst.msk [vmem:[#allocation4 + $0xa4] sm:$0xf] %vm1187_vm0, %v1708_v62  ;;  %v6974_v62 = vld [vmem:[#allocation3 + $0xd8] sm:$0xff]  }
 0x40b   : > { %v1655_v17 = vpop.permute.xlu1 %1654 }
 0x40c   : > { %1688 = vst.msk [vmem:[#allocation3 + $0xbc] sm:$0xf] %vm1187_vm0, %v1655_v17  ;;  %v2703_v17 = vsel %vm2221_vm1, %v6973_v60, 0 }
 0x40d   : > { %6456 = vmatpush3.bf16.xpose.msra.mxu1 %v2475_v38  ;;  %v6975_v38 = vld [vmem:[#allocation3 + $0x88] sm:$0xff]  }
 0x40e   : > { %6762 = vmatprep.subr.msk.bf16.mxu1 %vm2221_vm1, %v6955_v8  ;;  %v2931_v8 = vsel %vm2221_vm1, %v6974_v62, 0 }
 0x40f   : > { %v1850_v7 = vpop.permute.xlu1 %1849 }
 0x410   : > { %1883 = vst.msk [vmem:[#allocation3 + $0xfc] sm:$0xf] %vm1187_vm0, %v1850_v7  ;;  %v6976_v7 = vld [vmem:[#allocation3 + $0xd0] sm:$0xff]  }
 0x413   : > { %v6956_v24 = vld [vmem:[#allocation3 + $0xb8] sm:$0xff]  }
 0x414   : > { %6763 = vmatprep.subr.msk.bf16.mxu0 %vm2221_vm1, %v6956_v24  ;;  %v2718_v25 = vsel %vm2221_vm1, %v6956_v24, 0  ;;  %v2700_v24 = vsel %vm2221_vm1, %v6975_v38, 0 }
 0x415   : > { %6458 = vmatpush3.bf16.xpose.msra.mxu1 %v2472_v3  ;;  %6476 = vmatpush3.bf16.xpose.msra.mxu0 %v2718_v25  ;;  %v6977_v3 = vld [vmem:[#allocation3 + $0x80] sm:$0xff]   ;;  %v2928_v25 = vsel %vm2221_vm1, %v6976_v7, 0 }
 0x416   : > { %6764 = vmatprep.subr.msk.bf16.mxu0 %vm2221_vm1, %v6957_v2  ;;  %v6978_v2 = vld [vmem:[#allocation3 + $0xc8] sm:$0xff]  }
 0x417   : > { %v6958_v20 = vld [vmem:[#allocation3 + $0xf8] sm:$0xff]  }
 0x418   : > { %6771 = vmatprep.subr.msk.bf16.mxu1 %vm2221_vm1, %v6958_v20  ;;  %v2943_v11 = vsel %vm2221_vm1, %v6958_v20, 0  ;;  %v2697_v20 = vsel %vm2221_vm1, %v6977_v3, 0 }
 0x41c   : > { %6460 = vmatmul.mubr.msk.bf16.vlgmr.msra.gmra.mxu1 %vm2221_vm1, %v6959_v19  ;;  %v6980_v19 = vld [vmem:[#allocation4 + $0x38] sm:$0xff]  }
 0x41d   : > { %6463 = vmatprep.mubr.msk.bf16.mxu1 %vm2221_vm1, %v6960_v61  ;;  %6478 = vmatpush3.bf16.xpose.msra.mxu0 %v2715_v36  ;;  %v2925_v61 = vsel %vm2221_vm1, %v6978_v2, 0  ;;  %v6979_v36 = vld [vmem:[#allocation3 + $0xc0] sm:$0xff]  }
 0x41e   : > { %6508 = vmatpush3.bf16.xpose.msra.mxu1 %v2943_v11  ;;  %6765 = vmatprep.subr.msk.bf16.mxu0 %vm2221_vm1, %v6961_v22  ;;  %v6981_v22 = vld [vmem:[#allocation2 + $0x88] sm:$0xff]   ;;  %v6982_v11 = vld [vmem:[#allocation2 + $0x90] sm:$0xff]  }
 0x41f   : > { %6772 = vmatprep.subr.msk.bf16.mxu1 %vm2221_vm1, %v6962_v31  ;;  %v6983_v31 = vld [vmem:[#allocation4 + $0x30] sm:$0xff]  }
 0x424   : > { %6464 = vmatmul.mubr.msk.bf16.gmra.mxu1 %vm2221_vm1, %v6963_v57  ;;  %v2922_v57 = vsel %vm2221_vm1, %v6979_v36, 0 }
 0x425   : > { %6467 = vmatprep.mubr.msk.bf16.mxu1 %vm2221_vm1, %v6964_v47  ;;  %6480 = vmatpush3.bf16.xpose.msra.mxu0 %v2712_v28  ;;  %v6984_v47 = vld [vmem:[#allocation4 + $0x78] sm:$0xff]   ;;  %v6985_v28 = vld [vmem:[#allocation4 + $0x28] sm:$0xff]  }
 0x426   : > { %6510 = vmatpush3.bf16.xpose.msra.mxu1 %v2940_v16  ;;  %6766 = vmatprep.subr.msk.bf16.mxu0 %vm2221_vm1, %v6965_v9  ;;  %v6986_v9 = vld [vmem:[#allocation2 + $0x98] sm:$0xff]   ;;  %v6987_v16 = vld [vmem:[#allocation2 + $0xc8] sm:$0xff]  }
 0x427   : > { %6773 = vmatprep.subr.msk.bf16.mxu1 %vm2221_vm1, %v6966_v44  ;;  %v6988_v44 = vld [vmem:[#allocation2 + $0xa0] sm:$0xff]  }
 0x42c   : > { %6468 = vmatmul.mubr.msk.bf16.gmra.mxu1 %vm2221_vm1, %v6967_v21  ;;  %v6989_v21 = vld [vmem:[#allocation2 + $0xd0] sm:$0xff]  }
 0x42d   : > { %6471 = vmatprep.mubr.msk.bf16.mxu1 %vm2221_vm1, %v6968_v33  ;;  %6482 = vmatpush3.bf16.xpose.msra.mxu0 %v2709_v49  ;;  %v6990_v33 = vld [vmem:[#allocation4 + $0x20] sm:$0xff]   ;;  %v6991_v49 = vld [vmem:[#allocation4 + $0x70] sm:$0xff]  }
 0x42e   : > { %6512 = vmatpush3.bf16.xpose.msra.mxu1 %v2937_v32  ;;  %6767 = vmatprep.subr.msk.bf16.mxu0 %vm2221_vm1, %v6969_v29  ;;  %v6992_v29 = vld [vmem:[#allocation4 + $0x18] sm:$0xff]   ;;  %v6993_v32 = vld [vmem:[#allocation4 + $0x68] sm:$0xff]  }
 0x42f   : > { %6774 = vmatprep.subr.msk.bf16.mxu1 %vm2221_vm1, %v6970_v5  ;;  %v6994_v5 = vld [vmem:[#allocation2 + $0xa8] sm:$0xff]  }
 0x434   : > { %6472 = vmatmul.mubr.msk.bf16.gmra.mxu1 %vm2221_vm1, %v6971_v30  ;;  %v6995_v30 = vld [vmem:[#allocation2 + $0xd8] sm:$0xff]  }
 0x435   : > { %6484 = vmatpush3.bf16.xpose.msra.mxu0 %v2706_v53  ;;  %6523 = vmatprep.mubr.msk.bf16.mxu1 %vm2221_vm1, %v6972_v23  ;;  %v6996_v23 = vld [vmem:[#allocation2 + $0xb0] sm:$0xff]   ;;  %v6997_v53 = vld [vmem:[#allocation2 + $0xe0] sm:$0xff]  }
 0x436   : > { %6514 = vmatpush3.bf16.xpose.msra.mxu1 %v2934_v39  ;;  %6768 = vmatprep.subr.msk.bf16.mxu0 %vm2221_vm1, %v6973_v60  ;;  %v6998_v60 = vld [vmem:[#allocation4 + $0x10] sm:$0xff]   ;;  %v6999_v39 = vld [vmem:[#allocation4 + $0x60] sm:$0xff]  }
 0x437   : > { %6775 = vmatprep.subr.msk.bf16.mxu1 %vm2221_vm1, %v6974_v62  ;;  %v7000_v62 = vld [vmem:[#allocation4 + $0x8] sm:$0xff]  }
 0x43d   : > { %6486 = vmatpush3.bf16.xpose.msra.mxu0 %v2703_v17  ;;  %v7001_v17 = vld [vmem:[#allocation4 + $0x58] sm:$0xff]  }
 0x43e   : > { %6516 = vmatpush3.bf16.xpose.msra.mxu1 %v2931_v8  ;;  %6769 = vmatprep.subr.msk.bf16.mxu0 %vm2221_vm1, %v6975_v38  ;;  %v7002_v38 = vld [vmem:[#allocation2 + $0xb8] sm:$0xff]   ;;  %v7003_v8 = vld [vmem:[#allocation2 + $0xe8] sm:$0xff]  }
 0x43f   : > { %6776 = vmatprep.subr.msk.bf16.mxu1 %vm2221_vm1, %v6976_v7  ;;  %v7004_v7 = vld [vmem:[#allocation2 + $0xf0] sm:$0xff]  }
 0x445   : > { %6488 = vmatpush3.bf16.xpose.msra.mxu0 %v2700_v24  ;;  %v7005_v24 = vld [vmem:[#allocation4] sm:$0xff]  }
 0x446   : > { %6518 = vmatpush3.bf16.xpose.msra.mxu1 %v2928_v25  ;;  %6770 = vmatprep.subr.msk.bf16.mxu0 %vm2221_vm1, %v6977_v3  ;;  %v7006_v3 = vld [vmem:[#allocation4 + $0x50] sm:$0xff]   ;;  %v8966_v25 = vld [vmem:[#allocation4 + $0xb8] sm:$0xff]  }
 0x447   : > { %6777 = vmatprep.subr.msk.bf16.mxu1 %vm2221_vm1, %v6978_v2  ;;  %v7007_v2 = vld [vmem:[#allocation4 + $0x48] sm:$0xff]  }
 0x44d   : > { %6490 = vmatpush3.bf16.xpose.msra.mxu0 %v2697_v20  ;;  %v7009_v20 = vld [vmem:[#allocation2 + $0xf8] sm:$0xff]  }
 0x44e   : > { %6520 = vmatpush3.bf16.xpose.msra.mxu1 %v2925_v61  ;;  %6539 = vmatprep.subr.bf16.mxu0 %v6980_v19  ;;  %v7011_v61 = vld [vmem:[#allocation4 + $0xf8] sm:$0xff]  }
 0x44f   : > { %6778 = vmatprep.subr.msk.bf16.mxu1 %vm2221_vm1, %v6979_v36 }
 0x454   : > { %6492 = vmatmul.mubr.msk.bf16.vlgmr.msra.gmra.mxu0 %vm2221_vm1, %v6981_v22 }
 0x455   : > { %6495 = vmatprep.mubr.msk.bf16.mxu0 %vm2221_vm1, %v6982_v11  ;;  %6540 = vmatpush3.bf16.msra.mxu0 %v6980_v19  ;;  %v7010_v19 = vld [vmem:[#allocation4 + $0x40] sm:$0xff]  }
 0x456   : > { %6522 = vmatpush3.bf16.xpose.msra.mxu1 %v2922_v57  ;;  %6541 = vmatprep.subr.bf16.mxu0 %v6983_v31 }
 0x457   : > { %6571 = vmatprep.subr.bf16.mxu1 %v6984_v47 }
 0x459   : > { %6542 = vmatpush3.bf16.msra.mxu0 %v6983_v31 }
 0x45a   : > { %6543 = vmatprep.subr.bf16.mxu0 %v6985_v28 }
 0x45c   : > { %6496 = vmatmul.mubr.msk.bf16.gmra.mxu0 %vm2221_vm1, %v6986_v9 }
 0x45d   : > { %6524 = vmatmul.mubr.msk.bf16.vlgmr.msra.gmra.mxu1 %vm2221_vm1, %v6987_v16  ;;  %6499 = vmatprep.mubr.msk.bf16.mxu0 %vm2221_vm1, %v6988_v44 }
 0x45e   : > { %6527 = vmatprep.mubr.msk.bf16.mxu1 %vm2221_vm1, %v6989_v21  ;;  %6544 = vmatpush3.bf16.msra.mxu0 %v6985_v28 }
 0x45f   : > { %6572 = vmatpush3.bf16.msra.mxu1 %v6984_v47  ;;  %6545 = vmatprep.subr.bf16.mxu0 %v6990_v33 }
 0x460   : > { %6573 = vmatprep.subr.bf16.mxu1 %v6991_v49 }
 0x462   : > { %6546 = vmatpush3.bf16.msra.mxu0 %v6990_v33 }
 0x463   : > { %6574 = vmatpush3.bf16.msra.mxu1 %v6991_v49  ;;  %6547 = vmatprep.subr.bf16.mxu0 %v6992_v29 }
 0x464   : > { %6575 = vmatprep.subr.bf16.mxu1 %v6993_v32  ;;  %6500 = vmatmul.mubr.msk.bf16.gmra.mxu0 %vm2221_vm1, %v6994_v5 }
 0x465   : > { %6528 = vmatmul.mubr.msk.bf16.gmra.mxu1 %vm2221_vm1, %v6995_v30  ;;  %6503 = vmatprep.mubr.msk.bf16.mxu0 %vm2221_vm1, %v6996_v23 }
 0x466   : > { %6531 = vmatprep.mubr.msk.bf16.mxu1 %vm2221_vm1, %v6997_v53  ;;  %6548 = vmatpush3.bf16.msra.mxu0 %v6992_v29 }
 0x467   : > { %6576 = vmatpush3.bf16.msra.mxu1 %v6993_v32  ;;  %6549 = vmatprep.subr.bf16.mxu0 %v6998_v60 }
 0x468   : > { %6577 = vmatprep.subr.bf16.mxu1 %v6999_v39 }
 0x46a   : > { %6550 = vmatpush3.bf16.msra.mxu0 %v6998_v60 }
 0x46b   : > { %6578 = vmatpush3.bf16.msra.mxu1 %v6999_v39  ;;  %6551 = vmatprep.subr.bf16.mxu0 %v7000_v62 }
 0x46c   : > { %6579 = vmatprep.subr.bf16.mxu1 %v7001_v17  ;;  %6504 = vmatmul.mubr.msk.bf16.gmra.mxu0 %vm2221_vm1, %v7002_v38 }
 0x46d   : > { %6532 = vmatmul.mubr.msk.bf16.gmra.mxu1 %vm2221_vm1, %v7003_v8 }
 0x46e   : > { %6535 = vmatprep.mubr.msk.bf16.mxu1 %vm2221_vm1, %v7004_v7  ;;  %6552 = vmatpush3.bf16.msra.mxu0 %v7000_v62 }
 0x46f   : > { %6580 = vmatpush3.bf16.msra.mxu1 %v7001_v17  ;;  %6553 = vmatprep.subr.bf16.mxu0 %v7005_v24 }
 0x470   : > { %6581 = vmatprep.subr.bf16.mxu1 %v7006_v3 }
 0x472   : > { %6554 = vmatpush3.bf16.msra.mxu0 %v7005_v24  ;;  %v3116_v24 = vpop.xlane.xlu0 %3115 }
 0x473   : > { %6582 = vmatpush3.bf16.msra.mxu1 %v7006_v3  ;;  %6603 = vmatprep.subr.bf16.mxu0 %v8966_v25  ;;  %v3241_v0 = vsub.f32 %v8802_v56, %v3116_v24 }
 0x474   : > { %6583 = vmatprep.subr.bf16.mxu1 %v7007_v2 }
 0x475   : > { %6536 = vmatmul.mubr.msk.bf16.gmra.mxu1 %vm2221_vm1, %v7009_v20 }
 0x477   : > { %6584 = vmatpush3.bf16.msra.mxu1 %v7007_v2 }
 0x478   : > { %6585 = vmatprep.subr.bf16.mxu1 %v7010_v19 }
 0x47b   : > { %6586 = vmatpush3.bf16.msra.mxu1 %v7010_v19 }
 0x47c   : > { %6635 = vmatprep.subr.bf16.mxu1 %v7011_v61 }
 0x4dc   : > { %v6461_v36 = vpop.f32.mrf.mxu1 }
 0x4dd   : > { %v8972_v22 = vsel %vm3044_vm2, %v6461_v36, -1e+30 }
 0x4de   : > { %3147 = vmax.xlane.f32.xlu0 %v8972_v22  ;;  %v2529_v11 = vpop.f32.mrf.mxu1 }
 0x4df   : > { %v8987_v21 = vsel %vm3044_vm2, %v2529_v11, -1e+30 }
 0x4e0   : > { %v6462_v31 = vpop.f32.mrf.mxu1 }
 0x4e1   : > { %v8977_v57 = vsel %vm3044_vm2, %v6462_v31, -1e+30 }
 0x4e2   : > { %3149 = vmax.xlane.f32.xlu1 %v8977_v57  ;;  %v2532_v9 = vpop.f32.mrf.mxu1 }
 0x4e3   : > { %v9001_v5 = vsel %vm3044_vm2, %v2532_v9, -1e+30 }
 0x4e4   : > { %v6465_v49 = vpop.f32.mrf.mxu1 }
 0x4e5   : > { %v9007_v53 = vsel %vm3044_vm2, %v6465_v49, -1e+30 }
 0x4e6   : > { %v2545_v30 = vpop.f32.mrf.mxu1 }
 0x4e7   : > { %v9027_v3 = vsel %vm3044_vm2, %v2545_v30, -1e+30 }
 0x4e8   : > { %v6466_v39 = vpop.f32.mrf.mxu1 }
 0x4e9   : > { %v9017_v17 = vsel %vm3044_vm2, %v6466_v39, -1e+30 }
 0x4ea   : > { %v2548_v8 = vpop.f32.mrf.mxu1 }
 0x4eb   : > { %v9041_v36 = vsel %vm3044_vm2, %v2548_v8, -1e+30 }
 0x4ec   : > { %v6469_v20 = vpop.f32.mrf.mxu1 }
 0x4ed   : > { %v9047_v9 = vsel %vm3044_vm2, %v6469_v20, -1e+30 }
 0x4ee   : > { %v2561_v11 = vpop.f32.mrf.mxu1 }
 0x514   : > { %v6493_v47 = vpop.f32.mrf.mxu0 }
 0x515   : > { %v8982_v28 = vsel %vm3044_vm2, %v6493_v47, -1e+30  ;;  %v3112_v47 = vpop.xlane.xlu0 %3111 }
 0x516   : > { %3179 = vmax.xlane.f32.xlu0 %v8982_v28  ;;  %v2754_v16 = vpop.f32.mrf.mxu0  ;;  %v3239_v26 = vsub.f32 %v8810_v40, %v3112_v47 }
 0x517   : > { %v8997_v32 = vsel %vm3044_vm2, %v2754_v16, -1e+30 }
 0x518   : > { %v6494_v44 = vpop.f32.mrf.mxu0  ;;  %v3303_v40 = vmul.f32 1.442695, %v3239_v26 }
 0x519   : > { %v8991_v33 = vsel %vm3044_vm2, %v6494_v44, -1e+30  ;;  %v6470_v44 = vpop.f32.mrf.mxu1  ;;  %v3118_v30 = vpop.xlane.xlu0 %3117 }
 0x51a   : > { %3143 = vmax.xlane.f32.xlu0 %v8987_v21  ;;  %3181 = vmax.xlane.f32.xlu1 %v8991_v33  ;;  %v2757_v29 = vpop.f32.mrf.mxu0 }
 0x51b   : > { %v9011_v60 = vsel %vm3044_vm2, %v2757_v29, -1e+30  ;;  %v3114_v29 = vpop.xlane.xlu1 %3113 }
 0x51c   : > { %v6497_v23 = vpop.f32.mrf.mxu0  ;;  %v3240_v56 = vsub.f32 %v8817_v50, %v3114_v29 }
 0x51d   : > { %v9021_v38 = vsel %vm3044_vm2, %v6497_v23, -1e+30  ;;  %v9057_v23 = vsel %vm3044_vm2, %v6470_v44, -1e+30 }
 0x51e   : > { %3175 = vmax.xlane.f32.xlu0 %v8997_v32  ;;  %3145 = vmax.xlane.f32.xlu1 %v9001_v5  ;;  %v2770_v62 = vpop.f32.mrf.mxu0  ;;  %10202 = vst [vmem:[#allocation26_spill] sm:$0xff] %v9021_v38  ;;  %v3305_v50 = vmul.f32 1.442695, %v3240_v56 }
 0x51f   : > { %v9037_v61 = vsel %vm3044_vm2, %v2770_v62, -1e+30  ;;  %v9065_v8 = vpop.xlane.xlu1 %3125 }
 0x520   : > { %v6498_v7 = vpop.f32.mrf.mxu0  ;;  %10204 = vst [vmem:[#allocation28_spill] sm:$0xff] %v9037_v61 }
 0x521   : > { %v9031_v2 = vsel %vm3044_vm2, %v6498_v7, -1e+30  ;;  %v9069_v7 = vsel %vm3044_vm2, %v2561_v11, -1e+30 }
 0x522   : > { %3155 = vmax.xlane.f32.xlu0 %v9007_v53  ;;  %3177 = vmax.xlane.f32.xlu1 %v9011_v60  ;;  %10203 = vst [vmem:[#allocation27_spill] sm:$0xff] %v9031_v2  ;;  %v2773_v19 = vpop.f32.mrf.mxu0 }
 0x523   : > { %v9051_v16 = vsel %vm3044_vm2, %v2773_v19, -1e+30  ;;  %v2564_v19 = vpop.f32.mrf.mxu1 }
 0x524   : > { %v6501_v31 = vpop.f32.mrf.mxu0  ;;  %10205 = vst [vmem:[#allocation29_spill] sm:$0xff] %v9051_v16  ;;  %v9084_v11 = vsel %vm3044_vm2, %v2564_v19, -1e+30 }
 0x525   : > { %v9061_v39 = vsel %vm3044_vm2, %v6501_v31, -1e+30  ;;  %v3124_v31 = vpop.xlane.xlu0 %3123  ;;  %v6473_v48 = vpop.f32.mrf.mxu1 }
 0x526   : > { %3157 = vmax.xlane.f32.xlu1 %v9017_v17  ;;  %3187 = vmax.xlane.f32.xlu0 %v9021_v38  ;;  %v2786_v49 = vpop.f32.mrf.mxu0  ;;  %10206 = vst [vmem:[#allocation30_spill] sm:$0xff] %v9061_v39  ;;  %v3245_v47 = vsub.f32 %v8831_v41, %v3124_v31 }
 0x527   : > { %v9080_v15 = vsel %vm3044_vm2, %v2786_v49, -1e+30  ;;  %v9092_v49 = vsel %vm3044_vm2, %v6473_v48, -1e+30  ;;  %v2577_v38 = vpop.f32.mrf.mxu1 }
 0x528   : > { %v6502_v62 = vpop.f32.mrf.mxu0  ;;  %10208 = vst [vmem:[#allocation32_spill] sm:$0xff] %v9080_v15  ;;  %v9116_v31 = vsel %vm3044_vm2, %v2577_v38, -1e+30 }
 0x529   : > { %v9073_v20 = vsel %vm3044_vm2, %v6502_v62, -1e+30  ;;  %v3120_v24 = vpop.xlane.xlu0 %3119 }
 0x52a   : > { %3151 = vmax.xlane.f32.xlu0 %v9027_v3  ;;  %3189 = vmax.xlane.f32.xlu1 %v9031_v2  ;;  %10207 = vst [vmem:[#allocation31_spill] sm:$0xff] %v9073_v20  ;;  %v2789_v44 = vpop.f32.mrf.mxu0 }
 0x52b   : > { %v9096_v19 = vsel %vm3044_vm2, %v2789_v44, -1e+30 }
 0x52c   : > { %v6505_v62 = vpop.f32.mrf.mxu0  ;;  %10209 = vst [vmem:[#allocation33_spill] sm:$0xff] %v9096_v19 }
 0x52d   : > { %v9104_v48 = vsel %vm3044_vm2, %v6505_v62, -1e+30  ;;  %v3132_v41 = vpop.xlane.xlu0 %3131 }
 0x52e   : > { %3183 = vmax.xlane.f32.xlu0 %v9037_v61  ;;  %3153 = vmax.xlane.f32.xlu1 %v9041_v36  ;;  %v2802_v34 = vpop.f32.mrf.mxu0  ;;  %10210 = vst [vmem:[#allocation34_spill] sm:$0xff] %v9104_v48  ;;  %v3249_v56 = vsub.f32 %v8857_v1, %v3132_v41 }
 0x52f   : > { %v9108_v44 = vsel %vm3044_vm2, %v2802_v34, -1e+30 }
 0x530   : > { %10211 = vst [vmem:[#allocation35_spill] sm:$0xff] %v9108_v44  ;;  %v6506_v2 = vpop.f32.mrf.mxu0  ;;  %v3323_v1 = vmul.f32 1.442695, %v3249_v56 }
 0x532   : > { %3163 = vmax.xlane.f32.xlu0 %v9047_v9  ;;  %3185 = vmax.xlane.f32.xlu1 %v9051_v16  ;;  %v2805_v62 = vpop.f32.mrf.mxu0 }
 0x536   : > { %3165 = vmax.xlane.f32.xlu1 %v9057_v23  ;;  %3195 = vmax.xlane.f32.xlu0 %v9061_v39  ;;  %v3122_v39 = vpop.xlane.xlu1 %3121 }
 0x53a   : > { %3159 = vmax.xlane.f32.xlu0 %v9069_v7  ;;  %3197 = vmax.xlane.f32.xlu1 %v9073_v20  ;;  %v3307_v20 = vmul.f32 1.442695, %v3241_v0  ;;  %v3242_v0 = vsub.f32 %v8823_v37, %v3118_v30  ;;  %v3134_v29 = vpop.xlane.xlu1 %3133  ;;  %v3244_v37 = vsub.f32 %v8848_v18, %v3122_v39  ;;  %v3315_v30 = vmul.f32 1.442695, %v3245_v47 }
 0x53b   : > { %v3246_v18 = vsub.f32 %v8835_v4, %v9065_v8 }
 0x53c   : > { %7106 = vpow2.f32 %v3307_v20  ;;  %v3309_v26 = vmul.f32 1.442695, %v3242_v0  ;;  %v3243_v20 = vsub.f32 %v8844_v12, %v3120_v24  ;;  %v3313_v39 = vmul.f32 1.442695, %v3244_v37  ;;  %v3128_v24 = vpop.xlane.xlu0 %3127 }
 0x53d   : > { %7108 = vpow2.f32 %v3303_v40  ;;  %v9133_v40 = vsel %vm3044_vm2, %v2805_v62, -1e+30  ;;  %v3317_v4 = vmul.f32 1.442695, %v3246_v18 }
 0x53e   : > { %3191 = vmax.xlane.f32.xlu0 %v9080_v15  ;;  %3161 = vmax.xlane.f32.xlu1 %v9084_v11  ;;  %v6474_v15 = vpop.f32.mrf.mxu1  ;;  %7110 = vpow2.f32 %v3305_v50  ;;  %v3311_v12 = vmul.f32 1.442695, %v3243_v20  ;;  %v3130_v38 = vpop.xlane.xlu1 %3129  ;;  %10213 = vst [vmem:[#allocation37_spill] sm:$0xff] %v9133_v40  ;;  %v3247_v50 = vsub.f32 %v8870_v63, %v3128_v24 }
 0x53f   : > { %v9120_v34 = vsel %vm3044_vm2, %v6474_v15, -1e+30  ;;  %7112 = vpow2.f32 %v3309_v26  ;;  %v9129_v15 = vsel %vm3044_vm2, %v6506_v2, -1e+30  ;;  %v3248_v8 = vsub.f32 %v8874_v45, %v3130_v38 }
 0x540   : > { %7114 = vpow2.f32 %v3315_v30  ;;  %10212 = vst [vmem:[#allocation36_spill] sm:$0xff] %v9129_v15  ;;  %v2580_v0 = vpop.f32.mrf.mxu1  ;;  %v3250_v45 = vsub.f32 %v8861_v59, %v3134_v29  ;;  %v3319_v30 = vmul.f32 1.442695, %v3247_v50  ;;  %v3140_v20 = vpop.xlane.xlu0 %3139 }
 0x541   : > { %7116 = vpow2.f32 %v3313_v39  ;;  %v9143_v2 = vsel %vm3044_vm2, %v2580_v0, -1e+30  ;;  %v3321_v37 = vmul.f32 1.442695, %v3248_v8 }
 0x542   : > { %3171 = vmax.xlane.f32.xlu0 %v9092_v49  ;;  %3193 = vmax.xlane.f32.xlu1 %v9096_v19  ;;  %7118 = vpow2.f32 %v3311_v12  ;;  %v6525_v26 = vpop.f32.mrf.mxu1  ;;  %v3325_v39 = vmul.f32 1.442695, %v3250_v45  ;;  %v3253_v12 = vsub.f32 %v8882_v42, %v3140_v20  ;;  %v3142_v59 = vpop.xlane.xlu1 %3141 }
 0x543   : > { %7120 = vpow2.f32 %v3317_v4  ;;  %v3254_v24 = vsub.f32 %v8886_v35, %v3142_v59 }
 0x544   : > { %7122 = vpow2.f32 %v3323_v1  ;;  %v2979_v62 = vpop.f32.mrf.mxu1  ;;  %v3331_v0 = vmul.f32 1.442695, %v3253_v12  ;;  %v3136_v8 = vpop.xlane.xlu0 %3135 }
 0x545   : > { %7124 = vpow2.f32 %v3321_v37  ;;  %v3333_v50 = vmul.f32 1.442695, %v3254_v24  ;;  %v3251_v37 = vsub.f32 %v8894_v54, %v3136_v8  ;;  %v9186_v8 = vsel %vm3044_vm2, %v6525_v26, -1e+30 }
 0x546   : > { %3203 = vmax.xlane.f32.xlu0 %v9104_v48  ;;  %3199 = vmax.xlane.f32.xlu1 %v9108_v44  ;;  %7126 = vpow2.f32 %v3319_v30  ;;  %v6526_v29 = vpop.f32.mrf.mxu1  ;;  %v3138_v30 = vpop.xlane.xlu1 %3137  ;;  %v9202_v26 = vsel %vm3044_vm2, %v2979_v62, -1e+30 }
 0x547   : > { %7128 = vpow2.f32 %v3325_v39  ;;  %v3252_v39 = vsub.f32 %v8898_v10, %v3138_v30  ;;  %v3327_v12 = vmul.f32 1.442695, %v3251_v37 }
 0x548   : > { %v2982_v1 = vpop.f32.mrf.mxu1  ;;  %7130 = vpow2.f32 %v3331_v0 }
 0x549   : > { %v9139_v47 = vpop.eup %7106  ;;  %7132 = vpow2.f32 %v3333_v50  ;;  %v3329_v54 = vmul.f32 1.442695, %v3252_v39  ;;  %v9194_v50 = vsel %vm3044_vm2, %v6526_v29, -1e+30  ;;  %v9210_v29 = vsel %vm3044_vm2, %v2982_v1, -1e+30 }
 0x54a   : > { %3167 = vmax.xlane.f32.xlu0 %v9116_v31  ;;  %3173 = vmax.xlane.f32.xlu1 %v9120_v34  ;;  %v9147_v41 = vpop.eup %7108  ;;  %v6529_v20 = vpop.f32.mrf.mxu1  ;;  %7134 = vpow2.f32 %v3327_v12 }
 0x54b   : > { %v9150_v63 = vpop.eup %7110  ;;  %7136 = vpow2.f32 %v3329_v54  ;;  %v9218_v62 = vsel %vm3044_vm2, %v6529_v20, -1e+30 }
 0x54c   : > { %v9154_v18 = vpop.eup %7112  ;;  %v2995_v24 = vpop.f32.mrf.mxu1  ;;  %10214 = vst [vmem:[#allocation38_spill] sm:$0xff] %v9218_v62 }
 0x54d   : > { %v9157_v56 = vpop.eup %7114  ;;  %v9224_v1 = vsel %vm3044_vm2, %v2995_v24, -1e+30 }
 0x54e   : > { %3205 = vmax.xlane.f32.xlu1 %v9129_v15  ;;  %3201 = vmax.xlane.f32.xlu0 %v9133_v40  ;;  %v9161_v38 = vpop.eup %7116  ;;  %v6530_v48 = vpop.f32.mrf.mxu1  ;;  %10215 = vst [vmem:[#allocation39_spill] sm:$0xff] %v9224_v1 }
 0x54f   : > { %v9164_v4 = vpop.eup %7118  ;;  %v9228_v40 = vsel %vm3044_vm2, %v6530_v48, -1e+30 }
 0x550   : > { %v9168_v42 = vpop.eup %7120  ;;  %v2998_v37 = vpop.f32.mrf.mxu1  ;;  %10216 = vst [vmem:[#allocation40_spill] sm:$0xff] %v9228_v40 }
 0x551   : > { %v9171_v45 = vpop.eup %7122  ;;  %v9235_v61 = vsel %vm3044_vm2, %v2998_v37, -1e+30 }
 0x552   : > { %3169 = vmax.xlane.f32.xlu1 %v9143_v2  ;;  %3435 = vadd.xlane.f32.xlu0 %v9139_v47  ;;  %v9175_v35 = vpop.eup %7124  ;;  %v6533_v39 = vpop.f32.mrf.mxu1  ;;  %10217 = vst [vmem:[#allocation41_spill] sm:$0xff] %v9235_v61 }
 0x553   : > { %v9178_v59 = vpop.eup %7126  ;;  %v9239_v24 = vsel %vm3044_vm2, %v6533_v39, -1e+30 }
 0x554   : > { %v9182_v0 = vpop.eup %7128  ;;  %v3011_v54 = vpop.f32.mrf.mxu1  ;;  %10218 = vst [vmem:[#allocation42_spill] sm:$0xff] %v9239_v24 }
 0x555   : > { %v9190_v10 = vpop.eup %7130 }
 0x556   : > { %3433 = vadd.xlane.f32.xlu0 %v9150_v63  ;;  %3431 = vadd.xlane.f32.xlu1 %v9147_v41  ;;  %v9198_v30 = vpop.eup %7132  ;;  %v6534_v15 = vpop.f32.mrf.mxu1 }
 0x557   : > { %v9206_v12 = vpop.eup %7134 }
 0x558   : > { %v9214_v44 = vpop.eup %7136  ;;  %v3014_v58 = vpop.f32.mrf.mxu1 }
 0x559   : > { %v9255_v37 = vsel %vm3044_vm2, %v3014_v58, -1e+30 }
 0x55a   : > { %3437 = vadd.xlane.f32.xlu1 %v9154_v18  ;;  %3443 = vadd.xlane.f32.xlu0 %v9157_v56  ;;  %10221 = vst [vmem:[#allocation45_spill] sm:$0xff] %v9255_v37 }
 0x55e   : > { %3441 = vadd.xlane.f32.xlu0 %v9161_v38  ;;  %3439 = vadd.xlane.f32.xlu1 %v9164_v4 }
 0x562   : > { %3445 = vadd.xlane.f32.xlu1 %v9168_v42  ;;  %3451 = vadd.xlane.f32.xlu0 %v9171_v45 }
 0x566   : > { %3449 = vadd.xlane.f32.xlu0 %v9175_v35  ;;  %3447 = vadd.xlane.f32.xlu1 %v9178_v59 }
 0x567   : > { %v3148_v19 = vpop.xlane.xlu0 %3147 }
 0x568   : > { %v3257_v20 = vsub.f32 %v8972_v22, %v3148_v19  ;;  %v9249_v22 = vsel %vm3044_vm2, %v6534_v15, -1e+30 }
 0x569   : > { %10220 = vst [vmem:[#allocation44_spill] sm:$0xff] %v9249_v22 }
 0x56a   : > { %3211 = vmax.xlane.f32.xlu0 %v9186_v8  ;;  %3453 = vadd.xlane.f32.xlu1 %v9182_v0  ;;  %v3339_v48 = vmul.f32 1.442695, %v3257_v20 }
 0x56c   : > { %7138 = vpow2.f32 %v3339_v48 }
 0x56e   : > { %3213 = vmax.xlane.f32.xlu1 %v9194_v50  ;;  %3459 = vadd.xlane.f32.xlu0 %v9190_v10 }
 0x572   : > { %3461 = vadd.xlane.f32.xlu1 %v9198_v30  ;;  %3207 = vmax.xlane.f32.xlu0 %v9202_v26 }
 0x576   : > { %3209 = vmax.xlane.f32.xlu1 %v9210_v29  ;;  %3455 = vadd.xlane.f32.xlu0 %v9206_v12 }
 0x57a   : > { %3457 = vadd.xlane.f32.xlu1 %v9214_v44  ;;  %3219 = vmax.xlane.f32.xlu0 %v9218_v62  ;;  %v6537_v62 = vpop.f32.mrf.mxu1 }
 0x57b   : > { %v9265_v15 = vsel %vm3044_vm2, %v6537_v62, -1e+30  ;;  %v3150_v62 = vpop.xlane.xlu1 %3149 }
 0x57c   : > { %v3027_v19 = vpop.f32.mrf.mxu1  ;;  %10223 = vst [vmem:[#allocation47_spill] sm:$0xff] %v9265_v15 }
 0x57d   : > { %v9259_v39 = vsel %vm3044_vm2, %v3027_v19, -1e+30  ;;  %v9278_v19 = vpop.eup %7138 }
 0x57e   : > { %3221 = vmax.xlane.f32.xlu1 %v9228_v40  ;;  %3215 = vmax.xlane.f32.xlu0 %v9224_v1  ;;  %v9245_v40 = vsel %vm3044_vm2, %v3011_v54, -1e+30  ;;  %10222 = vst [vmem:[#allocation46_spill] sm:$0xff] %v9259_v39  ;;  %v6538_v54 = vpop.f32.mrf.mxu1  ;;  %10226 = vst [vmem:[#allocation50_spill] sm:$0xff] %v9278_v19 }
 0x57f   : > { %10219 = vst [vmem:[#allocation43_spill] sm:$0xff] %v9245_v40  ;;  %v9269_v20 = vsel %vm3044_vm2, %v6538_v54, -1e+30 }
 0x580   : > { %10224 = vst [vmem:[#allocation48_spill] sm:$0xff] %v9269_v20  ;;  %v3030_v48 = vpop.f32.mrf.mxu1 }
 0x581   : > { %v9275_v58 = vsel %vm3044_vm2, %v3030_v48, -1e+30 }
 0x582   : > { %3217 = vmax.xlane.f32.xlu1 %v9235_v61  ;;  %3227 = vmax.xlane.f32.xlu0 %v9239_v24  ;;  %10225 = vst [vmem:[#allocation49_spill] sm:$0xff] %v9275_v58  ;;  %v3258_v61 = vsub.f32 %v8977_v57, %v3150_v62 }
 0x586   : > { %3229 = vmax.xlane.f32.xlu1 %v9249_v22  ;;  %3223 = vmax.xlane.f32.xlu0 %v9245_v40 }
 0x58a   : > { %3225 = vmax.xlane.f32.xlu1 %v9255_v37  ;;  %3231 = vmax.xlane.f32.xlu0 %v9259_v39 }
 0x58e   : > { %3235 = vmax.xlane.f32.xlu1 %v9265_v15  ;;  %3237 = vmax.xlane.f32.xlu0 %v9269_v20 }
 0x592   : > { %3233 = vmax.xlane.f32.xlu1 %v9275_v58 }
 0x596   : > { %3467 = vadd.xlane.f32.xlu1 %v9278_v19 }
 0x59f   : > { %v3180_v39 = vpop.xlane.xlu0 %3179 }
 0x5a0   : > { %v3273_v54 = vsub.f32 %v8982_v28, %v3180_v39 }
 0x5a2   : > { %v3371_v24 = vmul.f32 1.442695, %v3273_v54 }
 0x5a3   : > { %v9282_v40 = vpop.xlane.xlu1 %3181  ;;  %v3144_v15 = vpop.xlane.xlu0 %3143 }
 0x5a4   : > { %7140 = vpow2.f32 %v3371_v24  ;;  %v3255_v20 = vsub.f32 %v8987_v21, %v3144_v15  ;;  %v3341_v21 = vmul.f32 1.442695, %v3258_v61 }
 0x5a6   : > { %v3335_v52 = vmul.f32 1.442695, %v3255_v20 }
 0x5a7   : > { %v3146_v48 = vpop.xlane.xlu1 %3145  ;;  %v3176_v22 = vpop.xlane.xlu0 %3175 }
 0x5a8   : > { %v3256_v58 = vsub.f32 %v9001_v5, %v3146_v48  ;;  %v3271_v37 = vsub.f32 %v8997_v32, %v3176_v22  ;;  %7142 = vpow2.f32 %v3335_v52 }
 0x5aa   : > { %v3337_v1 = vmul.f32 1.442695, %v3256_v58  ;;  %v3367_v19 = vmul.f32 1.442695, %v3271_v37 }
 0x5ab   : > { %v3178_v28 = vpop.xlane.xlu1 %3177  ;;  %v3156_v39 = vpop.xlane.xlu0 %3155 }
 0x5ac   : > { %7144 = vpow2.f32 %v3337_v1  ;;  %v3272_v54 = vsub.f32 %v9011_v60, %v3178_v28  ;;  %v3261_v24 = vsub.f32 %v9007_v53, %v3156_v39 }
 0x5ad   : > { %7146 = vpow2.f32 %v3367_v19 }
 0x5ae   : > { %v3369_v15 = vmul.f32 1.442695, %v3272_v54  ;;  %v3347_v32 = vmul.f32 1.442695, %v3261_v24 }
 0x5af   : > { %v3158_v20 = vpop.xlane.xlu1 %3157  ;;  %v9290_v16 = vpop.xlane.xlu0 %3187 }
 0x5b0   : > { %10227 = vst [vmem:[#allocation51_spill] sm:$0xff] %v9290_v16  ;;  %7148 = vpow2.f32 %v3369_v15  ;;  %v3262_v53 = vsub.f32 %v9017_v17, %v3158_v20 }
 0x5b1   : > { %v9292_v5 = vpop.eup %7140  ;;  %7150 = vpow2.f32 %v3341_v21 }
 0x5b2   : > { %3499 = vadd.xlane.f32.xlu0 %v9292_v5  ;;  %7152 = vpow2.f32 %v3347_v32  ;;  %v3349_v52 = vmul.f32 1.442695, %v3262_v53 }
 0x5b3   : > { %v9295_v57 = vpop.xlane.xlu1 %3189  ;;  %v3152_v1 = vpop.xlane.xlu0 %3151 }
 0x5b4   : > { %v3259_v60 = vsub.f32 %v9027_v3, %v3152_v1 }
 0x5b5   : > { %v9299_v61 = vpop.eup %7142 }
 0x5b6   : > { %v3343_v22 = vmul.f32 1.442695, %v3259_v60  ;;  %3463 = vadd.xlane.f32.xlu0 %v9299_v61 }
 0x5b7   : > { %v3154_v37 = vpop.xlane.xlu1 %3153  ;;  %v9302_v58 = vpop.xlane.xlu0 %3183 }
 0x5b8   : > { %v3260_v19 = vsub.f32 %v9041_v36, %v3154_v37  ;;  %7154 = vpow2.f32 %v3343_v22 }
 0x5b9   : > { %v9305_v62 = vpop.eup %7144 }
 0x5ba   : > { %v9307_v48 = vpop.eup %7146  ;;  %v3345_v28 = vmul.f32 1.442695, %v3260_v19  ;;  %3465 = vadd.xlane.f32.xlu1 %v9305_v62 }
 0x5bb   : > { %3495 = vadd.xlane.f32.xlu0 %v9307_v48  ;;  %v9311_v17 = vpop.xlane.xlu1 %3185  ;;  %v3164_v3 = vpop.xlane.xlu0 %3163 }
 0x5bc   : > { %7156 = vpow2.f32 %v3345_v28  ;;  %v3265_v39 = vsub.f32 %v9047_v9, %v3164_v3 }
 0x5bd   : > { %v9314_v54 = vpop.eup %7148  ;;  %7158 = vpow2.f32 %v3349_v52 }
 0x5be   : > { %v9316_v36 = vpop.eup %7150  ;;  %v3355_v24 = vmul.f32 1.442695, %v3265_v39  ;;  %3497 = vadd.xlane.f32.xlu1 %v9314_v54 }
 0x5bf   : > { %3469 = vadd.xlane.f32.xlu0 %v9316_v36  ;;  %v3166_v21 = vpop.xlane.xlu1 %3165  ;;  %v9320_v15 = vpop.xlane.xlu0 %3195 }
 0x5c0   : > { %10228 = vst [vmem:[#allocation52_spill] sm:$0xff] %v9320_v15  ;;  %v9322_v20 = vpop.eup %7152  ;;  %7160 = vpow2.f32 %v3355_v24  ;;  %v3266_v60 = vsub.f32 %v9057_v23, %v3166_v21 }
 0x5c2   : > { %3475 = vadd.xlane.f32.xlu1 %v9322_v20  ;;  %v3357_v3 = vmul.f32 1.442695, %v3266_v60 }
 0x5c3   : > { %v9325_v32 = vpop.xlane.xlu1 %3197  ;;  %v3160_v9 = vpop.xlane.xlu0 %3159 }
 0x5c4   : > { %10229 = vst [vmem:[#allocation53_spill] sm:$0xff] %v9325_v32  ;;  %v3263_v1 = vsub.f32 %v9069_v7, %v3160_v9 }
 0x5c5   : > { %v9329_v53 = vpop.eup %7154 }
 0x5c6   : > { %v3351_v22 = vmul.f32 1.442695, %v3263_v1  ;;  %3471 = vadd.xlane.f32.xlu0 %v9329_v53 }
 0x5c7   : > { %v3162_v37 = vpop.xlane.xlu1 %3161  ;;  %v9332_v19 = vpop.xlane.xlu0 %3191 }
 0x5c8   : > { %10230 = vst [vmem:[#allocation54_spill] sm:$0xff] %v9332_v19  ;;  %v3264_v52 = vsub.f32 %v9084_v11, %v3162_v37  ;;  %7162 = vpow2.f32 %v3351_v22  ;;  %v3274_v11 = vsub.f32 %v8991_v33, %v9282_v40 }
 0x5c9   : > { %v9335_v28 = vpop.eup %7156 }
 0x5ca   : > { %v9337_v39 = vpop.eup %7158  ;;  %v3353_v24 = vmul.f32 1.442695, %v3264_v52  ;;  %3473 = vadd.xlane.f32.xlu1 %v9335_v28  ;;  %v3373_v37 = vmul.f32 1.442695, %v3274_v11 }
 0x5cb   : > { %3477 = vadd.xlane.f32.xlu0 %v9337_v39  ;;  %v9341_v23 = vpop.xlane.xlu1 %3193  ;;  %v3172_v7 = vpop.xlane.xlu0 %3171 }
 0x5cc   : > { %10231 = vst [vmem:[#allocation55_spill] sm:$0xff] %v9341_v23  ;;  %7164 = vpow2.f32 %v3353_v24  ;;  %v3269_v21 = vsub.f32 %v9092_v49, %v3172_v7 }
 0x5cd   : > { %7166 = vpow2.f32 %v3357_v3  ;;  %v9346_v9 = vpop.eup %7160 }
 0x5ce   : > { %v3363_v1 = vmul.f32 1.442695, %v3269_v21  ;;  %3483 = vadd.xlane.f32.xlu1 %v9346_v9 }
 0x5cf   : > { %v9349_v60 = vpop.xlane.xlu1 %3199  ;;  %v9351_v22 = vpop.xlane.xlu0 %3203 }
 0x5d0   : > { %10232 = vst [vmem:[#allocation56_spill] sm:$0xff] %v9349_v60  ;;  %10233 = vst [vmem:[#allocation57_spill] sm:$0xff] %v9351_v22  ;;  %7168 = vpow2.f32 %v3363_v1 }
 0x5d1   : > { %7170 = vpow2.f32 %v3373_v37 }
 0x5d3   : > { %v3174_v52 = vpop.xlane.xlu1 %3173  ;;  %v3168_v15 = vpop.xlane.xlu0 %3167 }
 0x5d4   : > { %v3267_v24 = vsub.f32 %v9116_v31, %v3168_v15  ;;  %v3270_v49 = vsub.f32 %v9120_v34, %v3174_v52 }
 0x5d5   : > { %v9355_v33 = vpop.eup %7162 }
 0x5d6   : > { %v3359_v40 = vmul.f32 1.442695, %v3267_v24  ;;  %3479 = vadd.xlane.f32.xlu0 %v9355_v33  ;;  %v3365_v11 = vmul.f32 1.442695, %v3270_v49 }
 0x5d7   : > { %v9358_v3 = vpop.xlane.xlu1 %3205  ;;  %v9360_v7 = vpop.xlane.xlu0 %3201 }
 0x5d8   : > { %10234 = vst [vmem:[#allocation58_spill] sm:$0xff] %v9358_v3  ;;  %10235 = vst [vmem:[#allocation59_spill] sm:$0xff] %v9360_v7  ;;  %7172 = vpow2.f32 %v3359_v40 }
 0x5d9   : > { %v9362_v21 = vpop.eup %7164  ;;  %7174 = vpow2.f32 %v3365_v11 }
 0x5da   : > { %v9364_v1 = vpop.eup %7166  ;;  %3481 = vadd.xlane.f32.xlu1 %v9362_v21 }
 0x5db   : > { %3485 = vadd.xlane.f32.xlu0 %v9364_v1  ;;  %v3170_v31 = vpop.xlane.xlu1 %3169  ;;  %v3436_v34 = vpop.xlane.xlu0 %3435 }
 0x5dc   : > { %v3268_v15 = vsub.f32 %v9143_v2, %v3170_v31  ;;  %7176 = vrcp.f32 %v3436_v34 }
 0x5dd   : > { %v9369_v37 = vpop.eup %7168 }
 0x5de   : > { %10236 = vst [vmem:[#allocation60_spill] sm:$0xff] %v9369_v37  ;;  %v3361_v52 = vmul.f32 1.442695, %v3268_v15  ;;  %3491 = vadd.xlane.f32.xlu1 %v9369_v37  ;;  %v9372_v40 = vpop.eup %7170 }
 0x5df   : > { %v3432_v24 = vpop.xlane.xlu1 %3431  ;;  %v3434_v49 = vpop.xlane.xlu0 %3433 }
 0x5e0   : > { %7178 = vpow2.f32 %v3361_v52 }
 0x5e1   : > { %7180 = vrcp.f32 %v3432_v24 }
 0x5e2   : > { %7182 = vrcp.f32 %v3434_v49  ;;  %3501 = vadd.xlane.f32.xlu1 %v9372_v40 }
 0x5e3   : > { %v3438_v22 = vpop.xlane.xlu1 %3437  ;;  %v3444_v60 = vpop.xlane.xlu0 %3443 }
 0x5e4   : > { %7184 = vrcp.f32 %v3438_v22 }
 0x5e5   : > { %v9375_v2 = vpop.eup %7172 }
 0x5e6   : > { %3487 = vadd.xlane.f32.xlu0 %v9375_v2  ;;  %v9378_v34 = vpop.eup %7174 }
 0x5e7   : > { %v3440_v11 = vpop.xlane.xlu1 %3439  ;;  %v3442_v31 = vpop.xlane.xlu0 %3441 }
 0x5e8   : > { %7186 = vrcp.f32 %v3440_v11 }
 0x5e9   : > { %7188 = vrcp.f32 %v3442_v31  ;;  %v7177_v24 = vpop.eup %7176 }
 0x5ea   : > { %7190 = vrcp.f32 %v3444_v60  ;;  %3493 = vadd.xlane.f32.xlu0 %v9378_v34  ;;  %v3625_v23 = vmul.f32 %v7177_v24, %v9139_v47  ;;  %v7013_v24 = vld [vmem:[#allocation4 + $0xa8] sm:$0xff]  }
 0x5eb   : > { %v3446_v15 = vpop.xlane.xlu1 %3445  ;;  %v3452_v52 = vpop.xlane.xlu0 %3451 }
 0x5ec   : > { %7192 = vrcp.f32 %v3446_v15 }
 0x5ed   : > { %v9381_v49 = vpop.eup %7178 }
 0x5ee   : > { %10237 = vst [vmem:[#allocation61_spill] sm:$0xff] %v9381_v49  ;;  %v7181_v22 = vpop.eup %7180  ;;  %3489 = vadd.xlane.f32.xlu0 %v9381_v49 }
 0x5ef   : > { %v7183_v3 = vpop.eup %7182  ;;  %v3448_v19 = vpop.xlane.xlu1 %3447  ;;  %v3623_v11 = vmul.f32 %v7181_v22, %v9147_v41 }
 0x5f0   : > { %v3450_v7 = vpop.xlane.xlu0 %3449  ;;  %7194 = vrcp.f32 %v3448_v19  ;;  %v3624_v31 = vmul.f32 %v7183_v3, %v9150_v63  ;;  %v7012_v63 = vld [vmem:[#allocation4 + $0xb0] sm:$0xff]  }
 0x5f1   : > { %v7185_v60 = vpop.eup %7184  ;;  %7196 = vrcp.f32 %v3450_v7 }
 0x5f2   : > { %7198 = vrcp.f32 %v3452_v52  ;;  %v3687_v32 = vpack.c.bf16 %v3624_v31, %v3623_v11  ;;  %v3626_v15 = vmul.f32 %v7185_v60, %v9154_v18  ;;  %v7014_v31 = vld [vmem:[#allocation4 + $0xa0] sm:$0xff]  }
 0x5f3   : > { %v3454_v16 = vpop.xlane.xlu1 %3453  ;;  %1902 = vrot.lane.b32.xlu1 %v8321_v43, %s7721_s16 }
 0x5f4   : > { %v3212_v37 = vpop.xlane.xlu0 %3211  ;;  %6555 = vmatprep.mubr.bf16.mxu0 %v3687_v32  ;;  %7200 = vrcp.f32 %v3454_v16  ;;  %v3688_v49 = vpack.c.bf16 %v3626_v15, %v3625_v23 }
 0x5f5   : > { %v7187_v41 = vpop.eup %7186 }
 0x5f6   : > { %v7189_v19 = vpop.eup %7188  ;;  %6556 = vmatmul.mubr.bf16.vlgmr.msra.gmra.mxu0 %v3688_v49  ;;  %v3627_v3 = vmul.f32 %v7187_v41, %v9164_v4 }
 0x5f7   : > { %v7191_v7 = vpop.eup %7190  ;;  %6604 = vmatpush3.bf16.msra.mxu0 %v8966_v25  ;;  %v9392_v47 = vpop.xlane.xlu1 %3213  ;;  %v3628_v52 = vmul.f32 %v7189_v19, %v9161_v38 }
 0x5f8   : > { %v3460_v18 = vpop.xlane.xlu0 %3459  ;;  %6605 = vmatprep.subr.bf16.mxu0 %v7012_v63  ;;  %v3629_v43 = vmul.f32 %v7191_v7, %v9157_v56 }
 0x5f9   : > { %v7193_v16 = vpop.eup %7192  ;;  %v3689_v32 = vpack.c.bf16 %v3628_v52, %v3627_v3 }
 0x5fa   : > { %v3630_v23 = vmul.f32 %v7193_v16, %v9168_v42 }
 0x5fb   : > { %6559 = vmatprep.mubr.bf16.mxu0 %v3689_v32  ;;  %6606 = vmatpush3.bf16.msra.mxu0 %v7012_v63  ;;  %v3462_v49 = vpop.xlane.xlu1 %3461  ;;  %v3289_v63 = vsub.f32 %v9186_v8, %v3212_v37 }
 0x5fc   : > { %v3208_v4 = vpop.xlane.xlu0 %3207  ;;  %6607 = vmatprep.subr.bf16.mxu0 %v7013_v24  ;;  %v3690_v22 = vpack.c.bf16 %v3630_v23, %v3629_v43  ;;  %7202 = vrcp.f32 %v3462_v49 }
 0x5fd   : > { %v7195_v25 = vpop.eup %7194  ;;  %v3287_v8 = vsub.f32 %v9202_v26, %v3208_v4 }
 0x5fe   : > { %v7197_v11 = vpop.eup %7196  ;;  %6560 = vmatmul.mubr.bf16.gmra.mxu0 %v3690_v22  ;;  %v3631_v38 = vmul.f32 %v7195_v25, %v9178_v59  ;;  %v3290_v22 = vsub.f32 %v9194_v50, %v9392_v47 }
 0x5ff   : > { %v7199_v60 = vpop.eup %7198  ;;  %6608 = vmatpush3.bf16.msra.mxu0 %v7013_v24  ;;  %v3210_v15 = vpop.xlane.xlu1 %3209  ;;  %v3632_v41 = vmul.f32 %v7197_v11, %v9175_v35  ;;  %v3403_v35 = vmul.f32 1.442695, %v3289_v63 }
 0x600   : > { %6609 = vmatprep.subr.bf16.mxu0 %v7014_v31  ;;  %v3456_v56 = vpop.xlane.xlu0 %3455  ;;  %v3633_v3 = vmul.f32 %v7199_v60, %v9171_v45  ;;  %v3288_v24 = vsub.f32 %v9210_v29, %v3210_v15 }
 0x601   : > { %v7201_v42 = vpop.eup %7200  ;;  %v3691_v19 = vpack.c.bf16 %v3632_v41, %v3631_v38  ;;  %7204 = vrcp.f32 %v3456_v56 }
 0x602   : > { %v3634_v7 = vmul.f32 %v7201_v42, %v9182_v0  ;;  %7206 = vrcp.f32 %v3460_v18  ;;  %v3399_v0 = vmul.f32 1.442695, %v3287_v8  ;;  %v3401_v26 = vmul.f32 1.442695, %v3288_v24 }
 0x603   : > { %6563 = vmatprep.mubr.bf16.mxu0 %v3691_v19  ;;  %6610 = vmatpush3.bf16.msra.mxu0 %v7014_v31  ;;  %v3458_v59 = vpop.xlane.xlu1 %3457 }
 0x604   : > { %v3692_v52 = vpack.c.bf16 %v3634_v7, %v3633_v3  ;;  %7208 = vrcp.f32 %v3458_v59  ;;  %1900 = vrot.lane.b32.xlu0 %v8297_v27, %s7721_s16 }
 0x605   : > { %7210 = vpow2.f32 %v3403_v35 }
 0x606   : > { %6564 = vmatmul.mubr.bf16.gmra.mxu0 %v3692_v52  ;;  %7212 = vpow2.f32 %v3399_v0 }
 0x607   : > { %7214 = vpow2.f32 %v3401_v26 }
 0x609   : > { %v7203_v37 = vpop.eup %7202 }
 0x60a   : > { %v3638_v43 = vmul.f32 %v7203_v37, %v9198_v30  ;;  %v9415_v30 = vpop.xlane.xlu0 %3219 }
 0x60e   : > { %v7205_v16 = vpop.eup %7204 }
 0x60f   : > { %v7207_v45 = vpop.eup %7206  ;;  %v3635_v18 = vmul.f32 %v7205_v16, %v9206_v12  ;;  %v3405_v12 = vmul.f32 1.442695, %v3290_v22 }
 0x610   : > { %v3637_v27 = vmul.f32 %v7207_v45, %v9190_v10  ;;  %v9419_v10 = vpop.xlane.xlu0 %3215 }
 0x611   : > { %v7209_v32 = vpop.eup %7208  ;;  %7216 = vpow2.f32 %v3405_v12 }
 0x612   : > { %v3636_v23 = vmul.f32 %v7209_v32, %v9214_v44  ;;  %v3694_v4 = vpack.c.bf16 %v3638_v43, %v3637_v27  ;;  %v9412_v25 = vpop.eup %7210  ;;  %v9417_v44 = vpop.xlane.xlu1 %3221 }
 0x613   : > { %v9423_v50 = vpop.eup %7212 }
 0x614   : > { %v3693_v49 = vpack.c.bf16 %v3636_v23, %v3635_v18  ;;  %v9426_v47 = vpop.xlane.xlu0 %3227  ;;  %v9428_v11 = vpop.eup %7214 }
 0x616   : > { %6567 = vmatprep.mubr.bf16.mxu0 %v3693_v49  ;;  %v9421_v29 = vpop.xlane.xlu1 %3217 }
 0x617   : > { %3531 = vadd.xlane.f32.xlu1 %v9412_v25  ;;  %6568 = vmatmul.mubr.bf16.gmra.mxu0 %v3694_v4  ;;  %v10240_v4 = vld [vmem:[#allocation28_spill] sm:$0xff] }
 0x618   : > { %v9437_v60 = vpop.xlane.xlu0 %3223  ;;  %v3275_v12 = vsub.f32 %v10240_v4, %v9302_v58 }
 0x61a   : > { %v9430_v31 = vpop.xlane.xlu1 %3229 }
 0x61c   : > { %v9444_v41 = vpop.xlane.xlu0 %3231 }
 0x61e   : > { %v9435_v38 = vpop.eup %7216  ;;  %v9440_v15 = vpop.xlane.xlu1 %3225 }
 0x620   : > { %v9452_v42 = vpop.xlane.xlu0 %3237 }
 0x622   : > { %v9448_v56 = vpop.xlane.xlu1 %3235 }
 0x623   : > { %3527 = vadd.xlane.f32.xlu0 %v9423_v50 }
 0x626   : > { %v9454_v19 = vpop.xlane.xlu1 %3233 }
 0x627   : > { %3529 = vadd.xlane.f32.xlu0 %v9428_v11 }
 0x628   : > { %1703 = vrot.lane.b32.xlu1 %v8259_v13, %s7720_s14 }
 0x62a   : > { %v3468_v3 = vpop.xlane.xlu1 %3467 }
 0x62b   : > { %3533 = vadd.xlane.f32.xlu0 %v9435_v38 }
 0x62c   : > { %1896 = vrot.lane.b32.xlu1 %v8235_v51, %s7721_s16 }
 0x630   : > { %1898 = vrot.lane.b32.xlu1 %v8259_v13, %s7721_s16 }
 0x634   : > { %1699 = vrot.lane.b32.xlu1 %v8273_v6, %s7720_s14 }
 0x638   : > { %1894 = vrot.lane.b32.xlu1 %v8273_v6, %s7721_s16 }
 0x63b   : > { %v9458_v63 = vpop.xlane.xlu0 %3499 }
 0x63c   : > { %1695 = vrot.lane.b32.xlu1 %v8213_v14, %s7720_s14 }
 0x63f   : > { %v3464_v7 = vpop.xlane.xlu0 %3463 }
 0x640   : > { %1890 = vrot.lane.b32.xlu1 %v8213_v14, %s7721_s16  ;;  %7218 = vrcp.f32 %v3464_v7  ;;  %v7015_v7 = vld [vmem:[#allocation4 + $0xf0] sm:$0xff]  }
 0x641   : > { %1701 = vrot.lane.b32.xlu0 %v8235_v51, %s7720_s14  ;;  %v10238_v51 = vld [vmem:[#allocation29_spill] sm:$0xff] }
 0x642   : > { %v3276_v35 = vsub.f32 %v10238_v51, %v9311_v17 }
 0x643   : > { %v3466_v13 = vpop.xlane.xlu1 %3465 }
 0x644   : > { %7220 = vrcp.f32 %v3466_v13  ;;  %v3496_v59 = vpop.xlane.xlu0 %3495  ;;  %v7426_v13 = vld [vmem:[#allocation4 + $0xf8] sm:$0xff]  }
 0x645   : > { %7222 = vrcp.f32 %v3496_v59  ;;  %1697 = vrot.lane.b32.xlu0 %v8248_v55, %s7720_s14  ;;  %v3375_v59 = vmul.f32 1.442695, %v3275_v12 }
 0x646   : > { %7224 = vrcp.f32 %v3468_v3 }
 0x647   : > { %v3498_v6 = vpop.xlane.xlu1 %3497 }
 0x648   : > { %7226 = vrcp.f32 %v3498_v6  ;;  %v3470_v52 = vpop.xlane.xlu0 %3469 }
 0x649   : > { %7228 = vrcp.f32 %v3470_v52  ;;  %1892 = vrot.lane.b32.xlu0 %v8248_v55, %s7721_s16  ;;  %v3377_v55 = vmul.f32 1.442695, %v3276_v35 }
 0x64b   : > { %v3476_v8 = vpop.xlane.xlu1 %3475 }
 0x64d   : > { %1693 = vrot.lane.b32.xlu0 %v8192_v46, %s7720_s14  ;;  %v7219_v14 = vpop.eup %7218 }
 0x64e   : > { %v3639_v45 = vmul.f32 %v7219_v14, %v9299_v61  ;;  %v10239_v61 = vld [vmem:[#allocation50_spill] sm:$0xff] }
 0x64f   : > { %v3472_v37 = vpop.xlane.xlu0 %3471 }
 0x650   : > { %7230 = vrcp.f32 %v3472_v37 }
 0x651   : > { %v7221_v16 = vpop.eup %7220  ;;  %1888 = vrot.lane.b32.xlu0 %v8192_v46, %s7721_s16  ;;  %7232 = vrcp.f32 %v3476_v8 }
 0x652   : > { %v3640_v32 = vmul.f32 %v7221_v16, %v9305_v62  ;;  %v7223_v0 = vpop.eup %7222 }
 0x653   : > { %v3474_v24 = vpop.xlane.xlu1 %3473  ;;  %v7225_v43 = vpop.eup %7224  ;;  %v3655_v49 = vmul.f32 %v7223_v0, %v9307_v48 }
 0x654   : > { %7234 = vrcp.f32 %v3474_v24  ;;  %v3478_v18 = vpop.xlane.xlu0 %3477  ;;  %v3695_v23 = vpack.c.bf16 %v3640_v32, %v3639_v45  ;;  %v3641_v22 = vmul.f32 %v7225_v43, %v10239_v61 }
 0x655   : > { %v7227_v17 = vpop.eup %7226  ;;  %7236 = vrcp.f32 %v3478_v18 }
 0x656   : > { %v7229_v27 = vpop.eup %7228  ;;  %6587 = vmatprep.mubr.bf16.mxu1 %v3695_v23  ;;  %v3656_v46 = vmul.f32 %v7227_v17, %v9314_v54  ;;  %7238 = vpow2.f32 %v3377_v55  ;;  %v7016_v54 = vld [vmem:[#allocation4 + $0xe8] sm:$0xff]  }
 0x657   : > { %v3642_v62 = vmul.f32 %v7229_v27, %v9316_v36  ;;  %v3484_v6 = vpop.xlane.xlu1 %3483  ;;  %7240 = vpow2.f32 %v3375_v59  ;;  %v10242_v59 = vld [vmem:[#allocation27_spill] sm:$0xff] }
 0x658   : > { %v3703_v26 = vpack.c.bf16 %v3656_v46, %v3655_v49 }
 0x659   : > { %v3696_v3 = vpack.c.bf16 %v3642_v62, %v3641_v22 }
 0x65a   : > { %6619 = vmatprep.mubr.bf16.mxu0 %v3703_v26  ;;  %v10241_v26 = vld [vmem:[#allocation25_spill] sm:$0xff] }
 0x65b   : > { %6588 = vmatmul.mubr.bf16.vlgmr.msra.gmra.mxu1 %v3696_v3 }
 0x65c   : > { %6636 = vmatpush3.bf16.msra.mxu1 %v7426_v13 }
 0x65d   : > { %6637 = vmatprep.subr.bf16.mxu1 %v7015_v7  ;;  %v7231_v48 = vpop.eup %7230 }
 0x65e   : > { %v7233_v52 = vpop.eup %7232  ;;  %v3643_v58 = vmul.f32 %v7231_v48, %v9329_v53  ;;  %v3278_v48 = vsub.f32 %v10242_v59, %v9295_v57  ;;  %v10246_v57 = vld [vmem:[#allocation51_spill] sm:$0xff] }
 0x65f   : > { %v3480_v14 = vpop.xlane.xlu0 %3479  ;;  %v3645_v37 = vmul.f32 %v7233_v52, %v9322_v20 }
 0x660   : > { %6638 = vmatpush3.bf16.msra.mxu1 %v7015_v7  ;;  %7242 = vrcp.f32 %v3480_v14 }
 0x661   : > { %v7235_v51 = vpop.eup %7234  ;;  %6639 = vmatprep.subr.bf16.mxu1 %v7016_v54  ;;  %7244 = vrcp.f32 %v3484_v6 }
 0x662   : > { %v7237_v36 = vpop.eup %7236  ;;  %v3644_v35 = vmul.f32 %v7235_v51, %v9335_v28  ;;  %v10244_v51 = vld [vmem:[#allocation61_spill] sm:$0xff] }
 0x663   : > { %v3482_v8 = vpop.xlane.xlu1 %3481  ;;  %v3646_v16 = vmul.f32 %v7237_v36, %v9337_v39  ;;  %v9488_v45 = vpop.eup %7238 }
 0x664   : > { %6640 = vmatpush3.bf16.msra.mxu1 %v7016_v54  ;;  %7246 = vrcp.f32 %v3482_v8  ;;  %v3486_v32 = vpop.xlane.xlu0 %3485  ;;  %v3697_v0 = vpack.c.bf16 %v3644_v35, %v3643_v58  ;;  %3505 = vadd.xlane.f32.xlu1 %v9488_v45  ;;  %v9492_v20 = vpop.eup %7240  ;;  %v3381_v58 = vmul.f32 1.442695, %v3278_v48  ;;  %v10245_v35 = vld [vmem:[#allocation60_spill] sm:$0xff] }
 0x665   : > { %7248 = vrcp.f32 %v3486_v32  ;;  %v3698_v55 = vpack.c.bf16 %v3646_v16, %v3645_v37  ;;  %v10247_v32 = vld [vmem:[#allocation26_spill] sm:$0xff] }
 0x666   : > { %6591 = vmatprep.mubr.bf16.mxu1 %v3697_v0  ;;  %7250 = vrcp.f32 %v9458_v63  ;;  %v3277_v0 = vsub.f32 %v10247_v32, %v10246_v57 }
 0x667   : > { %6592 = vmatmul.mubr.bf16.gmra.mxu1 %v3698_v55  ;;  %v3492_v53 = vpop.xlane.xlu1 %3491  ;;  %v10248_v55 = vld [vmem:[#allocation39_spill] sm:$0xff] }
 0x66b   : > { %v3502_v28 = vpop.xlane.xlu1 %3501 }
 0x66c   : > { %7252 = vrcp.f32 %v3502_v28 }
 0x66d   : > { %v7243_v39 = vpop.eup %7242 }
 0x66e   : > { %v7245_v24 = vpop.eup %7244  ;;  %v3647_v27 = vmul.f32 %v7243_v39, %v9355_v33 }
 0x66f   : > { %v1903_v43 = vpop.permute.xlu1 %1902  ;;  %v3488_v18 = vpop.xlane.xlu0 %3487  ;;  %v3649_v63 = vmul.f32 %v7245_v24, %v9346_v9 }
 0x670   : > { %1942 = vst.msk [vmem:[#allocation4 + $0xe4] sm:$0xf] %vm1187_vm0, %v1903_v43  ;;  %3503 = vadd.xlane.f32.xlu0 %v9492_v20 }
 0x671   : > { %v7247_v23 = vpop.eup %7246 }
 0x672   : > { %v7249_v17 = vpop.eup %7248  ;;  %v3648_v49 = vmul.f32 %v7247_v23, %v9362_v21 }
 0x673   : > { %v3650_v46 = vmul.f32 %v7249_v17, %v9364_v1  ;;  %v3494_v61 = vpop.xlane.xlu0 %3493  ;;  %v7251_v4 = vpop.eup %7250 }
 0x674   : > { %v3699_v22 = vpack.c.bf16 %v3648_v49, %v3647_v27  ;;  %7254 = vrcp.f32 %v3494_v61  ;;  %v9503_v21 = vmul.f32 %v7251_v4, %v9292_v5 }
 0x675   : > { %v3700_v62 = vpack.c.bf16 %v3650_v46, %v3649_v63  ;;  %1691 = vrot.lane.b32.xlu1 %v10241_v26, %s7720_s14  ;;  %7256 = vrcp.f32 %v3488_v18 }
 0x676   : > { %6595 = vmatprep.mubr.bf16.mxu1 %v3699_v22  ;;  %7258 = vrcp.f32 %v3492_v53  ;;  %v3291_v53 = vsub.f32 %v10248_v55, %v9419_v10 }
 0x677   : > { %6596 = vmatmul.mubr.bf16.gmra.mxu1 %v3700_v62  ;;  %v3490_v12 = vpop.xlane.xlu0 %3489 }
 0x678   : > { %7260 = vrcp.f32 %v3490_v12  ;;  %v3407_v28 = vmul.f32 1.442695, %v3291_v53 }
 0x679   : > { %v7253_v33 = vpop.eup %7252  ;;  %7262 = vpow2.f32 %v3381_v58 }
 0x67a   : > { %v9506_v9 = vmul.f32 %v7253_v33, %v9372_v40  ;;  %v10243_v40 = vld [vmem:[#allocation24_spill] sm:$0xff] }
 0x67b   : > { %v1901_v1 = vpop.permute.xlu0 %1900 }
 0x67c   : > { %1941 = vst.msk [vmem:[#allocation4 + $0xe0] sm:$0xf] %vm1187_vm0, %v1901_v1  ;;  %v3704_v3 = vpack.c.bf16 %v9506_v9, %v9503_v21 }
 0x681   : > { %v7255_v7 = vpop.eup %7254 }
 0x682   : > { %v7257_v13 = vpop.eup %7256  ;;  %v3654_v5 = vmul.f32 %v7255_v7, %v9378_v34  ;;  %v3379_v34 = vmul.f32 1.442695, %v3277_v0  ;;  %v10251_v7 = vld [vmem:[#allocation55_spill] sm:$0xff] }
 0x683   : > { %v7017_v6 = vld [vmem:[#allocation4 + $0xe0] sm:$0xff]   ;;  %v7259_v54 = vpop.eup %7258  ;;  %v3651_v14 = vmul.f32 %v7257_v13, %v9375_v2  ;;  %v10249_v2 = vld [vmem:[#allocation41_spill] sm:$0xff] }
 0x684   : > { %6641 = vmatprep.subr.bf16.mxu1 %v7017_v6  ;;  %v3653_v8 = vmul.f32 %v7259_v54, %v10245_v35  ;;  %7264 = vpow2.f32 %v3379_v34  ;;  %v3292_v39 = vsub.f32 %v10249_v2, %v9421_v29  ;;  %v10252_v13 = vld [vmem:[#allocation33_spill] sm:$0xff] }
 0x685   : > { %v7261_v52 = vpop.eup %7260  ;;  %6642 = vmatpush3.bf16.msra.mxu1 %v7017_v6  ;;  %7266 = vpow2.f32 %v3407_v28  ;;  %v3280_v59 = vsub.f32 %v10252_v13, %v10251_v7  ;;  %v10264_v13 = vld [vmem:[#allocation52_spill] sm:$0xff] }
 0x686   : > { %1689 = vrot.lane.b32.xlu0 %v10243_v40, %s7720_s14  ;;  %v3652_v36 = vmul.f32 %v7261_v52, %v10244_v51  ;;  %v3702_v16 = vpack.c.bf16 %v3654_v5, %v3653_v8  ;;  %v9525_v24 = vpop.eup %7262  ;;  %v3409_v43 = vmul.f32 1.442695, %v3292_v39  ;;  %s5636_s14 = scalar_lea.sflag [#allocation7], %s7966_s29 }
 0x688   : > { %v3701_v37 = vpack.c.bf16 %v3652_v36, %v3651_v14  ;;  %7268 = vpow2.f32 %v3409_v43  ;;  %v10253_v14 = vld [vmem:[#allocation53_spill] sm:$0xff]  ;;  %v3385_v36 = vmul.f32 1.442695, %v3280_v59  ;;  %v10265_v59 = vld [vmem:[#allocation30_spill] sm:$0xff] }
 0x68a   : > { %6599 = vmatprep.mubr.bf16.mxu1 %v3701_v37 }
 0x68b   : > { %6600 = vmatmul.mubr.bf16.gmra.mxu1 %v3702_v16 }
 0x691   : > { %v9528_v23 = vpop.eup %7264 }
 0x692   : > { %v9532_v10 = vpop.eup %7266 }
 0x695   : > { %v9538_v29 = vpop.eup %7268 }
 0x699   : > { %3509 = vadd.xlane.f32.xlu1 %v9525_v24 }
 0x6a0   : > { %v3532_v18 = vpop.xlane.xlu1 %3531 }
 0x6a4   : > { %v1704_v17 = vpop.permute.xlu1 %1703 }
 0x6a5   : > { %1745 = vst.msk [vmem:[#allocation4 + $0x9c] sm:$0xf] %vm1187_vm0, %v1704_v17  ;;  %3507 = vadd.xlane.f32.xlu0 %v9528_v23 }
 0x6a8   : > { %v1897_v27 = vpop.permute.xlu1 %1896 }
 0x6a9   : > { %1939 = vst.msk [vmem:[#allocation4 + $0xd8] sm:$0xf] %vm1187_vm0, %v1897_v27  ;;  %3535 = vadd.xlane.f32.xlu0 %v9532_v10  ;;  %v10259_v27 = vld [vmem:[#allocation40_spill] sm:$0xff] }
 0x6aa   : > { %1886 = vrot.lane.b32.xlu1 %v10241_v26, %s7721_s16  ;;  %v10250_v26 = vld [vmem:[#allocation38_spill] sm:$0xff] }
 0x6ab   : > { %v3293_v12 = vsub.f32 %v10250_v26, %v9415_v30  ;;  %v10254_v30 = vld [vmem:[#allocation31_spill] sm:$0xff]  ;;  %v10262_v26 = vld [vmem:[#allocation58_spill] sm:$0xff] }
 0x6ac   : > { %v1899_v49 = vpop.permute.xlu1 %1898  ;;  %v3528_v63 = vpop.xlane.xlu0 %3527  ;;  %v3282_v51 = vsub.f32 %v10254_v30, %v10253_v14 }
 0x6ad   : > { %1940 = vst.msk [vmem:[#allocation4 + $0xdc] sm:$0xf] %vm1187_vm0, %v1899_v49  ;;  %3537 = vadd.xlane.f32.xlu0 %v9538_v29  ;;  %7270 = vrcp.f32 %v3528_v63  ;;  %v3411_v6 = vmul.f32 1.442695, %v3293_v12  ;;  %v3294_v49 = vsub.f32 %v10259_v27, %v9417_v44  ;;  %v10263_v12 = vld [vmem:[#allocation36_spill] sm:$0xff] }
 0x6ae   : > { %v3389_v0 = vmul.f32 1.442695, %v3282_v51  ;;  %v10267_v51 = vld [vmem:[#allocation43_spill] sm:$0xff] }
 0x6b0   : > { %v1700_v46 = vpop.permute.xlu1 %1699  ;;  %v3530_v61 = vpop.xlane.xlu0 %3529 }
 0x6b1   : > { %1743 = vst.msk [vmem:[#allocation4 + $0x94] sm:$0xf] %vm1187_vm0, %v1700_v46  ;;  %7272 = vrcp.f32 %v3530_v61 }
 0x6b2   : > { %7274 = vrcp.f32 %v3532_v18  ;;  %v10258_v18 = vld [vmem:[#allocation37_spill] sm:$0xff] }
 0x6b4   : > { %v1895_v22 = vpop.permute.xlu1 %1894  ;;  %v3534_v62 = vpop.xlane.xlu0 %3533  ;;  %v7018_v4 = vld [vmem:[#allocation4 + $0xd8] sm:$0xff]  }
 0x6b5   : > { %1938 = vst.msk [vmem:[#allocation4 + $0xd4] sm:$0xf] %vm1187_vm0, %v1895_v22  ;;  %7276 = vrcp.f32 %v3534_v62  ;;  %6643 = vmatprep.subr.bf16.mxu1 %v7018_v4  ;;  %v10261_v22 = vld [vmem:[#allocation32_spill] sm:$0xff] }
 0x6b6   : > { %6644 = vmatpush3.bf16.msra.mxu1 %v7018_v4  ;;  %7278 = vpow2.f32 %v3411_v6 }
 0x6b7   : > { %7280 = vpow2.f32 %v3385_v36  ;;  %v3295_v36 = vsub.f32 %v10267_v51, %v9437_v60  ;;  %v7026_v51 = vld [vmem:[#allocation13 + $0x8] sm:$0xff]  }
 0x6b8   : > { %v1696_v33 = vpop.permute.xlu1 %1695  ;;  %v1702_v1 = vpop.permute.xlu0 %1701  ;;  %7282 = vpow2.f32 %v3389_v0 }
 0x6b9   : > { %1741 = vst.msk [vmem:[#allocation4 + $0x8c] sm:$0xf] %vm1187_vm0, %v1696_v33  ;;  %1744 = vst.msk [vmem:[#allocation4 + $0x98] sm:$0xf] %vm1187_vm0, %v1702_v1  ;;  %v3286_v33 = vsub.f32 %v10263_v12, %v10262_v26  ;;  %v3413_v1 = vmul.f32 1.442695, %v3294_v49 }
 0x6ba   : > { %v7271_v48 = vpop.eup %7270 }
 0x6bb   : > { %v3671_v58 = vmul.f32 %v7271_v48, %v9423_v50  ;;  %v3281_v48 = vsub.f32 %v10265_v59, %v10264_v13 }
 0x6bc   : > { %v1891_v54 = vpop.permute.xlu1 %1890  ;;  %v1698_v52 = vpop.permute.xlu0 %1697 }
 0x6bd   : > { %1936 = vst.msk [vmem:[#allocation4 + $0xcc] sm:$0xf] %vm1187_vm0, %v1891_v54  ;;  %1742 = vst.msk [vmem:[#allocation4 + $0x90] sm:$0xf] %vm1187_vm0, %v1698_v52  ;;  %v3397_v54 = vmul.f32 1.442695, %v3286_v33 }
 0x6be   : > { %v7273_v5 = vpop.eup %7272  ;;  %v10266_v52 = vld [vmem:[#allocation49_spill] sm:$0xff]  ;;  %v3387_v30 = vmul.f32 1.442695, %v3281_v48 }
 0x6bf   : > { %v3672_v35 = vmul.f32 %v7273_v5, %v9428_v11  ;;  %v7275_v8 = vpop.eup %7274  ;;  %v10255_v11 = vld [vmem:[#allocation45_spill] sm:$0xff]  ;;  %v3300_v5 = vsub.f32 %v10266_v52, %v9454_v19  ;;  %v3415_v19 = vmul.f32 1.442695, %v3295_v36  ;;  %v7027_v36 = vld [vmem:[#allocation13] sm:$0xff]  }
 0x6c0   : > { %v1893_v37 = vpop.permute.xlu0 %1892  ;;  %v7019_v16 = vld [vmem:[#allocation4 + $0x98] sm:$0xff]   ;;  %v9560_v34 = vmul.f32 %v7275_v8, %v9412_v25  ;;  %v3296_v55 = vsub.f32 %v10255_v11, %v9440_v15  ;;  %v10256_v25 = vld [vmem:[#allocation44_spill] sm:$0xff]  ;;  %v10257_v15 = vld [vmem:[#allocation59_spill] sm:$0xff] }
 0x6c1   : > { %1937 = vst.msk [vmem:[#allocation4 + $0xd0] sm:$0xf] %vm1187_vm0, %v1893_v37  ;;  %v3711_v57 = vpack.c.bf16 %v3672_v35, %v3671_v58  ;;  %6611 = vmatprep.subr.bf16.mxu0 %v7019_v16  ;;  %v3284_v17 = vsub.f32 %v10258_v18, %v10257_v15  ;;  %v10268_v58 = vld [vmem:[#allocation48_spill] sm:$0xff]  ;;  %v3425_v8 = vmul.f32 1.442695, %v3300_v5  ;;  %v10271_v11 = vld [vmem:[#allocation35_spill] sm:$0xff] }
 0x6c2   : > { %v7277_v32 = vpop.eup %7276  ;;  %6612 = vmatpush3.bf16.msra.mxu0 %v7019_v16  ;;  %v3417_v39 = vmul.f32 1.442695, %v3296_v55  ;;  %v3302_v35 = vsub.f32 %v10268_v58, %v9452_v42  ;;  %v10269_v16 = vld [vmem:[#allocation42_spill] sm:$0xff]  ;;  %v10270_v42 = vld [vmem:[#allocation56_spill] sm:$0xff] }
 0x6c3   : > { %1884 = vrot.lane.b32.xlu0 %v10243_v40, %s7721_s16  ;;  %6651 = vmatprep.mubr.bf16.mxu1 %v3711_v57  ;;  %v9563_v50 = vmul.f32 %v7277_v32, %v9435_v38  ;;  %v3298_v40 = vsub.f32 %v10256_v25, %v9430_v31  ;;  %v9577_v61 = vpop.eup %7278  ;;  %v10260_v31 = vld [vmem:[#allocation54_spill] sm:$0xff]  ;;  %v3393_v4 = vmul.f32 1.442695, %v3284_v17  ;;  %v3297_v57 = vsub.f32 %v10269_v16, %v9426_v47 }
 0x6c4   : > { %v1694_v53 = vpop.permute.xlu0 %1693  ;;  %v7020_v28 = vld [vmem:[#allocation4 + $0x90] sm:$0xff]   ;;  %7284 = vpow2.f32 %v3417_v39  ;;  %v3279_v62 = vsub.f32 %v10261_v22, %v10260_v31  ;;  %v9584_v44 = vpop.eup %7280  ;;  %v3429_v32 = vmul.f32 1.442695, %v3302_v35  ;;  %v3283_v55 = vsub.f32 %v10271_v11, %v10270_v42  ;;  %v10273_v39 = vld [vmem:[#allocation34_spill] sm:$0xff]  ;;  %v10275_v31 = vld [vmem:[#allocation47_spill] sm:$0xff] }
 0x6c5   : > { %1740 = vst.msk [vmem:[#allocation4 + $0x88] sm:$0xf] %vm1187_vm0, %v1694_v53  ;;  %v3712_v2 = vpack.c.bf16 %v9563_v50, %v9560_v34  ;;  %6613 = vmatprep.subr.bf16.mxu0 %v7020_v28  ;;  %v3421_v63 = vmul.f32 1.442695, %v3298_v40  ;;  %v9591_v14 = vpop.eup %7282  ;;  %v3419_v53 = vmul.f32 1.442695, %v3297_v57  ;;  %v3301_v22 = vsub.f32 %v10275_v31, %v9448_v56  ;;  %v9672_v34 = vpop.f32.mrf.mxu0 }
 0x6c6   : > { %6614 = vmatpush3.bf16.msra.mxu0 %v7020_v28  ;;  %v3383_v6 = vmul.f32 1.442695, %v3279_v62  ;;  %v3391_v25 = vmul.f32 1.442695, %v3283_v55  ;;  %v10272_v40 = vld [vmem:[#allocation57_spill] sm:$0xff]  ;;  %v10274_v17 = vld [vmem:[#allocation46_spill] sm:$0xff] }
 0x6c7   : > { %7286 = vpow2.f32 %v3421_v63  ;;  %v3299_v27 = vsub.f32 %v10274_v17, %v9444_v41  ;;  %v3427_v41 = vmul.f32 1.442695, %v3301_v22  ;;  %v7028_v11 = vld [vmem:[#allocation13 + $0x18] sm:$0xff]  }
 0x6c8   : > { %v1889_v38 = vpop.permute.xlu0 %1888  ;;  %v7021_v43 = vld [vmem:[#allocation4 + $0xd0] sm:$0xff]   ;;  %7288 = vpow2.f32 %v3393_v4 }
 0x6c9   : > { %1935 = vst.msk [vmem:[#allocation4 + $0xc8] sm:$0xf] %vm1187_vm0, %v1889_v38  ;;  %6645 = vmatprep.subr.bf16.mxu1 %v7021_v43  ;;  %7290 = vpow2.f32 %v3413_v1  ;;  %v3285_v38 = vsub.f32 %v10273_v39, %v10272_v40  ;;  %v7029_v40 = vld [vmem:[#allocation13 + $0x10] sm:$0xff]  }
 0x6ca   : > { %6646 = vmatpush3.bf16.msra.mxu1 %v7021_v43  ;;  %7292 = vpow2.f32 %v3383_v6 }
 0x6cb   : > { %7294 = vpow2.f32 %v3397_v54  ;;  %v3395_v18 = vmul.f32 1.442695, %v3285_v38 }
 0x6cc   : > { %v7022_v46 = vld [vmem:[#allocation4 + $0x88] sm:$0xff]   ;;  %7296 = vpow2.f32 %v3387_v30 }
 0x6cd   : > { %6615 = vmatprep.subr.bf16.mxu0 %v7022_v46  ;;  %7298 = vpow2.f32 %v3425_v8 }
 0x6ce   : > { %3539 = vadd.xlane.f32.xlu1 %v9577_v61  ;;  %6616 = vmatpush3.bf16.msra.mxu0 %v7022_v46  ;;  %7300 = vpow2.f32 %v3415_v19  ;;  %v3423_v46 = vmul.f32 1.442695, %v3299_v27 }
 0x6cf   : > { %7302 = vpow2.f32 %v3429_v32 }
 0x6d0   : > { %v7023_v7 = vld [vmem:[#allocation4 + $0xc8] sm:$0xff]   ;;  %7304 = vpow2.f32 %v3419_v53 }
 0x6d1   : > { %6647 = vmatprep.subr.bf16.mxu1 %v7023_v7  ;;  %v9598_v37 = vpop.eup %7284  ;;  %7306 = vpow2.f32 %v3391_v25 }
 0x6d2   : > { %3513 = vadd.xlane.f32.xlu1 %v9584_v44  ;;  %6648 = vmatpush3.bf16.msra.mxu1 %v7023_v7  ;;  %7308 = vpow2.f32 %v3395_v18 }
 0x6d3   : > { %7310 = vpow2.f32 %v3423_v46 }
 0x6d4   : > { %v9603_v0 = vpop.eup %7286  ;;  %7312 = vpow2.f32 %v3427_v41 }
 0x6d5   : > { %v9606_v60 = vpop.eup %7288 }
 0x6d6   : > { %3517 = vadd.xlane.f32.xlu1 %v9591_v14  ;;  %v9610_v28 = vpop.eup %7290 }
 0x6d7   : > { %v9614_v47 = vpop.eup %7292 }
 0x6d8   : > { %v9618_v43 = vpop.eup %7294 }
 0x6d9   : > { %v9622_v15 = vpop.eup %7296 }
 0x6da   : > { %3545 = vadd.xlane.f32.xlu1 %v9598_v37  ;;  %v9626_v49 = vpop.eup %7298 }
 0x6db   : > { %v9630_v63 = vpop.eup %7300 }
 0x6dc   : > { %v9634_v62 = vpop.eup %7302 }
 0x6dd   : > { %v9638_v26 = vpop.eup %7304 }
 0x6de   : > { %3549 = vadd.xlane.f32.xlu1 %v9603_v0  ;;  %v9642_v33 = vpop.eup %7306 }
 0x6df   : > { %v9645_v56 = vpop.eup %7308 }
 0x6e0   : > { %v9648_v7 = vpop.eup %7310 }
 0x6e1   : > { %v9652_v59 = vpop.eup %7312 }
 0x6e2   : > { %3521 = vadd.xlane.f32.xlu1 %v9606_v60  ;;  %3541 = vadd.xlane.f32.xlu0 %v9610_v28 }
 0x6e6   : > { %3525 = vadd.xlane.f32.xlu1 %v9618_v43  ;;  %3511 = vadd.xlane.f32.xlu0 %v9614_v47 }
 0x6ea   : > { %3553 = vadd.xlane.f32.xlu1 %v9626_v49  ;;  %3515 = vadd.xlane.f32.xlu0 %v9622_v15 }
 0x6ed   : > { %v3506_v4 = vpop.xlane.xlu1 %3505 }
 0x6ee   : > { %3543 = vadd.xlane.f32.xlu0 %v9630_v63  ;;  %3557 = vadd.xlane.f32.xlu1 %v9634_v62  ;;  %7314 = vrcp.f32 %v3506_v4 }
 0x6f1   : > { %v1692_v12 = vpop.permute.xlu1 %1691 }
 0x6f2   : > { %1739 = vst.msk [vmem:[#allocation4 + $0x84] sm:$0xf] %vm1187_vm0, %v1692_v12  ;;  %3547 = vadd.xlane.f32.xlu0 %v9638_v26 }
 0x6f6   : > { %3519 = vadd.xlane.f32.xlu0 %v9642_v33 }
 0x6f9   : > { %v3504_v1 = vpop.xlane.xlu0 %3503 }
 0x6fa   : > { %7316 = vrcp.f32 %v3504_v1  ;;  %3523 = vadd.xlane.f32.xlu0 %v9645_v56 }
 0x6fb   : > { %v7315_v48 = vpop.eup %7314 }
 0x6fc   : > { %v3660_v5 = vmul.f32 %v7315_v48, %v9488_v45 }
 0x6fd   : > { %v1690_v13 = vpop.permute.xlu0 %1689 }
 0x6fe   : > { %1738 = vst.msk [vmem:[#allocation4 + $0x80] sm:$0xf] %vm1187_vm0, %v1690_v13  ;;  %3551 = vadd.xlane.f32.xlu0 %v9648_v7 }
 0x702   : > { %3555 = vadd.xlane.f32.xlu0 %v9652_v59 }
 0x705   : > { %v7024_v6 = vld [vmem:[#allocation4 + $0x80] sm:$0xff]  }
 0x706   : > { %6617 = vmatprep.subr.bf16.mxu0 %v7024_v6 }
 0x707   : > { %v7317_v54 = vpop.eup %7316  ;;  %6618 = vmatpush3.bf16.msra.mxu0 %v7024_v6 }
 0x708   : > { %v3659_v52 = vmul.f32 %v7317_v54, %v9492_v20  ;;  %6667 = vmatprep.subr.bf16.mxu0 %v7026_v51 }
 0x70a   : > { %v3705_v30 = vpack.c.bf16 %v3660_v5, %v3659_v52  ;;  %6620 = vmatmul.mubr.bf16.vlgmr.msra.gmra.mxu0 %v3704_v3 }
 0x70b   : > { %6668 = vmatpush3.bf16.msra.mxu0 %v7026_v51 }
 0x70c   : > { %6623 = vmatprep.mubr.bf16.mxu0 %v3705_v30  ;;  %6669 = vmatprep.subr.bf16.mxu0 %v7027_v36 }
 0x70f   : > { %6670 = vmatpush3.bf16.msra.mxu0 %v7027_v36 }
 0x71b   : > { %v9682_v52 = vpop.f32.mrf.mxu1 }
 0x722   : > { %v3510_v58 = vpop.xlane.xlu1 %3509 }
 0x723   : > { %7318 = vrcp.f32 %v3510_v58 }
 0x726   : > { %v1887_v35 = vpop.permute.xlu1 %1886 }
 0x727   : > { %1934 = vst.msk [vmem:[#allocation4 + $0xc4] sm:$0xf] %vm1187_vm0, %v1887_v35 }
 0x72e   : > { %v3508_v20 = vpop.xlane.xlu0 %3507 }
 0x72f   : > { %7320 = vrcp.f32 %v3508_v20 }
 0x730   : > { %v7319_v21 = vpop.eup %7318 }
 0x731   : > { %v3662_v16 = vmul.f32 %v7319_v21, %v9525_v24  ;;  %v9669_v24 = vld [vmem:[#allocation13 + $0x28] sm:$0xff]  }
 0x732   : > { %v3536_v45 = vpop.xlane.xlu0 %3535  ;;  %6707 = vmatprep.subr.bf16.mxu0 %v9669_v24 }
 0x733   : > { %7322 = vrcp.f32 %v3536_v45 }
 0x736   : > { %v3538_v8 = vpop.xlane.xlu0 %3537 }
 0x737   : > { %7324 = vrcp.f32 %v3538_v8 }
 0x73a   : > { %v1885_v9 = vpop.permute.xlu0 %1884 }
 0x73b   : > { %1933 = vst.msk [vmem:[#allocation4 + $0xc0] sm:$0xf] %vm1187_vm0, %v1885_v9 }
 0x73c   : > { %v7321_v3 = vpop.eup %7320 }
 0x73d   : > { %v3661_v19 = vmul.f32 %v7321_v3, %v9528_v23 }
 0x73f   : > { %v3706_v57 = vpack.c.bf16 %v3662_v16, %v3661_v19 }
 0x740   : > { %v7323_v32 = vpop.eup %7322 }
 0x741   : > { %6624 = vmatmul.mubr.bf16.gmra.mxu0 %v3706_v57  ;;  %v3675_v53 = vmul.f32 %v7323_v32, %v9532_v10 }
 0x742   : > { %v7025_v42 = vld [vmem:[#allocation4 + $0xc0] sm:$0xff]  }
 0x743   : > { %6649 = vmatprep.subr.bf16.mxu1 %v7025_v42 }
 0x744   : > { %v7325_v55 = vpop.eup %7324  ;;  %6650 = vmatpush3.bf16.msra.mxu1 %v7025_v42 }
 0x745   : > { %v3676_v25 = vmul.f32 %v7325_v55, %v9538_v29  ;;  %6687 = vmatprep.subr.bf16.mxu1 %v7028_v11 }
 0x747   : > { %v3713_v39 = vpack.c.bf16 %v3676_v25, %v3675_v53  ;;  %6652 = vmatmul.mubr.bf16.vlgmr.msra.gmra.mxu1 %v3712_v2  ;;  %v9674_v2 = vpop.f32.mrf.mxu0 }
 0x748   : > { %6688 = vmatpush3.bf16.msra.mxu1 %v7028_v11 }
 0x749   : > { %6655 = vmatprep.mubr.bf16.mxu1 %v3713_v39  ;;  %6689 = vmatprep.subr.bf16.mxu1 %v7029_v40  ;;  %v9676_v4 = vpop.f32.mrf.mxu0 }
 0x74b   : > { %v9680_v54 = vpop.f32.mrf.mxu0 }
 0x74c   : > { %6690 = vmatpush3.bf16.msra.mxu1 %v7029_v40 }
 0x74d   : > { %v9686_v20 = vpop.f32.mrf.mxu0 }
 0x757   : > { %v3540_v23 = vpop.xlane.xlu1 %3539 }
 0x758   : > { %7326 = vrcp.f32 %v3540_v23 }
 0x75b   : > { %v3514_v38 = vpop.xlane.xlu1 %3513 }
 0x75f   : > { %v3518_v10 = vpop.xlane.xlu1 %3517 }
 0x763   : > { %v3546_v18 = vpop.xlane.xlu1 %3545 }
 0x765   : > { %v7327_v22 = vpop.eup %7326 }
 0x766   : > { %v3677_v13 = vmul.f32 %v7327_v22, %v9577_v61  ;;  %v9688_v61 = vpop.f32.mrf.mxu1 }
 0x767   : > { %v3550_v17 = vpop.xlane.xlu1 %3549 }
 0x76b   : > { %v3542_v29 = vpop.xlane.xlu0 %3541  ;;  %v3522_v46 = vpop.xlane.xlu1 %3521 }
 0x76c   : > { %7328 = vrcp.f32 %v3542_v29 }
 0x76d   : > { %7330 = vrcp.f32 %v3514_v38 }
 0x76f   : > { %v3512_v27 = vpop.xlane.xlu0 %3511  ;;  %v3526_v12 = vpop.xlane.xlu1 %3525 }
 0x770   : > { %7332 = vrcp.f32 %v3512_v27 }
 0x771   : > { %7334 = vrcp.f32 %v3518_v10  ;;  %v9704_v10 = vld [vmem:[#allocation13 + $0x38] sm:$0xff]  }
 0x772   : > { %6727 = vmatprep.subr.bf16.mxu1 %v9704_v10 }
 0x773   : > { %v3516_v50 = vpop.xlane.xlu0 %3515 }
 0x774   : > { %7336 = vrcp.f32 %v3516_v50 }
 0x775   : > { %7338 = vrcp.f32 %v3546_v18 }
 0x777   : > { %v3544_v31 = vpop.xlane.xlu0 %3543 }
 0x778   : > { %7340 = vrcp.f32 %v3544_v31 }
 0x779   : > { %v7329_v41 = vpop.eup %7328  ;;  %7342 = vrcp.f32 %v3550_v17 }
 0x77a   : > { %v3678_v48 = vmul.f32 %v7329_v41, %v9610_v28  ;;  %v7331_v6 = vpop.eup %7330  ;;  %v3554_v28 = vpop.xlane.xlu1 %3553 }
 0x77b   : > { %v3548_v1 = vpop.xlane.xlu0 %3547  ;;  %v3664_v58 = vmul.f32 %v7331_v6, %v9584_v44  ;;  %v9694_v44 = vpop.f32.mrf.mxu1 }
 0x77c   : > { %7344 = vrcp.f32 %v3548_v1  ;;  %v3714_v5 = vpack.c.bf16 %v3678_v48, %v3677_v13 }
 0x77d   : > { %v7333_v30 = vpop.eup %7332  ;;  %7346 = vrcp.f32 %v3522_v46 }
 0x77e   : > { %6656 = vmatmul.mubr.bf16.gmra.mxu1 %v3714_v5  ;;  %v3663_v36 = vmul.f32 %v7333_v30, %v9614_v47  ;;  %v7335_v35 = vpop.eup %7334  ;;  %v9692_v47 = vpop.f32.mrf.mxu0 }
 0x77f   : > { %v3520_v51 = vpop.xlane.xlu0 %3519  ;;  %v3666_v3 = vmul.f32 %v7335_v35, %v9591_v14  ;;  %v3558_v42 = vpop.xlane.xlu1 %3557 }
 0x780   : > { %7348 = vrcp.f32 %v3520_v51  ;;  %v3707_v45 = vpack.c.bf16 %v3664_v58, %v3663_v36  ;;  %v3949_v14 = vpop.f32.mrf.mxu1 }
 0x781   : > { %v7337_v8 = vpop.eup %7336  ;;  %7350 = vrcp.f32 %v3526_v12 }
 0x782   : > { %6627 = vmatprep.mubr.bf16.mxu0 %v3707_v45  ;;  %v3665_v9 = vmul.f32 %v7337_v8, %v9622_v15  ;;  %v7339_v19 = vpop.eup %7338  ;;  %v9698_v15 = vpop.f32.mrf.mxu0 }
 0x783   : > { %v3524_v21 = vpop.xlane.xlu0 %3523  ;;  %v3680_v53 = vmul.f32 %v7339_v19, %v9598_v37  ;;  %v9700_v39 = vpop.f32.mrf.mxu1 }
 0x784   : > { %7352 = vrcp.f32 %v3524_v21  ;;  %v3708_v16 = vpack.c.bf16 %v3666_v3, %v3665_v9  ;;  %v3820_v29 = vpop.f32.mrf.mxu0  ;;  %v4307_v21 = vpack.c.bf16 %v3949_v14, %v9688_v61  ;;  %v7031_v9 = vld [vmem:[#allocation13 + $0x20] sm:$0xff]  }
 0x785   : > { %v7341_v57 = vpop.eup %7340  ;;  %7354 = vrcp.f32 %v3554_v28  ;;  %v3962_v27 = vpop.f32.mrf.mxu1 }
 0x786   : > { %v7343_v32 = vpop.eup %7342  ;;  %6628 = vmatmul.mubr.bf16.gmra.mxu0 %v3708_v16  ;;  %v3679_v55 = vmul.f32 %v7341_v57, %v9630_v63  ;;  %v9709_v31 = vpop.f32.mrf.mxu0  ;;  %v7033_v16 = vld [vmem:[#allocation13 + $0x30] sm:$0xff]  }
 0x787   : > { %v3552_v11 = vpop.xlane.xlu0 %3551  ;;  %v3682_v38 = vmul.f32 %v7343_v32, %v9603_v0  ;;  %v9711_v41 = vpop.f32.mrf.mxu1 }
 0x788   : > { %7356 = vrcp.f32 %v3552_v11  ;;  %v3715_v40 = vpack.c.bf16 %v3680_v53, %v3679_v55  ;;  %v3833_v48 = vpop.f32.mrf.mxu0 }
 0x789   : > { %v7345_v25 = vpop.eup %7344  ;;  %7358 = vrcp.f32 %v3558_v42 }
 0x78a   : > { %v3681_v23 = vmul.f32 %v7345_v25, %v9638_v26  ;;  %v7347_v18 = vpop.eup %7346  ;;  %6659 = vmatprep.mubr.bf16.mxu1 %v3715_v40  ;;  %v6566_v58 = vpop.f32.mrf.mxu0 }
 0x78b   : > { %v3556_v63 = vpop.xlane.xlu0 %3555  ;;  %v3668_v46 = vmul.f32 %v7347_v18, %v9606_v60  ;;  %v3965_v60 = vpop.f32.mrf.mxu1 }
 0x78c   : > { %7360 = vrcp.f32 %v3556_v63  ;;  %v3716_v37 = vpack.c.bf16 %v3682_v38, %v3681_v23 }
 0x78d   : > { %v7349_v17 = vpop.eup %7348 }
 0x78e   : > { %6660 = vmatmul.mubr.bf16.gmra.mxu1 %v3716_v37  ;;  %v3667_v50 = vmul.f32 %v7349_v17, %v9642_v33  ;;  %v7351_v26 = vpop.eup %7350  ;;  %v4299_v33 = vpack.c.bf16 %v9680_v54, %v9674_v2  ;;  %v4300_v2 = vpack.c.bf16 %v9676_v4, %v9672_v34  ;;  %v3836_v54 = vpop.f32.mrf.mxu0  ;;  %v4302_v34 = vpack.c.bf16 %v9698_v15, %v9686_v20 }
 0x78f   : > { %v3670_v1 = vmul.f32 %v7351_v26, %v9618_v43  ;;  %v4308_v4 = vpack.c.bf16 %v9694_v44, %v9682_v52  ;;  %v4303_v19 = vpack.c.bf16 %v3836_v54, %v3833_v48  ;;  %v4304_v20 = vpack.c.bf16 %v6566_v58, %v9709_v31  ;;  %v7039_v48 = vld [vmem:[#allocation14 + $0x64] ss:$8 sps:$4 sm:$0xff]  }
 0x790   : > { %v3709_v0 = vpack.c.bf16 %v3668_v46, %v3667_v50  ;;  %v6569_v3 = vpop.f32.mrf.mxu0  ;;  %v4310_v44 = vpack.c.bf16 %v9711_v41, %v9700_v39 }
 0x791   : > { %v7353_v22 = vpop.eup %7352 }
 0x792   : > { %6631 = vmatprep.mubr.bf16.mxu0 %v3709_v0  ;;  %v3669_v12 = vmul.f32 %v7353_v22, %v9645_v56  ;;  %v7355_v13 = vpop.eup %7354  ;;  %v6597_v56 = vpop.f32.mrf.mxu1 }
 0x793   : > { %v3684_v51 = vmul.f32 %v7355_v13, %v9626_v49  ;;  %v4301_v49 = vpack.c.bf16 %v3820_v29, %v9692_v47  ;;  %v4309_v47 = vpack.c.bf16 %v3965_v60, %v3962_v27  ;;  %v7036_v13 = vld [vmem:[#allocation14 + $0x74] ss:$8 sps:$4 sm:$0xff]  }
 0x794   : > { %v3710_v6 = vpack.c.bf16 %v3670_v1, %v3669_v12  ;;  %v3978_v8 = vpop.f32.mrf.mxu1  ;;  %v7034_v1 = vld [vmem:[#allocation14 + $0x70] ss:$8 sps:$4 sm:$0xff]  }
 0x795   : > { %v7357_v5 = vpop.eup %7356 }
 0x796   : > { %6632 = vmatmul.mubr.bf16.gmra.mxu0 %v3710_v6  ;;  %v3683_v30 = vmul.f32 %v7357_v5, %v9648_v7  ;;  %v7359_v36 = vpop.eup %7358  ;;  %v7037_v6 = vld [vmem:[#allocation14 + $0x60] ss:$8 sps:$4 sm:$0xff]   ;;  %v7042_v5 = vld [vmem:[#allocation14 + $0x54] ss:$8 sps:$4 sm:$0xff]  }
 0x797   : > { %6671 = vmatprep.mubr.msk.bf16.mxu0 %vm2221_vm1, %v4299_v33  ;;  %v3686_v45 = vmul.f32 %v7359_v36, %v9634_v62  ;;  %v6598_v62 = vpop.f32.mrf.mxu1  ;;  %v7040_v33 = vld [vmem:[#allocation14 + $0x50] ss:$8 sps:$4 sm:$0xff]  }
 0x798   : > { %v3717_v35 = vpack.c.bf16 %v3684_v51, %v3683_v30  ;;  %v4312_v14 = vpack.c.bf16 %v6598_v62, %v6597_v56  ;;  %v7046_v62 = vld [vmem:[#allocation14 + $0x30] ss:$8 sps:$4 sm:$0xff]  }
 0x799   : > { %v7361_v43 = vpop.eup %7360  ;;  %v3981_v61 = vpop.f32.mrf.mxu1 }
 0x79a   : > { %6663 = vmatprep.mubr.bf16.mxu1 %v3717_v35  ;;  %v3685_v28 = vmul.f32 %v7361_v43, %v9652_v59  ;;  %v3849_v59 = vpop.f32.mrf.mxu0  ;;  %v4311_v11 = vpack.c.bf16 %v3981_v61, %v3978_v8 }
 0x79b   : > { %v6601_v32 = vpop.f32.mrf.mxu1 }
 0x79c   : > { %v3718_v7 = vpack.c.bf16 %v3686_v45, %v3685_v28  ;;  %v6570_v57 = vpop.f32.mrf.mxu0 }
 0x79d   : > { %v3994_v52 = vpop.f32.mrf.mxu1  ;;  %v4306_v15 = vpack.c.bf16 %v6570_v57, %v6569_v3  ;;  %v7054_v57 = vld [vmem:[#allocation14 + $0x14] ss:$8 sps:$4 sm:$0xff]  }
 0x79e   : > { %6664 = vmatmul.mubr.bf16.gmra.mxu1 %v3718_v7  ;;  %6672 = vmatmul.mubr.msk.bf16.vlgmr.msra.gmra.mxu0 %vm2221_vm1, %v4300_v2  ;;  %v7045_v2 = vld [vmem:[#allocation14 + $0x44] ss:$8 sps:$4 sm:$0xff]   ;;  %v7043_v7 = vld [vmem:[#allocation14 + $0x40] ss:$8 sps:$4 sm:$0xff]  }
 0x79f   : > { %6675 = vmatprep.mubr.msk.bf16.mxu0 %vm2221_vm1, %v4301_v49  ;;  %6691 = vmatprep.mubr.msk.bf16.mxu1 %vm2221_vm1, %v4307_v21  ;;  %v6602_v55 = vpop.f32.mrf.mxu1 }
 0x7a0   : > { %6708 = vmatpush3.bf16.msra.mxu0 %v9669_v24  ;;  %v3852_v24 = vpop.f32.mrf.mxu0  ;;  %v4314_v40 = vpack.c.bf16 %v6602_v55, %v6601_v32 }
 0x7a1   : > { %6709 = vmatprep.subr.bf16.mxu0 %v7031_v9  ;;  %v4305_v42 = vpack.c.bf16 %v3852_v24, %v3849_v59  ;;  %v3997_v53 = vpop.f32.mrf.mxu1  ;;  %v7052_v24 = vld [vmem:[#allocation14 + $0x10] ss:$8 sps:$4 sm:$0xff]  }
 0x7a2   : > { %v4313_v25 = vpack.c.bf16 %v3997_v53, %v3994_v52  ;;  %v7055_v53 = vld [vmem:[#allocation14] ss:$8 sps:$4 sm:$0xff]  }
 0x7a4   : > { %6710 = vmatpush3.bf16.msra.mxu0 %v7031_v9  ;;  %v7048_v9 = vld [vmem:[#allocation14 + $0x34] ss:$8 sps:$4 sm:$0xff]  }
 0x7a5   : > { %5082 = vmatprep.subr.bf16.mxu0 %v7036_v13 }
 0x7a6   : > { %6676 = vmatmul.mubr.msk.bf16.gmra.mxu0 %vm2221_vm1, %v4302_v34  ;;  %6692 = vmatmul.mubr.msk.bf16.vlgmr.msra.gmra.mxu1 %vm2221_vm1, %v4308_v4  ;;  %v7051_v4 = vld [vmem:[#allocation14 + $0x24] ss:$8 sps:$4 sm:$0xff]  }
 0x7a7   : > { %6679 = vmatprep.mubr.msk.bf16.mxu0 %vm2221_vm1, %v4303_v19  ;;  %6695 = vmatprep.mubr.msk.bf16.mxu1 %vm2221_vm1, %v4309_v47  ;;  %v7049_v47 = vld [vmem:[#allocation14 + $0x20] ss:$8 sps:$4 sm:$0xff]  }
 0x7a8   : > { %6728 = vmatpush3.bf16.msra.mxu1 %v9704_v10 }
 0x7a9   : > { %6729 = vmatprep.subr.bf16.mxu1 %v7033_v16 }
 0x7ac   : > { %6730 = vmatpush3.bf16.msra.mxu1 %v7033_v16 }
 0x7ae   : > { %6680 = vmatmul.mubr.msk.bf16.gmra.mxu0 %vm2221_vm1, %v4304_v20  ;;  %6696 = vmatmul.mubr.msk.bf16.gmra.mxu1 %vm2221_vm1, %v4310_v44  ;;  %v7057_v44 = vld [vmem:[#allocation14 + $0x4] ss:$8 sps:$4 sm:$0xff]  }
 0x7af   : > { %6683 = vmatprep.mubr.msk.bf16.mxu0 %vm2221_vm1, %v4305_v42  ;;  %6699 = vmatprep.mubr.msk.bf16.mxu1 %vm2221_vm1, %v4311_v11 }
 0x7b6   : > { %6684 = vmatmul.mubr.msk.bf16.gmra.mxu0 %vm2221_vm1, %v4306_v15  ;;  %6700 = vmatmul.mubr.msk.bf16.gmra.mxu1 %vm2221_vm1, %v4312_v14 }
 0x7b7   : > { %6703 = vmatprep.mubr.msk.bf16.mxu1 %vm2221_vm1, %v4313_v25  ;;  %v10276_v25 = vmov 0  }
 0x7be   : > { %6704 = vmatmul.mubr.msk.bf16.gmra.mxu1 %vm2221_vm1, %v4314_v40 }
 0x7ca   : > { %v6621_v39 = vpop.f32.mrf.mxu0 }
 0x7cc   : > { %v4091_v23 = vpop.f32.mrf.mxu0 }
 0x7ce   : > { %v6622_v38 = vpop.f32.mrf.mxu0 }
 0x7cf   : > { %v4316_v63 = vpack.c.bf16 %v6622_v38, %v6621_v39 }
 0x7d0   : > { %v4094_v10 = vpop.f32.mrf.mxu0 }
 0x7d1   : > { %v4315_v18 = vpack.c.bf16 %v4094_v10, %v4091_v23 }
 0x7d3   : > { %6711 = vmatprep.mubr.msk.bf16.mxu0 %vm2221_vm1, %v4315_v18 }
 0x7d4   : > { %6712 = vmatmul.mubr.msk.bf16.vlgmr.msra.gmra.mxu0 %vm2221_vm1, %v4316_v63 }
 0x7d5   : > { %5083 = vmatpush1.bf16.msra.mxu0 %v7034_v1 }
 0x7d6   : > { %5084 = vmatprep.subr.bf16.mxu0 %v7039_v48 }
 0x7d9   : > { %5085 = vmatpush1.bf16.msra.mxu0 %v7037_v6 }
 0x7da   : > { %5086 = vmatprep.subr.bf16.mxu0 %v7042_v5 }
 0x7dd   : > { %5087 = vmatpush1.bf16.msra.mxu0 %v7040_v33 }
 0x7de   : > { %5088 = vmatprep.subr.bf16.mxu0 %v7045_v2 }
 0x7e1   : > { %5089 = vmatpush1.bf16.msra.mxu0 %v7043_v7 }
 0x7e2   : > { %5090 = vmatprep.subr.bf16.mxu0 %v7048_v9 }
 0x7e5   : > { %5091 = vmatpush1.bf16.msra.mxu0 %v7046_v62 }
 0x7e6   : > { %5092 = vmatprep.subr.bf16.mxu0 %v7051_v4 }
 0x7e9   : > { %5093 = vmatpush1.bf16.msra.mxu0 %v7049_v47 }
 0x7ea   : > { %5094 = vmatprep.subr.bf16.mxu0 %v7054_v57 }
 0x7ed   : > { %5095 = vmatpush1.bf16.msra.mxu0 %v7052_v24 }
 0x7ee   : > { %5096 = vmatprep.subr.bf16.mxu0 %v7057_v44 }
 0x7f1   : > { %5097 = vmatpush1.bf16.msra.mxu0 %v7055_v53 }
 0x801   : > { %v6625_v29 = vpop.f32.mrf.mxu0 }
 0x803   : > { %v4107_v37 = vpop.f32.mrf.mxu0 }
 0x805   : > { %v6626_v17 = vpop.f32.mrf.mxu0 }
 0x806   : > { %v4318_v26 = vpack.c.bf16 %v6626_v17, %v6625_v29 }
 0x807   : > { %v4110_v27 = vpop.f32.mrf.mxu0  ;;  %v6653_v46 = vpop.f32.mrf.mxu1 }
 0x808   : > { %v4317_v50 = vpack.c.bf16 %v4110_v27, %v4107_v37 }
 0x809   : > { %v4236_v31 = vpop.f32.mrf.mxu1 }
 0x80a   : > { %6715 = vmatprep.mubr.msk.bf16.mxu0 %vm2221_vm1, %v4317_v50 }
 0x80b   : > { %6716 = vmatmul.mubr.msk.bf16.gmra.mxu0 %vm2221_vm1, %v4318_v26  ;;  %v6654_v0 = vpop.f32.mrf.mxu1 }
 0x80c   : > { %v4324_v12 = vpack.c.bf16 %v6654_v0, %v6653_v46 }
 0x80d   : > { %v4239_v22 = vpop.f32.mrf.mxu1 }
 0x80e   : > { %v4323_v41 = vpack.c.bf16 %v4239_v22, %v4236_v31 }
 0x810   : > { %6731 = vmatprep.mubr.msk.bf16.mxu1 %vm2221_vm1, %v4323_v41 }
 0x811   : > { %6732 = vmatmul.mubr.msk.bf16.vlgmr.msra.gmra.mxu1 %vm2221_vm1, %v4324_v12 }
 0x83e   : > { %v6657_v60 = vpop.f32.mrf.mxu1 }
 0x840   : > { %v4252_v30 = vpop.f32.mrf.mxu1 }
 0x842   : > { %v6658_v51 = vpop.f32.mrf.mxu1 }
 0x843   : > { %v4326_v56 = vpack.c.bf16 %v6658_v51, %v6657_v60 }
 0x844   : > { %v4255_v36 = vpop.f32.mrf.mxu1 }
 0x845   : > { %v4325_v58 = vpack.c.bf16 %v4255_v36, %v4252_v30 }
 0x846   : > { %v6629_v35 = vpop.f32.mrf.mxu0 }
 0x847   : > { %6735 = vmatprep.mubr.msk.bf16.mxu1 %vm2221_vm1, %v4325_v58 }
 0x848   : > { %v4123_v43 = vpop.f32.mrf.mxu0  ;;  %6736 = vmatmul.mubr.msk.bf16.gmra.mxu1 %vm2221_vm1, %v4326_v56 }
 0x84a   : > { %v6630_v28 = vpop.f32.mrf.mxu0 }
 0x84b   : > { %v4320_v49 = vpack.c.bf16 %v6630_v28, %v6629_v35 }
 0x84c   : > { %v4126_v45 = vpop.f32.mrf.mxu0 }
 0x84d   : > { %v4319_v54 = vpack.c.bf16 %v4126_v45, %v4123_v43 }
 0x84e   : > { %v6661_v8 = vpop.f32.mrf.mxu1 }
 0x84f   : > { %6719 = vmatprep.mubr.msk.bf16.mxu0 %vm2221_vm1, %v4319_v54 }
 0x850   : > { %v4268_v21 = vpop.f32.mrf.mxu1  ;;  %6720 = vmatmul.mubr.msk.bf16.gmra.mxu0 %vm2221_vm1, %v4320_v49 }
 0x852   : > { %v6662_v3 = vpop.f32.mrf.mxu1 }
 0x853   : > { %v4328_v61 = vpack.c.bf16 %v6662_v3, %v6661_v8 }
 0x854   : > { %v4271_v59 = vpop.f32.mrf.mxu1 }
 0x855   : > { %v4327_v34 = vpack.c.bf16 %v4271_v59, %v4268_v21 }
 0x856   : > { %v6633_v19 = vpop.f32.mrf.mxu0 }
 0x857   : > { %6739 = vmatprep.mubr.msk.bf16.mxu1 %vm2221_vm1, %v4327_v34 }
 0x858   : > { %v4139_v16 = vpop.f32.mrf.mxu0  ;;  %6740 = vmatmul.mubr.msk.bf16.gmra.mxu1 %vm2221_vm1, %v4328_v61 }
 0x85a   : > { %v6634_v32 = vpop.f32.mrf.mxu0 }
 0x85b   : > { %v4322_v42 = vpack.c.bf16 %v6634_v32, %v6633_v19 }
 0x85c   : > { %v4142_v52 = vpop.f32.mrf.mxu0 }
 0x85d   : > { %v4321_v20 = vpack.c.bf16 %v4142_v52, %v4139_v16 }
 0x85e   : > { %v6665_v11 = vpop.f32.mrf.mxu1  ;;  %v9762_v55 = vpop.f32.mrf.mxu0 }
 0x85f   : > { %6723 = vmatprep.mubr.msk.bf16.mxu0 %vm2221_vm1, %v4321_v20 }
 0x860   : > { %v4284_v15 = vpop.f32.mrf.mxu1  ;;  %v4417_v14 = vpop.f32.mrf.mxu0  ;;  %6724 = vmatmul.mubr.msk.bf16.gmra.mxu0 %vm2221_vm1, %v4322_v42 }
 0x861   : > { %5114 = vmatprep.mubr.bf16.mxu0 %v10276_v25 }
 0x862   : > { %v6666_v40 = vpop.f32.mrf.mxu1  ;;  %v6674_v39 = vpop.f32.mrf.mxu0 }
 0x863   : > { %v4330_v18 = vpack.c.bf16 %v6666_v40, %v6665_v11  ;;  %v9798_v11 = vld [vmem:[%s10121_s6] ss:$0 sm:$0xff] }
 0x864   : > { %v4287_v23 = vpop.f32.mrf.mxu1  ;;  %v4420_v38 = vpop.f32.mrf.mxu0 }
 0x865   : > { %v4329_v10 = vpack.c.bf16 %v4287_v23, %v4284_v15 }
 0x866   : > { %v6677_v63 = vpop.f32.mrf.mxu0  ;;  %v6693_v29 = vpop.f32.mrf.mxu1 }
 0x867   : > { %6743 = vmatprep.mubr.msk.bf16.mxu1 %vm2221_vm1, %v4329_v10  ;;  %v4885_v15 = vadd.f32 %v6693_v29, %v9762_v55 }
 0x868   : > { %v4433_v37 = vpop.f32.mrf.mxu0  ;;  %v4550_v17 = vpop.f32.mrf.mxu1  ;;  %6744 = vmatmul.mubr.msk.bf16.gmra.mxu1 %vm2221_vm1, %v4330_v18 }
 0x869   : > { %v4879_v19 = vadd.f32 %v4550_v17, %v4417_v14  ;;  %v7428_v17 = vld [vmem:[%s7972_s2 + $0x8] sm:$0xff] }
 0x86a   : > { %v6678_v27 = vpop.f32.mrf.mxu0  ;;  %v6694_v50 = vpop.f32.mrf.mxu1 }
 0x86b   : > { %v4888_v44 = vadd.f32 %v6694_v50, %v6674_v39 }
 0x86c   : > { %v4436_v46 = vpop.f32.mrf.mxu0  ;;  %v4553_v26 = vpop.f32.mrf.mxu1 }
 0x86d   : > { %v4882_v24 = vadd.f32 %v4553_v26, %v4420_v38 }
 0x86e   : > { %v6681_v31 = vpop.f32.mrf.mxu0  ;;  %v6697_v0 = vpop.f32.mrf.mxu1 }
 0x86f   : > { %v9769_v22 = vadd.f32 %v6697_v0, %v6677_v63  ;;  %v7427_v63 = vld [vmem:[%s7972_s2] sm:$0xff] }
 0x870   : > { %v4449_v41 = vpop.f32.mrf.mxu0  ;;  %v4566_v12 = vpop.f32.mrf.mxu1 }
 0x871   : > { %v9771_v1 = vadd.f32 %v4566_v12, %v4433_v37 }
 0x872   : > { %v6682_v13 = vpop.f32.mrf.mxu0  ;;  %v6698_v48 = vpop.f32.mrf.mxu1 }
 0x873   : > { %v9773_v6 = vadd.f32 %v6698_v48, %v6678_v27 }
 0x874   : > { %v4569_v5 = vpop.f32.mrf.mxu1  ;;  %v4452_v60 = vpop.f32.mrf.mxu0 }
 0x875   : > { %v9775_v33 = vadd.f32 %v4569_v5, %v4436_v46  ;;  %v7429_v46 = vld [vmem:[%s7972_s2 + $0x18] sm:$0xff] }
 0x876   : > { %v6701_v30 = vpop.f32.mrf.mxu1  ;;  %v6685_v56 = vpop.f32.mrf.mxu0 }
 0x877   : > { %v9777_v51 = vadd.f32 %v6701_v30, %v6681_v31  ;;  %v7430_v31 = vld [vmem:[%s7972_s2 + $0x10] sm:$0xff] }
 0x878   : > { %v4582_v36 = vpop.f32.mrf.mxu1  ;;  %v4465_v2 = vpop.f32.mrf.mxu0 }
 0x879   : > { %v9779_v58 = vadd.f32 %v4582_v36, %v4449_v41 }
 0x87a   : > { %v6702_v35 = vpop.f32.mrf.mxu1  ;;  %v6686_v21 = vpop.f32.mrf.mxu0 }
 0x87b   : > { %v9781_v43 = vadd.f32 %v6702_v35, %v6682_v13 }
 0x87c   : > { %v4585_v28 = vpop.f32.mrf.mxu1  ;;  %v9791_v62 = vpop.f32.mrf.mxu0 }
 0x87d   : > { %v9783_v45 = vadd.f32 %v4585_v28, %v4452_v60 }
 0x87e   : > { %v6705_v54 = vpop.f32.mrf.mxu1 }
 0x87f   : > { %v9785_v8 = vadd.f32 %v6705_v54, %v6685_v56 }
 0x880   : > { %v4598_v7 = vpop.f32.mrf.mxu1 }
 0x881   : > { %v9787_v49 = vadd.f32 %v4598_v7, %v4465_v2 }
 0x882   : > { %v6706_v9 = vpop.f32.mrf.mxu1 }
 0x883   : > { %v9789_v3 = vadd.f32 %v6706_v9, %v6686_v21 }
 0x884   : > { %v9793_v4 = vpop.f32.mrf.mxu1 }
 0x894   : > { %v6713_v59 = vpop.f32.mrf.mxu0 }
 0x895   : > { %v4886_v38 = vadd.f32 %v6713_v59, %v4885_v15 }
 0x896   : > { %v4683_v34 = vpop.f32.mrf.mxu0 }
 0x897   : > { %v4880_v16 = vadd.f32 %v4879_v19, %v4683_v34 }
 0x898   : > { %v6714_v61 = vpop.f32.mrf.mxu0 }
 0x899   : > { %v4889_v14 = vadd.f32 %v6714_v61, %v4888_v44  ;;  %v7433_v44 = vld [vmem:[%s7972_s2 + $0x38] sm:$0xff] }
 0x89a   : > { %v4686_v57 = vpop.f32.mrf.mxu0 }
 0x89b   : > { %v4883_v42 = vadd.f32 %v4882_v24, %v4686_v57 }
 0x8cb   : > { %v6717_v12 = vpop.f32.mrf.mxu0 }
 0x8cc   : > { %v4898_v59 = vadd.f32 %v6717_v12, %v9769_v22  ;;  %v7435_v12 = vld [vmem:[%s7972_s2 + $0x40] sm:$0xff] }
 0x8cd   : > { %v4699_v13 = vpop.f32.mrf.mxu0 }
 0x8ce   : > { %v4892_v60 = vadd.f32 %v9771_v1, %v4699_v13 }
 0x8cf   : > { %v6718_v48 = vpop.f32.mrf.mxu0 }
 0x8d0   : > { %v4901_v54 = vadd.f32 %v6718_v48, %v9773_v6  ;;  %v7436_v48 = vld [vmem:[%s7972_s2 + $0x48] sm:$0xff] }
 0x8d1   : > { %v6733_v47 = vpop.f32.mrf.mxu1  ;;  %v4702_v30 = vpop.f32.mrf.mxu0 }
 0x8d2   : > { %v4887_v39 = vadd.f32 %v6733_v47, %v4886_v38  ;;  %v4895_v28 = vadd.f32 %v9775_v33, %v4702_v30  ;;  %v7431_v47 = vld [vmem:[%s7972_s2 + $0x20] sm:$0xff]  ;;  %v7432_v33 = vld [vmem:[%s7972_s2 + $0x28] sm:$0xff]  ;;  %v7060_v30 = vld [vmem:[#allocation16 + $0x70] sm:$0xff]  }
 0x8d3   : > { %v4816_v32 = vpop.f32.mrf.mxu1 }
 0x8d4   : > { %v4881_v52 = vadd.f32 %v4880_v16, %v4816_v32  ;;  %v4936_v29 = vadd.f32 %v9798_v11, %v4887_v39 }
 0x8d5   : > { %v6734_v20 = vpop.f32.mrf.mxu1 }
 0x8d6   : > { %v4934_v40 = vadd.f32 %v9798_v11, %v4881_v52  ;;  %v4890_v10 = vadd.f32 %v6734_v20, %v4889_v14  ;;  %v9818_v0 = vadd.f32 %v7430_v31, %v4936_v29  ;;  %v7058_v29 = vld [vmem:[#allocation16 + $0x78] sm:$0xff]  }
 0x8d7   : > { %v4819_v53 = vpop.f32.mrf.mxu1  ;;  %6315 = vmatprep.subr.bf16.mxu1 %v7058_v29 }
 0x8d8   : > { %v4884_v23 = vadd.f32 %v4883_v42, %v4819_v53  ;;  %v9804_v37 = vadd.f32 %v7427_v63, %v4934_v40  ;;  %v4937_v50 = vadd.f32 %v9798_v11, %v4890_v10  ;;  %v7434_v40 = vld [vmem:[%s7972_s2 + $0x30] sm:$0xff] }
 0x8da   : > { %v4935_v18 = vadd.f32 %v9798_v11, %v4884_v23  ;;  %v9815_v26 = vadd.f32 %v7429_v46, %v4937_v50 }
 0x8dc   : > { %v9807_v27 = vadd.f32 %v7428_v17, %v4935_v18  ;;  %v4967_v41 = vpack.c.bf16 %v9815_v26, %v9818_v0 }
 0x8de   : > { %v4966_v55 = vpack.c.bf16 %v9807_v27, %v9804_v37 }
 0x8e0   : > { %5115 = vmatmul.mubr.bf16.vlgmr.msra.gmra.mxu0 %v4966_v55 }
 0x8e1   : > { %5124 = vmatprep.mubr.bf16.mxu0 %v10276_v25 }
 0x8e8   : > { %5125 = vmatmul.mubr.bf16.gmra.mxu0 %v4967_v41  ;;  %v7059_v41 = vld [vmem:[#allocation16 + $0x38] sm:$0xff]  }
 0x8e9   : > { %5134 = vmatprep.mubr.bf16.mxu0 %v10276_v25  ;;  %6316 = vmatpush3.bf16.msra.mxu1 %v7059_v41  ;;  %v7072_v41 = vld [vmem:[#allocation16 + $0x40] sm:$0xff]  }
 0x8ea   : > { %6317 = vmatprep.subr.bf16.mxu1 %v7060_v30 }
 0x908   : > { %v6737_v5 = vpop.f32.mrf.mxu1 }
 0x909   : > { %v4899_v19 = vadd.f32 %v6737_v5, %v4898_v59 }
 0x90a   : > { %v4832_v36 = vpop.f32.mrf.mxu1 }
 0x90b   : > { %v4893_v56 = vadd.f32 %v4892_v60, %v4832_v36  ;;  %v4940_v22 = vadd.f32 %v9798_v11, %v4899_v19  ;;  %v7438_v19 = vld [vmem:[%s7972_s2 + $0x50] sm:$0xff] }
 0x90c   : > { %v6738_v35 = vpop.f32.mrf.mxu1 }
 0x90d   : > { %v4938_v7 = vadd.f32 %v9798_v11, %v4893_v56  ;;  %v4902_v34 = vadd.f32 %v6738_v35, %v4901_v54  ;;  %v9845_v23 = vadd.f32 %v7434_v40, %v4940_v22  ;;  %v7061_v56 = vld [vmem:[#allocation16 + $0x30] sm:$0xff]   ;;  %v7062_v54 = vld [vmem:[#allocation16 + $0x68] sm:$0xff]   ;;  %v7065_v22 = vld [vmem:[#allocation16 + $0x20] sm:$0xff]  }
 0x90e   : > { %v4835_v2 = vpop.f32.mrf.mxu1  ;;  %6318 = vmatpush3.bf16.msra.mxu1 %v7061_v56  ;;  %v7439_v40 = vld [vmem:[%s7972_s2 + $0x60] sm:$0xff] }
 0x90f   : > { %v4896_v21 = vadd.f32 %v4895_v28, %v4835_v2  ;;  %v9830_v16 = vadd.f32 %v7431_v47, %v4938_v7  ;;  %v4941_v6 = vadd.f32 %v9798_v11, %v4902_v34  ;;  %v7437_v7 = vld [vmem:[%s7972_s2 + $0x58] sm:$0xff]  ;;  %v7063_v34 = vld [vmem:[#allocation16 + $0x28] sm:$0xff]   ;;  %6319 = vmatprep.subr.bf16.mxu1 %v7062_v54 }
 0x910   : > { %v6721_v9 = vpop.f32.mrf.mxu0 }
 0x911   : > { %v4939_v1 = vadd.f32 %v9798_v11, %v4896_v21  ;;  %v9842_v42 = vadd.f32 %v7433_v44, %v4941_v6  ;;  %v4910_v46 = vadd.f32 %v6721_v9, %v9777_v51  ;;  %v7064_v6 = vld [vmem:[#allocation16 + $0x60] sm:$0xff]   ;;  %v7066_v44 = vld [vmem:[#allocation16 + $0x58] sm:$0xff]  }
 0x912   : > { %v4715_v61 = vpop.f32.mrf.mxu0  ;;  %6320 = vmatpush3.bf16.msra.mxu1 %v7063_v34 }
 0x913   : > { %v9833_v57 = vadd.f32 %v7432_v33, %v4939_v1  ;;  %v4904_v20 = vadd.f32 %v9779_v58, %v4715_v61  ;;  %v4969_v18 = vpack.c.bf16 %v9842_v42, %v9845_v23  ;;  %v4918_v1 = vadd.f32 %v9793_v4, %v9791_v62  ;;  %6321 = vmatprep.subr.bf16.mxu1 %v7064_v6 }
 0x914   : > { %v6722_v24 = vpop.f32.mrf.mxu0 }
 0x915   : > { %v4968_v32 = vpack.c.bf16 %v9833_v57, %v9830_v16  ;;  %v4913_v17 = vadd.f32 %v6722_v24, %v9781_v43 }
 0x916   : > { %v4718_v53 = vpop.f32.mrf.mxu0  ;;  %6322 = vmatpush3.bf16.msra.mxu1 %v7065_v22 }
 0x917   : > { %5135 = vmatmul.mubr.bf16.gmra.mxu0 %v4968_v32  ;;  %v4907_v10 = vadd.f32 %v9783_v45, %v4718_v53  ;;  %6323 = vmatprep.subr.bf16.mxu1 %v7066_v44 }
 0x918   : > { %v6741_v52 = vpop.f32.mrf.mxu1  ;;  %5144 = vmatprep.mubr.bf16.mxu0 %v10276_v25 }
 0x919   : > { %v4911_v43 = vadd.f32 %v6741_v52, %v4910_v46  ;;  %v7071_v46 = vld [vmem:[#allocation16 + $0x8] sm:$0xff]  }
 0x91a   : > { %v4848_v15 = vpop.f32.mrf.mxu1 }
 0x91b   : > { %v4905_v14 = vadd.f32 %v4904_v20, %v4848_v15  ;;  %v4944_v35 = vadd.f32 %v9798_v11, %v4911_v43 }
 0x91c   : > { %v6742_v38 = vpop.f32.mrf.mxu1 }
 0x91d   : > { %v4942_v39 = vadd.f32 %v9798_v11, %v4905_v14  ;;  %v4914_v45 = vadd.f32 %v6742_v38, %v4913_v17  ;;  %v9873_v47 = vadd.f32 %v7438_v19, %v4944_v35  ;;  %v7067_v14 = vld [vmem:[#allocation16 + $0x18] sm:$0xff]  }
 0x91e   : > { %v4851_v58 = vpop.f32.mrf.mxu1  ;;  %6324 = vmatpush3.bf16.msra.mxu1 %v7067_v14 }
 0x91f   : > { %v4908_v63 = vadd.f32 %v4907_v10, %v4851_v58  ;;  %5145 = vmatmul.mubr.bf16.gmra.mxu0 %v4969_v18  ;;  %v9856_v13 = vadd.f32 %v7435_v12, %v4942_v39  ;;  %v4945_v36 = vadd.f32 %v9798_v11, %v4914_v45  ;;  %v7440_v10 = vld [vmem:[%s7972_s2 + $0x68] sm:$0xff]  ;;  %v7068_v39 = vld [vmem:[#allocation16 + $0x50] sm:$0xff]  }
 0x920   : > { %v6725_v50 = vpop.f32.mrf.mxu0  ;;  %5154 = vmatprep.mubr.bf16.mxu0 %v10276_v25  ;;  %6325 = vmatprep.subr.bf16.mxu1 %v7068_v39  ;;  %v7442_v45 = vld [vmem:[%s7972_s2 + $0x70] sm:$0xff] }
 0x921   : > { %v4943_v55 = vadd.f32 %v9798_v11, %v4908_v63  ;;  %v9868_v21 = vadd.f32 %v7437_v7, %v4945_v36  ;;  %v4922_v53 = vadd.f32 %v6725_v50, %v9785_v8  ;;  %v7069_v8 = vld [vmem:[#allocation16 + $0x10] sm:$0xff]   ;;  %v7070_v50 = vld [vmem:[#allocation16 + $0x48] sm:$0xff]  }
 0x922   : > { %v4731_v31 = vpop.f32.mrf.mxu0  ;;  %6326 = vmatpush3.bf16.msra.mxu1 %v7069_v8 }
 0x923   : > { %v9859_v5 = vadd.f32 %v7436_v48, %v4943_v55  ;;  %v4916_v2 = vadd.f32 %v9787_v49, %v4731_v31  ;;  %v4971_v32 = vpack.c.bf16 %v9868_v21, %v9873_v47  ;;  %v7441_v55 = vld [vmem:[%s7972_s2 + $0x78] sm:$0xff]  ;;  %6327 = vmatprep.subr.bf16.mxu1 %v7070_v50  ;;  %v7073_v48 = vld [vmem:[#allocation16] sm:$0xff]   ;;  %s5649_s2 = sshll.u32 %s10017_s22, 4  ;;  %s10070_s2 = int_to_ptr.vmem [resolvable:$true] %s5649_s2 }
 0x924   : > { %v6726_v51 = vpop.f32.mrf.mxu0  ;;  %s7627_s16 = scalar_lea.vmem %s10070_s2, 2048  ;;  %p7634_p5 = scmp.lt.s32.totalorder %s10070_s2, %s7632_s30 }
 0x925   : > { %v4970_v60 = vpack.c.bf16 %v9859_v5, %v9856_v13  ;;  %v4925_v62 = vadd.f32 %v6726_v51, %v9789_v3  ;;  %p7628_p12 = scmp.ne.s32.totalorder %s10070_s2, %s7627_s16  ;;  %p7635_p8 = scmp.lt.s32.totalorder %s7633_s12, %s7627_s16 }
 0x926   : > { %v4734_v9 = vpop.f32.mrf.mxu0  ;;  %6328 = vmatpush3.bf16.msra.mxu1 %v7071_v46 }
 0x927   : > { %5155 = vmatmul.mubr.bf16.gmra.mxu0 %v4970_v60  ;;  %v4919_v49 = vadd.f32 %v4918_v1, %v4734_v9  ;;  %6329 = vmatprep.subr.bf16.mxu1 %v7072_v41  ;;  %p7629_p0 = pnand %p7628_p12, %p10280_p13  ;;  %p7636_p7 = por %p7635_p8, %p7634_p5 }
 0x928   : > { %v6745_v28 = vpop.f32.mrf.mxu1  ;;  %5164 = vmatprep.mubr.bf16.mxu0 %v10276_v25 }
 0x929   : > { %v4923_v3 = vadd.f32 %v6745_v28, %v4922_v53  ;;  %p7630_p2 = pneg %p7629_p0 }
 0x92a   : > { %v4864_v59 = vpop.f32.mrf.mxu1  ;;  %6330 = vmatpush3.bf16.msra.mxu1 %v7073_v48 }
 0x92b   : > { %v4917_v61 = vadd.f32 %v4916_v2, %v4864_v59  ;;  %v4948_v17 = vadd.f32 %v9798_v11, %v4923_v3  ;;  %p7637_p6 = pnand %p7636_p7, %p7630_p2 }
 0x92c   : > { %v6746_v33 = vpop.f32.mrf.mxu1 }
 0x92d   : > { %v4946_v52 = vadd.f32 %v9798_v11, %v4917_v61  ;;  %v4926_v15 = vadd.f32 %v6746_v33, %v4925_v62  ;;  %v9897_v31 = vadd.f32 %v7442_v45, %v4948_v17 }
 0x92e   : > { %v4867_v24 = vpop.f32.mrf.mxu1 }
 0x92f   : > { %v4920_v20 = vadd.f32 %v4919_v49, %v4867_v24  ;;  %5165 = vmatmul.mubr.bf16.gmra.mxu0 %v4971_v32  ;;  %v9883_v38 = vadd.f32 %v7439_v40, %v4946_v52  ;;  %v4949_v63 = vadd.f32 %v9798_v11, %v4926_v15 }
 0x930   : > { %5174 = vmatprep.mubr.bf16.mxu0 %v10276_v25 }
 0x931   : > { %v4947_v4 = vadd.f32 %v9798_v11, %v4920_v20  ;;  %v9894_v29 = vadd.f32 %v7441_v55, %v4949_v63  ;;  %v10277_v11 = vld [vmem:[#allocation23_spill] sm:$0xff] }
 0x932   : > { %v10278_v43 = vsub.s32 0, %v10277_v11  ;;  %v10279_v30 = vsub.s32 1, %v10277_v11 }
 0x933   : > { %v9886_v18 = vadd.f32 %v7440_v10, %v4947_v4  ;;  %v4973_v12 = vpack.c.bf16 %v9894_v29, %v9897_v31 }
 0x935   : > { %v4972_v58 = vpack.c.bf16 %v9886_v18, %v9883_v38 }
 0x937   : > { %5175 = vmatmul.mubr.bf16.gmra.mxu0 %v4972_v58 }
 0x938   : > { %5184 = vmatprep.mubr.bf16.mxu0 %v10276_v25  ;;  %v4990_v25 = vld [vmem:[%s10123_s8] sm:$0x3] }
 0x939   : > { %v9906_v60 = vrot.slane %v4990_v25, %v10278_v43  ;;  %v9910_v36 = vrot.slane %v4990_v25, %v10279_v30 }
 0x93f   : > { %5185 = vmatmul.mubr.bf16.gmra.mxu0 %v4973_v12 }
 0x9a0   : > { %v5116_v51 = vpop.f32.mrf.mxu0 }
 0x9a1   : > { %v5117_v56 = vadd.f32 %v5116_v51, %v9906_v60 }
 0x9a2   : > { %v5118_v35 = vpop.f32.mrf.mxu0 }
 0x9a3   : > { %v5119_v28 = vadd.f32 %v5118_v35, %v9910_v36  ;;  %v5227_v2 = vmul.f32 0.70710677, %v5117_v56  ;;  %v5195_v50 = vmul.f32 0.5, %v5117_v56 }
 0x9a4   : > { %v5120_v54 = vpop.f32.mrf.mxu0 }
 0x9a5   : > { %v5228_v7 = vmul.f32 0.70710677, %v5119_v28  ;;  %v5121_v9 = vadd.f32 %v5120_v54, %v9906_v60  ;;  %v5196_v63 = vmul.f32 0.5, %v5119_v28 }
 0x9a6   : > { %v5122_v59 = vpop.f32.mrf.mxu0 }
 0x9a7   : > { %7362 = verf.f32 %v5228_v7  ;;  %v5229_v34 = vmul.f32 0.70710677, %v5121_v9  ;;  %v5123_v1 = vadd.f32 %v5122_v59, %v9910_v36  ;;  %v5197_v39 = vmul.f32 0.5, %v5121_v9 }
 0x9a8   : > { %7364 = verf.f32 %v5227_v2  ;;  %v5126_v61 = vpop.f32.mrf.mxu0 }
 0x9a9   : > { %7366 = verf.f32 %v5229_v34  ;;  %v5230_v19 = vmul.f32 0.70710677, %v5123_v1  ;;  %v5127_v33 = vadd.f32 %v5126_v61, %v9906_v60  ;;  %v5198_v8 = vmul.f32 0.5, %v5123_v1 }
 0x9aa   : > { %v5128_v49 = vpop.f32.mrf.mxu0 }
 0x9ab   : > { %7368 = verf.f32 %v5230_v19  ;;  %v5129_v6 = vadd.f32 %v5128_v49, %v9910_v36  ;;  %v5231_v32 = vmul.f32 0.70710677, %v5127_v33  ;;  %v5199_v56 = vmul.f32 0.5, %v5127_v33 }
 0x9ac   : > { %v5130_v24 = vpop.f32.mrf.mxu0 }
 0x9ad   : > { %v5232_v22 = vmul.f32 0.70710677, %v5129_v6  ;;  %v5131_v52 = vadd.f32 %v5130_v24, %v9906_v60  ;;  %v5200_v28 = vmul.f32 0.5, %v5129_v6 }
 0x9ae   : > { %v5132_v20 = vpop.f32.mrf.mxu0 }
 0x9af   : > { %7370 = verf.f32 %v5232_v22  ;;  %v5233_v62 = vmul.f32 0.70710677, %v5131_v52  ;;  %v5133_v4 = vadd.f32 %v5132_v20, %v9910_v36  ;;  %v5201_v54 = vmul.f32 0.5, %v5131_v52 }
 0x9b0   : > { %7372 = verf.f32 %v5231_v32 }
 0x9b1   : > { %7374 = verf.f32 %v5233_v62  ;;  %v5234_v44 = vmul.f32 0.70710677, %v5133_v4  ;;  %v5202_v7 = vmul.f32 0.5, %v5133_v4 }
 0x9b3   : > { %7376 = verf.f32 %v5234_v44 }
 0x9b4   : > { %v7363_v53 = vpop.eup %7362 }
 0x9b5   : > { %v7365_v15 = vpop.eup %7364  ;;  %v5292_v40 = vadd.f32 1.0, %v7363_v53 }
 0x9b6   : > { %v7367_v14 = vpop.eup %7366  ;;  %v5291_v58 = vadd.f32 1.0, %v7365_v15 }
 0x9b7   : > { %v5293_v10 = vadd.f32 1.0, %v7367_v14  ;;  %v5324_v46 = vmul.f32 %v5292_v40, %v5196_v63 }
 0x9b8   : > { %v7369_v3 = vpop.eup %7368  ;;  %v5323_v12 = vmul.f32 %v5291_v58, %v5195_v50 }
 0x9b9   : > { %v5294_v17 = vadd.f32 1.0, %v7369_v3  ;;  %v5325_v55 = vmul.f32 %v5293_v10, %v5197_v39 }
 0x9bb   : > { %v5326_v45 = vmul.f32 %v5294_v17, %v5198_v8  ;;  %v5355_v43 = vpack.c.bf16 %v5325_v55, %v5323_v12 }
 0x9bc   : > { %v7371_v41 = vpop.eup %7370 }
 0x9bd   : > { %v7373_v48 = vpop.eup %7372  ;;  %v5356_v25 = vpack.c.bf16 %v5326_v45, %v5324_v46  ;;  %v5296_v30 = vadd.f32 1.0, %v7371_v41 }
 0x9be   : > { %v7375_v11 = vpop.eup %7374  ;;  %v5295_v2 = vadd.f32 1.0, %v7373_v48 }
 0x9bf   : > { %v5297_v51 = vadd.f32 1.0, %v7375_v11  ;;  %5538 = vmatprep.mubr.bf16.mxu1 %v5356_v25  ;;  %v5328_v34 = vmul.f32 %v5296_v30, %v5200_v28 }
 0x9c0   : > { %v7377_v35 = vpop.eup %7376  ;;  %5539 = vmatmul.mubr.bf16.vlgmr.msra.gmra.mxu1 %v5355_v43  ;;  %v5327_v61 = vmul.f32 %v5295_v2, %v5199_v56 }
 0x9c1   : > { %v5298_v9 = vadd.f32 1.0, %v7377_v35  ;;  %v5329_v59 = vmul.f32 %v5297_v51, %v5201_v54 }
 0x9c3   : > { %v5330_v1 = vmul.f32 %v5298_v9, %v5202_v7  ;;  %v5357_v49 = vpack.c.bf16 %v5329_v59, %v5327_v61 }
 0x9c5   : > { %v5358_v19 = vpack.c.bf16 %v5330_v1, %v5328_v34 }
 0x9c7   : > { %5546 = vmatprep.mubr.bf16.mxu1 %v5358_v19 }
 0x9c8   : > { %5547 = vmatmul.mubr.bf16.gmra.mxu1 %v5357_v49 }
 0x9d7   : > { %v5136_v32 = vpop.f32.mrf.mxu0 }
 0x9d8   : > { %v5137_v24 = vadd.f32 %v5136_v32, %v9906_v60 }
 0x9d9   : > { %v5138_v22 = vpop.f32.mrf.mxu0 }
 0x9da   : > { %v5139_v20 = vadd.f32 %v5138_v22, %v9910_v36  ;;  %v5235_v52 = vmul.f32 0.70710677, %v5137_v24 }
 0x9db   : > { %v5140_v62 = vpop.f32.mrf.mxu0 }
 0x9dc   : > { %v5236_v6 = vmul.f32 0.70710677, %v5139_v20  ;;  %v5141_v4 = vadd.f32 %v5140_v62, %v9906_v60  ;;  %v5204_v2 = vmul.f32 0.5, %v5139_v20  ;;  %v5203_v20 = vmul.f32 0.5, %v5137_v24 }
 0x9dd   : > { %v5142_v33 = vpop.f32.mrf.mxu0 }
 0x9de   : > { %7378 = verf.f32 %v5236_v6  ;;  %v5237_v44 = vmul.f32 0.70710677, %v5141_v4  ;;  %v5143_v53 = vadd.f32 %v5142_v33, %v9910_v36  ;;  %v5205_v1 = vmul.f32 0.5, %v5141_v4 }
 0x9df   : > { %7380 = verf.f32 %v5235_v52  ;;  %v5146_v15 = vpop.f32.mrf.mxu0 }
 0x9e0   : > { %7382 = verf.f32 %v5237_v44  ;;  %v5238_v14 = vmul.f32 0.70710677, %v5143_v53  ;;  %v9925_v40 = vadd.f32 %v5146_v15, %v9906_v60  ;;  %v5206_v49 = vmul.f32 0.5, %v5143_v53 }
 0x9e1   : > { %v5148_v10 = vpop.f32.mrf.mxu0 }
 0x9e2   : > { %7384 = verf.f32 %v5238_v14  ;;  %v5149_v3 = vadd.f32 %v5148_v10, %v9910_v36  ;;  %v5239_v58 = vmul.f32 0.70710677, %v9925_v40 }
 0x9e3   : > { %v5150_v39 = vpop.f32.mrf.mxu0 }
 0x9e4   : > { %v5240_v63 = vmul.f32 0.70710677, %v5149_v3  ;;  %v5151_v8 = vadd.f32 %v5150_v39, %v9906_v60 }
 0x9e5   : > { %v5152_v17 = vpop.f32.mrf.mxu0 }
 0x9e6   : > { %7386 = verf.f32 %v5240_v63  ;;  %v5241_v50 = vmul.f32 0.70710677, %v5151_v8  ;;  %v9931_v55 = vadd.f32 %v5152_v17, %v9910_v36 }
 0x9e7   : > { %7388 = verf.f32 %v5239_v58  ;;  %v5156_v46 = vpop.f32.mrf.mxu0 }
 0x9e8   : > { %7390 = verf.f32 %v5241_v50  ;;  %v5242_v45 = vmul.f32 0.70710677, %v9931_v55  ;;  %v9935_v41 = vadd.f32 %v5156_v46, %v9906_v60  ;;  %v5208_v50 = vmul.f32 0.5, %v5149_v3 }
 0x9e9   : > { %v5158_v12 = vpop.f32.mrf.mxu0  ;;  %v5210_v3 = vmul.f32 0.5, %v9931_v55 }
 0x9ea   : > { %7392 = verf.f32 %v5242_v45  ;;  %v5243_v48 = vmul.f32 0.70710677, %v9935_v41  ;;  %v9939_v11 = vadd.f32 %v5158_v12, %v9910_v36 }
 0x9eb   : > { %v7379_v25 = vpop.eup %7378  ;;  %v5160_v43 = vpop.f32.mrf.mxu0 }
 0x9ec   : > { %v7381_v30 = vpop.eup %7380  ;;  %v9942_v51 = vadd.f32 %v5160_v43, %v9906_v60  ;;  %v5244_v54 = vmul.f32 0.70710677, %v9939_v11  ;;  %v5300_v7 = vadd.f32 1.0, %v7379_v25  ;;  %7394 = verf.f32 %v5243_v48 }
 0x9ed   : > { %v7383_v35 = vpop.eup %7382  ;;  %v5162_v28 = vpop.f32.mrf.mxu0  ;;  %v5299_v34 = vadd.f32 1.0, %v7381_v30 }
 0x9ee   : > { %v5301_v9 = vadd.f32 1.0, %v7383_v35  ;;  %v5245_v56 = vmul.f32 0.70710677, %v9942_v51  ;;  %7396 = verf.f32 %v5244_v54  ;;  %v9947_v61 = vadd.f32 %v5162_v28, %v9910_v36 }
 0x9ef   : > { %v7385_v59 = vpop.eup %7384  ;;  %v5166_v19 = vpop.f32.mrf.mxu0  ;;  %v5332_v33 = vmul.f32 %v5300_v7, %v5204_v2  ;;  %v5331_v4 = vmul.f32 %v5299_v34, %v5203_v20  ;;  %v5209_v35 = vmul.f32 0.5, %v5151_v8 }
 0x9f0   : > { %v5302_v32 = vadd.f32 1.0, %v7385_v59  ;;  %7398 = verf.f32 %v5245_v56  ;;  %v9950_v22 = vadd.f32 %v5166_v19, %v9906_v60  ;;  %v5333_v52 = vmul.f32 %v5301_v9, %v5205_v1 }
 0x9f1   : > { %v5246_v62 = vmul.f32 0.70710677, %v9947_v61  ;;  %v5168_v6 = vpop.f32.mrf.mxu0  ;;  %v5207_v9 = vmul.f32 0.5, %v9925_v40 }
 0x9f2   : > { %v5334_v44 = vmul.f32 %v5302_v32, %v5206_v49  ;;  %v5247_v14 = vmul.f32 0.70710677, %v9950_v22  ;;  %v9955_v10 = vadd.f32 %v5168_v6, %v9910_v36  ;;  %v5359_v17 = vpack.c.bf16 %v5333_v52, %v5331_v4 }
 0x9f3   : > { %v7387_v15 = vpop.eup %7386  ;;  %7400 = verf.f32 %v5246_v62  ;;  %v5170_v53 = vpop.f32.mrf.mxu0 }
 0x9f4   : > { %v7389_v58 = vpop.eup %7388  ;;  %v9958_v39 = vadd.f32 %v5170_v53, %v9906_v60  ;;  %v5360_v24 = vpack.c.bf16 %v5334_v44, %v5332_v33  ;;  %v5248_v46 = vmul.f32 0.70710677, %v9955_v10  ;;  %v5304_v12 = vadd.f32 1.0, %v7387_v15 }
 0x9f5   : > { %v7391_v63 = vpop.eup %7390  ;;  %v5172_v45 = vpop.f32.mrf.mxu0  ;;  %7402 = verf.f32 %v5247_v14  ;;  %v5303_v30 = vadd.f32 1.0, %v7389_v58 }
 0x9f6   : > { %v5305_v48 = vadd.f32 1.0, %v7391_v63  ;;  %v5249_v25 = vmul.f32 0.70710677, %v9958_v39  ;;  %5554 = vmatprep.mubr.bf16.mxu1 %v5360_v24  ;;  %7404 = verf.f32 %v5248_v46  ;;  %v9963_v2 = vadd.f32 %v5172_v45, %v9910_v36 }
 0x9f7   : > { %v7393_v43 = vpop.eup %7392  ;;  %v5176_v54 = vpop.f32.mrf.mxu0  ;;  %5555 = vmatmul.mubr.bf16.gmra.mxu1 %v5359_v17  ;;  %v5336_v8 = vmul.f32 %v5304_v12, %v5208_v50  ;;  %v5335_v49 = vmul.f32 %v5303_v30, %v5207_v9  ;;  %v5213_v50 = vmul.f32 0.5, %v9942_v51  ;;  %v5212_v45 = vmul.f32 0.5, %v9939_v11 }
 0x9f8   : > { %v5306_v28 = vadd.f32 1.0, %v7393_v43  ;;  %7406 = verf.f32 %v5249_v25  ;;  %v9967_v7 = vadd.f32 %v5176_v54, %v9906_v60  ;;  %v5337_v56 = vmul.f32 %v5305_v48, %v5209_v35 }
 0x9f9   : > { %v5250_v59 = vmul.f32 0.70710677, %v9963_v2  ;;  %v5178_v34 = vpop.f32.mrf.mxu0  ;;  %v7395_v19 = vpop.eup %7394  ;;  %v5214_v12 = vmul.f32 0.5, %v9947_v61  ;;  %v5211_v30 = vmul.f32 0.5, %v9935_v41 }
 0x9fa   : > { %v5338_v1 = vmul.f32 %v5306_v28, %v5210_v3  ;;  %v5251_v32 = vmul.f32 0.70710677, %v9967_v7  ;;  %v9973_v55 = vadd.f32 %v5178_v34, %v9910_v36  ;;  %v5361_v33 = vpack.c.bf16 %v5337_v56, %v5335_v49 }
 0x9fb   : > { %7408 = verf.f32 %v5250_v59  ;;  %v5180_v20 = vpop.f32.mrf.mxu0  ;;  %v7397_v52 = vpop.eup %7396  ;;  %v5307_v17 = vadd.f32 1.0, %v7395_v19 }
 0x9fc   : > { %v9976_v62 = vadd.f32 %v5180_v20, %v9906_v60  ;;  %v5362_v40 = vpack.c.bf16 %v5338_v1, %v5336_v8  ;;  %v5252_v44 = vmul.f32 0.70710677, %v9973_v55  ;;  %7410 = verf.f32 %v5251_v32 }
 0x9fd   : > { %v7399_v6 = vpop.eup %7398  ;;  %v5182_v15 = vpop.f32.mrf.mxu0  ;;  %v5308_v58 = vadd.f32 1.0, %v7397_v52  ;;  %v5339_v61 = vmul.f32 %v5307_v17, %v5211_v30 }
 0x9fe   : > { %v5309_v4 = vadd.f32 1.0, %v7399_v6  ;;  %v5253_v14 = vmul.f32 0.70710677, %v9976_v62  ;;  %v9981_v53 = vadd.f32 %v5182_v15, %v9910_v36  ;;  %5562 = vmatprep.mubr.bf16.mxu1 %v5362_v40  ;;  %7412 = verf.f32 %v5252_v44 }
 0x9ff   : > { %v5186_v24 = vpop.f32.mrf.mxu0  ;;  %5563 = vmatmul.mubr.bf16.gmra.mxu1 %v5361_v33  ;;  %v5340_v3 = vmul.f32 %v5308_v58, %v5212_v45  ;;  %v5217_v33 = vmul.f32 0.5, %v9958_v39  ;;  %v5218_v44 = vmul.f32 0.5, %v9963_v2  ;;  %v5221_v30 = vmul.f32 0.5, %v9976_v62 }
 0xa00   : > { %v7401_v63 = vpop.eup %7400  ;;  %7414 = verf.f32 %v5253_v14  ;;  %v5254_v46 = vmul.f32 0.70710677, %v9981_v53  ;;  %v9988_v25 = vadd.f32 %v5186_v24, %v9906_v60  ;;  %v5341_v35 = vmul.f32 %v5309_v4, %v5213_v50 }
 0xa01   : > { %v5310_v48 = vadd.f32 1.0, %v7401_v63  ;;  %v5188_v43 = vpop.f32.mrf.mxu0  ;;  %v5215_v14 = vmul.f32 0.5, %v9950_v22  ;;  %v5222_v22 = vmul.f32 0.5, %v9981_v53 }
 0xa02   : > { %7416 = verf.f32 %v5254_v46  ;;  %v9992_v54 = vadd.f32 %v5188_v43, %v9910_v36  ;;  %v7403_v51 = vpop.eup %7402  ;;  %v5255_v9 = vmul.f32 0.70710677, %v9988_v25  ;;  %v5363_v19 = vpack.c.bf16 %v5341_v35, %v5339_v61 }
 0xa03   : > { %v5342_v28 = vmul.f32 %v5310_v48, %v5214_v12  ;;  %v5190_v11 = vpop.f32.mrf.mxu0  ;;  %v7405_v56 = vpop.eup %7404  ;;  %v5311_v6 = vadd.f32 1.0, %v7403_v51  ;;  %v5219_v51 = vmul.f32 0.5, %v9967_v7 }
 0xa04   : > { %v5256_v59 = vmul.f32 0.70710677, %v9992_v54  ;;  %v5191_v34 = vadd.f32 %v5190_v11, %v9906_v60  ;;  %7418 = verf.f32 %v5255_v9  ;;  %v5312_v20 = vadd.f32 1.0, %v7405_v56 }
 0xa05   : > { %v7407_v8 = vpop.eup %7406  ;;  %v5192_v1 = vpop.f32.mrf.mxu0  ;;  %v5364_v41 = vpack.c.bf16 %v5342_v28, %v5340_v3  ;;  %v5216_v60 = vmul.f32 0.5, %v9955_v10  ;;  %v5343_v50 = vmul.f32 %v5311_v6, %v5215_v14  ;;  %v5220_v10 = vmul.f32 0.5, %v9973_v55 }
 0xa06   : > { %v5313_v49 = vadd.f32 1.0, %v7407_v8  ;;  %v5257_v32 = vmul.f32 0.70710677, %v5191_v34  ;;  %7420 = verf.f32 %v5256_v59  ;;  %v5193_v52 = vadd.f32 %v5192_v1, %v9910_v36 }
 0xa07   : > { %5570 = vmatprep.mubr.bf16.mxu1 %v5364_v41  ;;  %v5344_v63 = vmul.f32 %v5312_v20, %v5216_v60  ;;  %v5224_v53 = vmul.f32 0.5, %v9992_v54  ;;  %v5223_v20 = vmul.f32 0.5, %v9988_v25 }
 0xa08   : > { %v7409_v40 = vpop.eup %7408  ;;  %7422 = verf.f32 %v5257_v32  ;;  %5571 = vmatmul.mubr.bf16.gmra.mxu1 %v5363_v19  ;;  %v5258_v4 = vmul.f32 0.70710677, %v5193_v52  ;;  %v5345_v58 = vmul.f32 %v5313_v49, %v5217_v33  ;;  %v5225_v49 = vmul.f32 0.5, %v5191_v34  ;;  %v10011_v34 = vld [vmem:[%s10125_s10] ss:$0 sm:$0xff] }
 0xa09   : > { %v5314_v15 = vadd.f32 1.0, %v7409_v40  ;;  %v7411_v24 = vpop.eup %7410  ;;  %v5226_v32 = vmul.f32 0.5, %v5193_v52 }
 0xa0a   : > { %7424 = verf.f32 %v5258_v4  ;;  %v5365_v39 = vpack.c.bf16 %v5345_v58, %v5343_v50  ;;  %v5315_v2 = vadd.f32 1.0, %v7411_v24 }
 0xa0b   : > { %v5346_v17 = vmul.f32 %v5314_v15, %v5218_v44  ;;  %v7413_v36 = vpop.eup %7412 }
 0xa0c   : > { %v5316_v12 = vadd.f32 1.0, %v7413_v36  ;;  %v5347_v61 = vmul.f32 %v5315_v2, %v5219_v51 }
 0xa0d   : > { %v7415_v46 = vpop.eup %7414  ;;  %v5366_v45 = vpack.c.bf16 %v5346_v17, %v5344_v63 }
 0xa0e   : > { %v5317_v48 = vadd.f32 1.0, %v7415_v46  ;;  %v5348_v3 = vmul.f32 %v5316_v12, %v5220_v10 }
 0xa0f   : > { %v7417_v43 = vpop.eup %7416  ;;  %5578 = vmatprep.mubr.bf16.mxu1 %v5366_v45 }
 0xa10   : > { %v5318_v35 = vadd.f32 1.0, %v7417_v43  ;;  %5579 = vmatmul.mubr.bf16.gmra.mxu1 %v5365_v39  ;;  %v5349_v28 = vmul.f32 %v5317_v48, %v5221_v30 }
 0xa11   : > { %v7419_v11 = vpop.eup %7418 }
 0xa12   : > { %v5350_v9 = vmul.f32 %v5318_v35, %v5222_v22  ;;  %v5367_v1 = vpack.c.bf16 %v5349_v28, %v5347_v61  ;;  %v5319_v62 = vadd.f32 1.0, %v7419_v11 }
 0xa13   : > { %v7421_v56 = vpop.eup %7420 }
 0xa14   : > { %v5368_v59 = vpack.c.bf16 %v5350_v9, %v5348_v3  ;;  %v5320_v41 = vadd.f32 1.0, %v7421_v56  ;;  %v5351_v60 = vmul.f32 %v5319_v62, %v5223_v20 }
 0xa15   : > { %v7423_v8 = vpop.eup %7422 }
 0xa16   : > { %v5321_v55 = vadd.f32 1.0, %v7423_v8  ;;  %5586 = vmatprep.mubr.bf16.mxu1 %v5368_v59  ;;  %v5352_v6 = vmul.f32 %v5320_v41, %v5224_v53 }
 0xa17   : > { %v7425_v19 = vpop.eup %7424 }
 0xa18   : > { %5587 = vmatmul.mubr.bf16.gmra.mxu1 %v5367_v1  ;;  %v5322_v7 = vadd.f32 1.0, %v7425_v19  ;;  %v5353_v40 = vmul.f32 %v5321_v55, %v5225_v49 }
 0xa1a   : > { %v5354_v33 = vmul.f32 %v5322_v7, %v5226_v32  ;;  %v5369_v15 = vpack.c.bf16 %v5353_v40, %v5351_v60 }
 0xa1c   : > { %v5370_v44 = vpack.c.bf16 %v5354_v33, %v5352_v6 }
 0xa1e   : > { %5594 = vmatprep.mubr.bf16.mxu1 %v5370_v44 }
 0xa20   : > { %5595 = vmatmul.mubr.bf16.gmra.mxu1 %v5369_v15 }
 0xa80   : > { %v6331_v4 = vpop.f32.mrf.mxu1 }
 0xa82   : > { %v6332_v54 = vpop.f32.mrf.mxu1 }
 0xa83   : > { %v6333_v52 = vadd.f32 %v6332_v54, %v6331_v4 }
 0xa84   : > { %v6334_v14 = vpop.f32.mrf.mxu1 }
 0xa85   : > { %v5541_v25 = vadd.f32 %v6333_v52, %v10011_v34 }
 0xa86   : > { %v6335_v58 = vpop.f32.mrf.mxu1 }
 0xa87   : > { %v5603_v24 = vadd.f32 %v5541_v25, %v9804_v37  ;;  %v6336_v63 = vadd.f32 %v6335_v58, %v6334_v14 }
 0xa88   : > { %v6337_v17 = vpop.f32.mrf.mxu1 }
 0xa89   : > { %5619 = vst [vmem:[%s10017_s22] sm:$0xff] %v5603_v24  ;;  %v5544_v36 = vadd.f32 %v6336_v63, %v10011_v34 }
 0xa8a   : > { %v6338_v50 = vpop.f32.mrf.mxu1 }
 0xa8b   : > { %v5604_v46 = vadd.f32 %v5544_v36, %v9807_v27  ;;  %v6339_v45 = vadd.f32 %v6338_v50, %v6337_v17 }
 0xa8c   : > { %v6340_v39 = vpop.f32.mrf.mxu1 }
 0xa8d   : > { %5620 = vst [vmem:[%s10017_s22 + $0x8] sm:$0xff] %v5604_v46  ;;  %v5549_v37 = vadd.f32 %v6339_v45, %v10011_v34 }
 0xa8e   : > { %v6341_v12 = vpop.f32.mrf.mxu1 }
 0xa8f   : > { %v5605_v48 = vadd.f32 %v5549_v37, %v9818_v0  ;;  %v6342_v43 = vadd.f32 %v6341_v12, %v6340_v39 }
 0xa91   : > { %5621 = vst [vmem:[%s10017_s22 + $0x10] sm:$0xff] %v5605_v48  ;;  %v5552_v10 = vadd.f32 %v6342_v43, %v10011_v34 }
 0xa93   : > { %v5606_v2 = vadd.f32 %v5552_v10, %v9815_v26 }
 0xa95   : > { %5622 = vst [vmem:[%s10017_s22 + $0x18] sm:$0xff] %v5606_v2 }
 0xab7   : > { %v6343_v30 = vpop.f32.mrf.mxu1 }
 0xab9   : > { %v6344_v22 = vpop.f32.mrf.mxu1 }
 0xaba   : > { %v6345_v27 = vadd.f32 %v6344_v22, %v6343_v30 }
 0xabb   : > { %v6346_v35 = vpop.f32.mrf.mxu1 }
 0xabc   : > { %v5557_v51 = vadd.f32 %v6345_v27, %v10011_v34 }
 0xabd   : > { %v6347_v3 = vpop.f32.mrf.mxu1 }
 0xabe   : > { %v5607_v28 = vadd.f32 %v5557_v51, %v9830_v16  ;;  %v6348_v9 = vadd.f32 %v6347_v3, %v6346_v35 }
 0xabf   : > { %v6349_v0 = vpop.f32.mrf.mxu1 }
 0xac0   : > { %5623 = vst [vmem:[%s10017_s22 + $0x20] sm:$0xff] %v5607_v28  ;;  %v5560_v11 = vadd.f32 %v6348_v9, %v10011_v34 }
 0xac1   : > { %v6350_v56 = vpop.f32.mrf.mxu1 }
 0xac2   : > { %v5608_v26 = vadd.f32 %v5560_v11, %v9833_v57  ;;  %v6351_v61 = vadd.f32 %v6350_v56, %v6349_v0 }
 0xac3   : > { %v6352_v59 = vpop.f32.mrf.mxu1 }
 0xac4   : > { %5624 = vst [vmem:[%s10017_s22 + $0x28] sm:$0xff] %v5608_v26  ;;  %v5565_v8 = vadd.f32 %v6351_v61, %v10011_v34 }
 0xac5   : > { %v6353_v1 = vpop.f32.mrf.mxu1 }
 0xac6   : > { %v5609_v55 = vadd.f32 %v5565_v8, %v9845_v23  ;;  %v6354_v41 = vadd.f32 %v6353_v1, %v6352_v59 }
 0xac8   : > { %5625 = vst [vmem:[%s10017_s22 + $0x30] sm:$0xff] %v5609_v55  ;;  %v5568_v16 = vadd.f32 %v6354_v41, %v10011_v34  ;;  %v6355_v19 = vpop.f32.mrf.mxu1 }
 0xaca   : > { %v5610_v62 = vadd.f32 %v5568_v16, %v9842_v42  ;;  %v6356_v49 = vpop.f32.mrf.mxu1 }
 0xacb   : > { %v6357_v53 = vadd.f32 %v6356_v49, %v6355_v19 }
 0xacc   : > { %5626 = vst [vmem:[%s10017_s22 + $0x38] sm:$0xff] %v5610_v62  ;;  %v6358_v57 = vpop.f32.mrf.mxu1 }
 0xacd   : > { %v5573_v32 = vadd.f32 %v6357_v53, %v10011_v34 }
 0xace   : > { %v6359_v7 = vpop.f32.mrf.mxu1 }
 0xacf   : > { %v5611_v20 = vadd.f32 %v5573_v32, %v9856_v13  ;;  %v6360_v40 = vadd.f32 %v6359_v7, %v6358_v57 }
 0xad0   : > { %v6361_v23 = vpop.f32.mrf.mxu1 }
 0xad1   : > { %5627 = vst [vmem:[%s10017_s22 + $0x40] sm:$0xff] %v5611_v20  ;;  %v5576_v6 = vadd.f32 %v6360_v40, %v10011_v34 }
 0xad2   : > { %v6362_v33 = vpop.f32.mrf.mxu1 }
 0xad3   : > { %v5612_v42 = vadd.f32 %v5576_v6, %v9859_v5  ;;  %v6363_v60 = vadd.f32 %v6362_v33, %v6361_v23 }
 0xad4   : > { %v6364_v44 = vpop.f32.mrf.mxu1 }
 0xad5   : > { %5628 = vst [vmem:[%s10017_s22 + $0x48] sm:$0xff] %v5612_v42  ;;  %v5581_v15 = vadd.f32 %v6363_v60, %v10011_v34 }
 0xad6   : > { %v6365_v4 = vpop.f32.mrf.mxu1 }
 0xad7   : > { %v5613_v54 = vadd.f32 %v5581_v15, %v9873_v47  ;;  %v6366_v52 = vadd.f32 %v6365_v4, %v6364_v44 }
 0xad8   : > { %v6367_v13 = vpop.f32.mrf.mxu1 }
 0xad9   : > { %5629 = vst [vmem:[%s10017_s22 + $0x50] sm:$0xff] %v5613_v54  ;;  %v5584_v14 = vadd.f32 %v6366_v52, %v10011_v34 }
 0xada   : > { %v6368_v25 = vpop.f32.mrf.mxu1 }
 0xadb   : > { %v5614_v58 = vadd.f32 %v5584_v14, %v9868_v21  ;;  %v6369_v24 = vadd.f32 %v6368_v25, %v6367_v13 }
 0xadc   : > { %v6370_v5 = vpop.f32.mrf.mxu1 }
 0xadd   : > { %5630 = vst [vmem:[%s10017_s22 + $0x58] sm:$0xff] %v5614_v58  ;;  %v5589_v63 = vadd.f32 %v6369_v24, %v10011_v34 }
 0xade   : > { %v6371_v17 = vpop.f32.mrf.mxu1 }
 0xadf   : > { %v5615_v36 = vadd.f32 %v5589_v63, %v9883_v38  ;;  %v6372_v47 = vadd.f32 %v6371_v17, %v6370_v5 }
 0xae0   : > { %v6373_v50 = vpop.f32.mrf.mxu1 }
 0xae1   : > { %5631 = vst [vmem:[%s10017_s22 + $0x60] sm:$0xff] %v5615_v36  ;;  %v5592_v46 = vadd.f32 %v6372_v47, %v10011_v34 }
 0xae2   : > { %v6374_v45 = vpop.f32.mrf.mxu1 }
 0xae3   : > { %v5616_v21 = vadd.f32 %v5592_v46, %v9886_v18  ;;  %v6375_v39 = vadd.f32 %v6374_v45, %v6373_v50 }
 0xae4   : > { %v6376_v37 = vpop.f32.mrf.mxu1 }
 0xae5   : > { %5632 = vst [vmem:[%s10017_s22 + $0x68] sm:$0xff] %v5616_v21  ;;  %v5597_v12 = vadd.f32 %v6375_v39, %v10011_v34 }
 0xae6   : > { %v6377_v48 = vpop.f32.mrf.mxu1 }
 0xae7   : > { %v5617_v38 = vadd.f32 %v5597_v12, %v9897_v31  ;;  %v6378_v43 = vadd.f32 %v6377_v48, %v6376_v37 }
 0xae9   : > { %5633 = vst [vmem:[%s10017_s22 + $0x70] sm:$0xff] %v5617_v38  ;;  %v5600_v10 = vadd.f32 %v6378_v43, %v10011_v34 }
 0xaeb   : > { %v5618_v18 = vadd.f32 %v5600_v10, %v9894_v29 }
 0xaed   : > { %5634 = vst [vmem:[%s10017_s22 + $0x78] sm:$0xff] %v5618_v18 }
 0xaee   : > { %7640 = shalt.err (!%p7637_p6)
}
 0xaef   : > { %s7641_s25 = scalar_lea.hbm %s10068_s24, 2048  ;;  %s7645_s13 = scalar_lea.hbm %s10126_s11, 4096 }
 0xaf0   : > { %p7642_p4 = scmp.ne.s32.totalorder %s10068_s24, %s7641_s25  ;;  %p7646_p9 = scmp.lt.s32.totalorder %s10068_s24, %s10126_s11 }
 0xaf1   : > { %p7647_p11 = scmp.lt.s32.totalorder %s7645_s13, %s7641_s25 }
 0xaf2   : > { %p7643_p1 = pnand %p7642_p4, %p10280_p13 }
 0xaf3   : > { %p7648_p10 = por %p7647_p11, %p7646_p9 }
 0xaf4   : > { %p7644_p3 = pneg %p7643_p1 }
 0xaf6   : > { %p7649_p12 = pnand %p7648_p10, %p7644_p3 }
 0xaf8   : > { %7652 = shalt.err (!%p7649_p12)
}
 0xaf9   : > { %s7723_s1 = smov 128   ;;  %s7724_s3 = smov 8  }
 0xafa   : > { %6805 = dma.vmem_to_hbm [thread:$0]  (%p10280_p13), %s10070_s2, 2048, %s10068_s24, %s5636_s14, %s7723_s1, %s7723_s1, %s7724_s3  }
 0xafb PF: > { %s5664_s16 = sand.u32 1, %s7691_s17   ;;  %p10281_p0 = scmp.ne.s32.totalorder %s10187_s26, 0 }
 0xafc   : > { %p10282_p2 = scmp.ge.s32.totalorder %s7703_s20, 2  ;;  %s5665_s23 = scalar_lea.sflag [#allocation7], %s5664_s16 }
 0xafe   : > { %p6831_p5 = pnand %p10282_p2, %p10281_p0 }
 0xb00   : > { %p6832_p8 = pneg %p6831_p5 }
 0xb02   : > { %7686 = dma.done.wait (%p6832_p8), %s5665_s23, 2048  }
 0xb03   : > { %7688 = vsyncadd (%p6832_p8), %s5665_s23, 4294965248  ;;  %p27_p7 = scmp.ge.s32.totalorder %s7891_s27, 4   ;;  %s10283_s17 = smov %s7695_s18 }
 0xb04   : > { %s10284_s18 = smov %s7699_s19  ;;  %s10285_s19 = smov %s7902_s28 }
 0xb05   : > { %s10286_s20 = smov %s7891_s27  ;;  %29 = sbr.rel (!%p27_p7) target bundleno = 14 (0xe), region = 142 }
 0xb0a   :  { %5670 = vsyncpa [#allocation6], 1 }
 0xb0b   :  { %5672 = vsyncpa [#allocation6 + $0x1], 1 }
 0xb0c   :  { %5673 = vsyncpa [#allocation9], 1 }
 0xb0d   :  { %5674 = vsyncpa [#allocation12], 1 }
 0xb0e   :  { %5675 = vsyncpa [#allocation15], 1 }
 0xb0f   :  { %5676 = vsyncpa [#allocation7], 1 }
 0xb10   :  { %5678 = vsyncpa [#allocation7 + $0x1], 1 }

</bundles_post_ra>
